<compile_context>
chip_gen: v7x
topology: tpu7x:2x2x1
jax: 0.10.0
libtpu: 0.0.40
codegen_flags: <defaults>
</compile_context>

<pallas_src>
import functools

import jax
import jax.numpy as jnp
from jax import lax
from jax.experimental import pallas as pl
from jax.experimental.pallas import tpu as pltpu


# ------------------------------ kernel helpers ------------------------------


def _swish(v):
    return v * jax.nn.sigmoid(v)


def _group_norm(x3, gamma, beta, pool, eps=1e-6):
    """GroupNorm for a (Bt, H*W, C) f32 block.

    `pool` is a precomputed (C, C) f32 matrix with pool[i, j] = 1/(H*W*cg) when
    channels i and j share a group, else 0 — one tiny matmul both pools the
    per-channel sums over the group AND broadcasts the result back to channels.
    gamma/beta are (1, C) f32.
    """
    s1 = jnp.sum(x3, axis=1)                       # (Bt, C) channel sums
    s2 = jnp.sum(x3 * x3, axis=1)                  # (Bt, C) channel sq-sums
    mean = jnp.dot(s1, pool, preferred_element_type=jnp.float32)[:, None, :]
    ex2 = jnp.dot(s2, pool, preferred_element_type=jnp.float32)[:, None, :]
    var = jnp.maximum(ex2 - mean * mean, 0.0)      # f32 stats; clamp cancellation
    inv = lax.rsqrt(var + eps)
    return (x3 - mean) * (inv * gamma) + beta      # scale folded into inv once


def _im2col_3x3(col_ref, v):
    """Scatter the 9 3x3-tap shifts of v (Bt, H, W, C) into col_ref (Bt,H,W,>=9C).

    v is already bf16, so the scratch stores are bf16. Each tap is one strided
    store of the valid window straight from registers; only the 1-pixel border
    strips of boundary taps are zeroed (no full-buffer zeroing, no padded
    scratch)."""
    Bt, H, W, C = v.shape
    zrow = jnp.zeros((Bt, 1, W, C), v.dtype)       # hoisted, reused for 3 taps
    zcol = jnp.zeros((Bt, H, 1, C), v.dtype)
    for kh in range(3):
        dh = kh - 1
        h0 = 1 if dh < 0 else 0                    # dest row offset
        hs = 1 if dh > 0 else 0                    # src  row offset
        hv = H - abs(dh)
        for kw in range(3):
            dw = kw - 1
            w0 = 1 if dw < 0 else 0
            ws = 1 if dw > 0 else 0
            wv = W - abs(dw)
            cs = (kh * 3 + kw) * C                 # lane offset of this tap
            if dh != 0:                            # zero the untouched row strip
                col_ref[:, pl.ds(0 if dh < 0 else H - 1, 1), :, pl.ds(cs, C)] = zrow
            if dw != 0:                            # zero the untouched col strip
                col_ref[:, :, pl.ds(0 if dw < 0 else W - 1, 1), pl.ds(cs, C)] = zcol
            col_ref[:, pl.ds(h0, hv), pl.ds(w0, wv), pl.ds(cs, C)] = (
                v[:, hs:hs + hv, ws:ws + wv, :])


# --------------------------------- kernel -----------------------------------


def _resnet_block_kernel(Bt, H, W, Cin, Cout,
                         x_ref, tproj_ref,
                         g1_ref, b1_ref, pool1_ref, w1_ref, bc1_ref,
                         g2_ref, b2_ref, pool2_ref, w2_ref, bc2_ref,
                         wn_ref, bn_ref,
                         out_ref,
                         col_ref):
    f32, bf16 = jnp.float32, jnp.bfloat16
    HW = H * W
    M = Bt * HW

    x = x_ref[...].reshape(Bt, HW, Cin)            # (Bt, HW, Cin) f32

    # ---- h = conv1(swish(norm1(x))) : single (M, 9*Cin)@(9*Cin, Cout) matmul
    h = _swish(_group_norm(x, g1_ref[...], b1_ref[...], pool1_ref[...]))
    _im2col_3x3(col_ref, h.astype(bf16).reshape(Bt, H, W, Cin))
    col1 = col_ref[:, :, :, pl.ds(0, 9 * Cin)].reshape(M, 9 * Cin)
    h = (jnp.dot(col1, w1_ref[...], preferred_element_type=f32)
         .reshape(Bt, HW, Cout) + bc1_ref[...])

    # ---- h = h + temb_proj(swish(temb))  (projection precomputed in wrapper)
    h = h + tproj_ref[...]                         # (Bt, 1, Cout) broadcast

    # ---- h = conv2(dropout(swish(norm2(h))))   (dropout p=0.0 -> identity)
    h = _swish(_group_norm(h, g2_ref[...], b2_ref[...], pool2_ref[...]))
    _im2col_3x3(col_ref, h.astype(bf16).reshape(Bt, H, W, Cout))
    col2 = col_ref[:, :, :, pl.ds(0, 9 * Cout)].reshape(M, 9 * Cout)
    h = (jnp.dot(col2, w2_ref[...], preferred_element_type=f32)
         .reshape(Bt, HW, Cout) + bc2_ref[...])

    # ---- nin_shortcut (1x1 conv, Cin != Cout) + residual, in f32
    sc = (jnp.dot(x.reshape(M, Cin).astype(bf16), wn_ref[...],
                  preferred_element_type=f32)
          .reshape(Bt, HW, Cout) + bn_ref[...])
    out_ref[...] = (sc + h).reshape(Bt, H, W, Cout)


# -------------------------------- wrapper ------------------------------------


def _pick_batch_tile(B, HW, target_m=256):
    """Largest divisor of B such that Bt*HW stays near target_m MXU rows."""
    want = max(1, -(-target_m // HW))              # ceil(target_m / HW)
    bt = 1
    for d in range(1, B + 1):
        if B % d == 0 and d <= want:
            bt = d
    return bt


def resnet_block_forward(x_nchw, temb, params, num_groups=32, batch_tile=None):
    """x_nchw: (B, Cin, H, W), temb: (B, T). Returns (B, Cout, H, W)."""
    B, Cin, H, W = x_nchw.shape
    Cout = params["w1"].shape[0]
    f32, bf16 = jnp.float32, jnp.bfloat16
    Cmax = max(Cin, Cout)

    Bt = _pick_batch_tile(B, H * W) if batch_tile is None else batch_tile
    assert B % Bt == 0, (B, Bt)

    # NCHW -> NHWC once at the boundary (a production NHWC pipeline skips this).
    x = jnp.transpose(x_nchw, (0, 2, 3, 1)).astype(f32)

    # Hoisted temb projection (swish -> Linear) in f32, one row per batch element.
    t = temb.astype(f32)
    tproj = (_swish(t) @ jnp.transpose(params["wt"]).astype(f32)
             + params["bt"].astype(f32)).reshape(B, 1, Cout)

    # Conv weights OIHW -> (kh, kw, ci, co) -> (9*ci, co); bf16 MXU operands.
    w1 = jnp.transpose(params["w1"], (2, 3, 1, 0)).reshape(9 * Cin, Cout).astype(bf16)
    w2 = jnp.transpose(params["w2"], (2, 3, 1, 0)).reshape(9 * Cout, Cout).astype(bf16)
    wn = jnp.transpose(params["wn"]).astype(bf16)  # (Cin, Cout)

    # GroupNorm pooling matrices (include the 1/(H*W*cg) factor), built once here
    # instead of per grid iteration inside the kernel.
    def pool_matrix(C):
        cg = C // num_groups
        gi = (jnp.arange(C)[:, None] // cg) == (jnp.arange(C)[None, :] // cg)
        return gi.astype(f32) * (1.0 / float(H * W * cg))

    pool1, pool2 = pool_matrix(Cin), pool_matrix(Cout)

    args = (
        x, tproj,
        params["g1"].reshape(1, Cin).astype(f32), params["b1"].reshape(1, Cin).astype(f32),
        pool1, w1, params["bc1"].reshape(1, Cout).astype(f32),
        params["g2"].reshape(1, Cout).astype(f32), params["b2"].reshape(1, Cout).astype(f32),
        pool2, w2, params["bc2"].reshape(1, Cout).astype(f32),
        wn, params["bn"].reshape(1, Cout).astype(f32),
    )

    def replicated(a):
        return pl.BlockSpec(a.shape, lambda b, n=a.ndim: (0,) * n)

    in_specs = [
        pl.BlockSpec((Bt, H, W, Cin), lambda b: (b, 0, 0, 0)),   # x, per batch-tile
        pl.BlockSpec((Bt, 1, Cout), lambda b: (b, 0, 0)),        # temb projection
    ] + [replicated(a) for a in args[2:]]

    # VMEM budget from the real footprint (double-buffered I/O blocks + shared
    # bf16 col scratch + bf16 weights + f32 temporaries), clamped so the same
    # number is safe under v7x's 64 MiB physical VMEM.
    col_bytes = Bt * H * W * 9 * Cmax * 2
    io_bytes = 2 * Bt * H * W * (Cin + Cout) * 4 + 2 * Bt * Cout * 4
    wgt_bytes = (2 * (9 * Cin * Cout + 9 * Cout * Cout + Cin * Cout) * 2
                 + 2 * (Cin * Cin + Cout * Cout) * 4 + 16 * Cout * 4 + 8 * Cin * 4)
    tmp_bytes = 6 * Bt * H * W * Cmax * 4
    est = col_bytes + io_bytes + wgt_bytes + tmp_bytes
    vmem_limit = int(min(max(2 * est, 16 * 1024 * 1024), 48 * 1024 * 1024))

    kernel = functools.partial(_resnet_block_kernel, Bt, H, W, Cin, Cout)

    out_nhwc = pl.pallas_call(
        kernel,
        grid=(B // Bt,),
        in_specs=in_specs,
        out_specs=pl.BlockSpec((Bt, H, W, Cout), lambda b: (b, 0, 0, 0)),
        out_shape=jax.ShapeDtypeStruct((B, H, W, Cout), f32),
        scratch_shapes=[
            # single shared bf16 im2col buffer, reused by conv1 and conv2
            pltpu.VMEM((Bt, H, W, 9 * Cmax), bf16),
        ],
        compiler_params=pltpu.CompilerParams(
            dimension_semantics=("parallel",),
            vmem_limit_bytes=vmem_limit),
    )(*args)

    return jnp.transpose(out_nhwc, (0, 3, 1, 2))   # NHWC -> NCHW


# ----------------------------- pure-JAX reference -----------------------------


def _ref_forward(x, temb, params, num_groups=32, eps=1e-6):
    def gn(v, g, b):
        B, C, H, W = v.shape
        vg = v.reshape(B, num_groups, C // num_groups, H, W)
        m = vg.mean(axis=(2, 3, 4), keepdims=True)
        var = vg.var(axis=(2, 3, 4), keepdims=True)
        vn = ((vg - m) / jnp.sqrt(var + eps)).reshape(B, C, H, W)
        return vn * g[None, :, None, None] + b[None, :, None, None]

    def sw(v):
        return v * jax.nn.sigmoid(v)

    def conv(v, w, b, pad):
        y = lax.conv_general_dilated(
            v, w, (1, 1), [(pad, pad), (pad, pad)],
            dimension_numbers=("NCHW", "OIHW", "NCHW"),
            precision=lax.Precision.HIGHEST)
        return y + b[None, :, None, None]

    Cout, Cin = params["wn"].shape
    h = conv(sw(gn(x, params["g1"], params["b1"])), params["w1"], params["bc1"], 1)
    h = h + (sw(temb) @ params["wt"].T + params["bt"])[:, :, None, None]
    h = conv(sw(gn(h, params["g2"], params["b2"])), params["w2"], params["bc2"], 1)
    xs = conv(x, params["wn"].reshape(Cout, Cin, 1, 1), params["bn"], 0)
    return xs + h


# ----------------------------------- main -------------------------------------


if __name__ == "__main__":
    B, Cin, Cout, H, W = 2, 32, 64, 8, 8
    T = 64           # temb_channels
    NUM_GROUPS = 32  # GroupNorm default in the module

    key = jax.random.PRNGKey(0)
    keys = jax.random.split(key, 16)

    x = jax.random.normal(keys[0], (B, Cin, H, W), jnp.float32)
    temb = jax.random.normal(keys[1], (B, T), jnp.float32)

    params = {
        # norm1 (GroupNorm affine)
        "g1": 1.0 + 0.1 * jax.random.normal(keys[2], (Cin,), jnp.float32),
        "b1": 0.1 * jax.random.normal(keys[3], (Cin,), jnp.float32),
        # conv1: (Cout, Cin, 3, 3) like PyTorch OIHW
        "w1": 0.05 * jax.random.normal(keys[4], (Cout, Cin, 3, 3), jnp.float32),
        "bc1": 0.05 * jax.random.normal(keys[5], (Cout,), jnp.float32),
        # temb_proj: Linear(T -> Cout), weight (Cout, T)
        "wt": 0.05 * jax.random.normal(keys[6], (Cout, T), jnp.float32),
        "bt": 0.05 * jax.random.normal(keys[7], (Cout,), jnp.float32),
        # norm2
        "g2": 1.0 + 0.1 * jax.random.normal(keys[8], (Cout,), jnp.float32),
        "b2": 0.1 * jax.random.normal(keys[9], (Cout,), jnp.float32),
        # conv2: (Cout, Cout, 3, 3)
        "w2": 0.05 * jax.random.normal(keys[10], (Cout, Cout, 3, 3), jnp.float32),
        "bc2": 0.05 * jax.random.normal(keys[11], (Cout,), jnp.float32),
        # nin_shortcut (1x1 conv) weight squeezed to (Cout, Cin)
        "wn": 0.05 * jax.random.normal(keys[12], (Cout, Cin), jnp.float32),
        "bn": 0.05 * jax.random.normal(keys[13], (Cout,), jnp.float32),
    }

    out = resnet_block_forward(x, temb, params, num_groups=NUM_GROUPS)
    out = jax.block_until_ready(out)

    ref = jax.block_until_ready(_ref_forward(x, temb, params, num_groups=NUM_GROUPS))
    assert out.shape == (B, Cout, H, W), out.shape
    max_err = float(jnp.max(jnp.abs(out - ref)))
    # bf16 MXU operands with f32 accumulation introduce ~1e-3 quantization noise
    # vs the f32 reference; 5e-2 still catches any real indexing/normalization bug.
    assert max_err < 5e-2, f"mismatch vs reference: max abs err = {max_err}"

    print("KERNEL_OK")
</pallas_src>

<mosaic_0001>
module attributes {stable_mosaic.version = 11 : i64} {
  func.func @_resnet_block_kernel(%arg0: i32, %arg1: memref<2x8x8x32xf32, #tpu.memory_space<vmem>>, %arg2: memref<2x1x64xf32, #tpu.memory_space<vmem>>, %arg3: memref<1x32xf32, #tpu.memory_space<vmem>>, %arg4: memref<1x32xf32, #tpu.memory_space<vmem>>, %arg5: memref<32x32xf32, #tpu.memory_space<vmem>>, %arg6: memref<288x64xbf16, #tpu.memory_space<vmem>>, %arg7: memref<1x64xf32, #tpu.memory_space<vmem>>, %arg8: memref<1x64xf32, #tpu.memory_space<vmem>>, %arg9: memref<1x64xf32, #tpu.memory_space<vmem>>, %arg10: memref<64x64xf32, #tpu.memory_space<vmem>>, %arg11: memref<576x64xbf16, #tpu.memory_space<vmem>>, %arg12: memref<1x64xf32, #tpu.memory_space<vmem>>, %arg13: memref<32x64xbf16, #tpu.memory_space<vmem>>, %arg14: memref<1x64xf32, #tpu.memory_space<vmem>>, %arg15: memref<2x8x8x64xf32, #tpu.memory_space<vmem>>, %arg16: memref<2x8x8x576xbf16, #tpu.memory_space<vmem>>) attributes {dimension_semantics = [#tpu.dimension_semantics<parallel>], iteration_bounds = array<i64: 1>, scalar_prefetch = 0 : i64, scratch_operands = 1 : i64, tpu.core_type = #tpu.core_type<tc>, window_params = [{transform_indices = @transform_0, window_bounds = array<i64: 2, 8, 8, 32>}, {transform_indices = @transform_1, window_bounds = array<i64: 2, 1, 64>}, {pipeline_mode = #tpu.pipeline_mode<synchronous>, transform_indices = @transform_2, window_bounds = array<i64: 1, 32>}, {pipeline_mode = #tpu.pipeline_mode<synchronous>, transform_indices = @transform_3, window_bounds = array<i64: 1, 32>}, {pipeline_mode = #tpu.pipeline_mode<synchronous>, transform_indices = @transform_4, window_bounds = array<i64: 32, 32>}, {pipeline_mode = #tpu.pipeline_mode<synchronous>, transform_indices = @transform_5, window_bounds = array<i64: 288, 64>}, {pipeline_mode = #tpu.pipeline_mode<synchronous>, transform_indices = @transform_6, window_bounds = array<i64: 1, 64>}, {pipeline_mode = #tpu.pipeline_mode<synchronous>, transform_indices = @transform_7, window_bounds = array<i64: 1, 64>}, {pipeline_mode = #tpu.pipeline_mode<synchronous>, transform_indices = @transform_8, window_bounds = array<i64: 1, 64>}, {pipeline_mode = #tpu.pipeline_mode<synchronous>, transform_indices = @transform_9, window_bounds = array<i64: 64, 64>}, {pipeline_mode = #tpu.pipeline_mode<synchronous>, transform_indices = @transform_10, window_bounds = array<i64: 576, 64>}, {pipeline_mode = #tpu.pipeline_mode<synchronous>, transform_indices = @transform_11, window_bounds = array<i64: 1, 64>}, {pipeline_mode = #tpu.pipeline_mode<synchronous>, transform_indices = @transform_12, window_bounds = array<i64: 32, 64>}, {pipeline_mode = #tpu.pipeline_mode<synchronous>, transform_indices = @transform_13, window_bounds = array<i64: 1, 64>}, {transform_indices = @transform_14, window_bounds = array<i64: 2, 8, 8, 64>}]} {
    %c0 = arith.constant 0 : index
    %c0_0 = arith.constant 0 : index
    %c0_1 = arith.constant 0 : index
    %c0_2 = arith.constant 0 : index
    %0 = vector.load %arg1[%c0, %c0_0, %c0_1, %c0_2] : memref<2x8x8x32xf32, #tpu.memory_space<vmem>>, vector<2x8x8x32xf32>
    %1 = vector.shape_cast %0 : vector<2x8x8x32xf32> to vector<2x64x32xf32>
    %c0_3 = arith.constant 0 : index
    %c0_4 = arith.constant 0 : index
    %2 = vector.load %arg3[%c0_3, %c0_4] : memref<1x32xf32, #tpu.memory_space<vmem>>, vector<1x32xf32>
    %c0_5 = arith.constant 0 : index
    %c0_6 = arith.constant 0 : index
    %3 = vector.load %arg4[%c0_5, %c0_6] : memref<1x32xf32, #tpu.memory_space<vmem>>, vector<1x32xf32>
    %c0_7 = arith.constant 0 : index
    %c0_8 = arith.constant 0 : index
    %4 = vector.load %arg5[%c0_7, %c0_8] : memref<32x32xf32, #tpu.memory_space<vmem>>, vector<32x32xf32>
    %cst = arith.constant dense<0.000000e+00> : vector<2x32xf32>
    %5 = vector.multi_reduction <add>, %1, %cst [1] : vector<2x64x32xf32> to vector<2x32xf32>
    %6 = arith.mulf %1, %1 : vector<2x64x32xf32>
    %cst_9 = arith.constant dense<0.000000e+00> : vector<2x32xf32>
    %7 = vector.multi_reduction <add>, %6, %cst_9 [1] : vector<2x64x32xf32> to vector<2x32xf32>
    %cst_10 = arith.constant dense<0.000000e+00> : vector<2x32xf32>
    %8 = tpu.matmul %5, %4, %cst_10 {dimension_numbers = #tpu.dot_dimension_numbers<[1], [0], [0], [1], [0, 0, 1, 1], [], []>} : vector<2x32xf32>, vector<32x32xf32>, vector<2x32xf32> -> vector<2x32xf32>
    %9 = vector.shape_cast %8 : vector<2x32xf32> to vector<2x1x32xf32>
    %cst_11 = arith.constant dense<0.000000e+00> : vector<2x32xf32>
    %10 = tpu.matmul %7, %4, %cst_11 {dimension_numbers = #tpu.dot_dimension_numbers<[1], [0], [0], [1], [0, 0, 1, 1], [], []>} : vector<2x32xf32>, vector<32x32xf32>, vector<2x32xf32> -> vector<2x32xf32>
    %11 = vector.shape_cast %10 : vector<2x32xf32> to vector<2x1x32xf32>
    %12 = arith.mulf %9, %9 : vector<2x1x32xf32>
    %13 = arith.subf %11, %12 : vector<2x1x32xf32>
    %cst_12 = arith.constant 0.000000e+00 : f32
    %14 = vector.broadcast %cst_12 : f32 to vector<2x1x32xf32>
    %15 = arith.maximumf %13, %14 : vector<2x1x32xf32>
    %cst_13 = arith.constant 9.99999997E-7 : f32
    %16 = vector.broadcast %cst_13 : f32 to vector<2x1x32xf32>
    %17 = arith.addf %15, %16 : vector<2x1x32xf32>
    %18 = math.rsqrt %17 : vector<2x1x32xf32>
    %19 = vector.broadcast %9 : vector<2x1x32xf32> to vector<2x64x32xf32>
    %20 = arith.subf %1, %19 : vector<2x64x32xf32>
    %21 = vector.shape_cast %2 : vector<1x32xf32> to vector<1x1x32xf32>
    %22 = vector.broadcast %21 : vector<1x1x32xf32> to vector<2x1x32xf32>
    %23 = arith.mulf %18, %22 : vector<2x1x32xf32>
    %24 = vector.broadcast %23 : vector<2x1x32xf32> to vector<2x64x32xf32>
    %25 = arith.mulf %20, %24 : vector<2x64x32xf32>
    %26 = vector.shape_cast %3 : vector<1x32xf32> to vector<1x1x32xf32>
    %27 = vector.broadcast %26 : vector<1x1x32xf32> to vector<2x64x32xf32>
    %28 = arith.addf %25, %27 : vector<2x64x32xf32>
    %29 = arith.negf %28 : vector<2x64x32xf32>
    %30 = math.exp %29 : vector<2x64x32xf32>
    %cst_14 = arith.constant 1.000000e+00 : f32
    %31 = vector.broadcast %cst_14 : f32 to vector<2x64x32xf32>
    %32 = arith.addf %31, %30 : vector<2x64x32xf32>
    %33 = arith.divf %31, %32 : vector<2x64x32xf32>
    %34 = arith.mulf %28, %33 : vector<2x64x32xf32>
    %35 = arith.truncf %34 : vector<2x64x32xf32> to vector<2x64x32xbf16>
    %36 = vector.shape_cast %35 : vector<2x64x32xbf16> to vector<2x8x8x32xbf16>
    %cst_15 = arith.constant 0.000000e+00 : bf16
    %37 = vector.broadcast %cst_15 : bf16 to vector<2x1x8x32xbf16>
    %cst_16 = arith.constant 0.000000e+00 : bf16
    %38 = vector.broadcast %cst_16 : bf16 to vector<2x8x1x32xbf16>
    %c0_17 = arith.constant 0 : index
    %c0_18 = arith.constant 0 : index
    %c0_19 = arith.constant 0 : index
    %c0_20 = arith.constant 0 : index
    %39 = vector.load %arg16[%c0_17, %c0_18, %c0_19, %c0_20] : memref<2x8x8x576xbf16, #tpu.memory_space<vmem>>, vector<2x1x8x32xbf16>
    tpu.vector_store %arg16[%c0_17, %c0_18, %c0_19, %c0_20], %37 {strides = array<i32>} : memref<2x8x8x576xbf16, #tpu.memory_space<vmem>>, vector<2x1x8x32xbf16>,
    %c0_21 = arith.constant 0 : index
    %c0_22 = arith.constant 0 : index
    %c0_23 = arith.constant 0 : index
    %c0_24 = arith.constant 0 : index
    %40 = vector.load %arg16[%c0_21, %c0_22, %c0_23, %c0_24] : memref<2x8x8x576xbf16, #tpu.memory_space<vmem>>, vector<2x8x1x32xbf16>
    tpu.vector_store %arg16[%c0_21, %c0_22, %c0_23, %c0_24], %38 {strides = array<i32>} : memref<2x8x8x576xbf16, #tpu.memory_space<vmem>>, vector<2x8x1x32xbf16>,
    %41 = vector.extract_strided_slice %36 {offsets = [0, 0, 0, 0], sizes = [2, 7, 7, 32], strides = [1, 1, 1, 1]} : vector<2x8x8x32xbf16> to vector<2x7x7x32xbf16>
    %c0_25 = arith.constant 0 : index
    %c1 = arith.constant 1 : index
    %c1_26 = arith.constant 1 : index
    %c0_27 = arith.constant 0 : index
    %42 = vector.load %arg16[%c0_25, %c1, %c1_26, %c0_27] : memref<2x8x8x576xbf16, #tpu.memory_space<vmem>>, vector<2x7x7x32xbf16>
    tpu.vector_store %arg16[%c0_25, %c1, %c1_26, %c0_27], %41 {strides = array<i32>} : memref<2x8x8x576xbf16, #tpu.memory_space<vmem>>, vector<2x7x7x32xbf16>,
    %c0_28 = arith.constant 0 : index
    %c0_29 = arith.constant 0 : index
    %c0_30 = arith.constant 0 : index
    %c32 = arith.constant 32 : index
    %43 = vector.load %arg16[%c0_28, %c0_29, %c0_30, %c32] : memref<2x8x8x576xbf16, #tpu.memory_space<vmem>>, vector<2x1x8x32xbf16>
    tpu.vector_store %arg16[%c0_28, %c0_29, %c0_30, %c32], %37 {strides = array<i32>} : memref<2x8x8x576xbf16, #tpu.memory_space<vmem>>, vector<2x1x8x32xbf16>,
    %44 = vector.extract_strided_slice %36 {offsets = [0, 0, 0, 0], sizes = [2, 7, 8, 32], strides = [1, 1, 1, 1]} : vector<2x8x8x32xbf16> to vector<2x7x8x32xbf16>
    %c0_31 = arith.constant 0 : index
    %c1_32 = arith.constant 1 : index
    %c0_33 = arith.constant 0 : index
    %c32_34 = arith.constant 32 : index
    %45 = vector.load %arg16[%c0_31, %c1_32, %c0_33, %c32_34] : memref<2x8x8x576xbf16, #tpu.memory_space<vmem>>, vector<2x7x8x32xbf16>
    tpu.vector_store %arg16[%c0_31, %c1_32, %c0_33, %c32_34], %44 {strides = array<i32>} : memref<2x8x8x576xbf16, #tpu.memory_space<vmem>>, vector<2x7x8x32xbf16>,
    %c0_35 = arith.constant 0 : index
    %c0_36 = arith.constant 0 : index
    %c0_37 = arith.constant 0 : index
    %c64 = arith.constant 64 : index
    %46 = vector.load %arg16[%c0_35, %c0_36, %c0_37, %c64] : memref<2x8x8x576xbf16, #tpu.memory_space<vmem>>, vector<2x1x8x32xbf16>
    tpu.vector_store %arg16[%c0_35, %c0_36, %c0_37, %c64], %37 {strides = array<i32>} : memref<2x8x8x576xbf16, #tpu.memory_space<vmem>>, vector<2x1x8x32xbf16>,
    %c0_38 = arith.constant 0 : index
    %c0_39 = arith.constant 0 : index
    %c7 = arith.constant 7 : index
    %c64_40 = arith.constant 64 : index
    %47 = vector.load %arg16[%c0_38, %c0_39, %c7, %c64_40] : memref<2x8x8x576xbf16, #tpu.memory_space<vmem>>, vector<2x8x1x32xbf16>
    tpu.vector_store %arg16[%c0_38, %c0_39, %c7, %c64_40], %38 {strides = array<i32>} : memref<2x8x8x576xbf16, #tpu.memory_space<vmem>>, vector<2x8x1x32xbf16>,
    %48 = vector.extract_strided_slice %36 {offsets = [0, 0, 1, 0], sizes = [2, 7, 7, 32], strides = [1, 1, 1, 1]} : vector<2x8x8x32xbf16> to vector<2x7x7x32xbf16>
    %c0_41 = arith.constant 0 : index
    %c1_42 = arith.constant 1 : index
    %c0_43 = arith.constant 0 : index
    %c64_44 = arith.constant 64 : index
    %49 = vector.load %arg16[%c0_41, %c1_42, %c0_43, %c64_44] : memref<2x8x8x576xbf16, #tpu.memory_space<vmem>>, vector<2x7x7x32xbf16>
    tpu.vector_store %arg16[%c0_41, %c1_42, %c0_43, %c64_44], %48 {strides = array<i32>} : memref<2x8x8x576xbf16, #tpu.memory_space<vmem>>, vector<2x7x7x32xbf16>,
    %c0_45 = arith.constant 0 : index
    %c0_46 = arith.constant 0 : index
    %c0_47 = arith.constant 0 : index
    %c96 = arith.constant 96 : index
    %50 = vector.load %arg16[%c0_45, %c0_46, %c0_47, %c96] : memref<2x8x8x576xbf16, #tpu.memory_space<vmem>>, vector<2x8x1x32xbf16>
    tpu.vector_store %arg16[%c0_45, %c0_46, %c0_47, %c96], %38 {strides = array<i32>} : memref<2x8x8x576xbf16, #tpu.memory_space<vmem>>, vector<2x8x1x32xbf16>,
    %51 = vector.extract_strided_slice %36 {offsets = [0, 0, 0, 0], sizes = [2, 8, 7, 32], strides = [1, 1, 1, 1]} : vector<2x8x8x32xbf16> to vector<2x8x7x32xbf16>
    %c0_48 = arith.constant 0 : index
    %c0_49 = arith.constant 0 : index
    %c1_50 = arith.constant 1 : index
    %c96_51 = arith.constant 96 : index
    %52 = vector.load %arg16[%c0_48, %c0_49, %c1_50, %c96_51] : memref<2x8x8x576xbf16, #tpu.memory_space<vmem>>, vector<2x8x7x32xbf16>
    tpu.vector_store %arg16[%c0_48, %c0_49, %c1_50, %c96_51], %51 {strides = array<i32>} : memref<2x8x8x576xbf16, #tpu.memory_space<vmem>>, vector<2x8x7x32xbf16>,
    %c0_52 = arith.constant 0 : index
    %c0_53 = arith.constant 0 : index
    %c0_54 = arith.constant 0 : index
    %c128 = arith.constant 128 : index
    %53 = vector.load %arg16[%c0_52, %c0_53, %c0_54, %c128] : memref<2x8x8x576xbf16, #tpu.memory_space<vmem>>, vector<2x8x8x32xbf16>
    tpu.vector_store %arg16[%c0_52, %c0_53, %c0_54, %c128], %36 {strides = array<i32>} : memref<2x8x8x576xbf16, #tpu.memory_space<vmem>>, vector<2x8x8x32xbf16>,
    %c0_55 = arith.constant 0 : index
    %c0_56 = arith.constant 0 : index
    %c7_57 = arith.constant 7 : index
    %c160 = arith.constant 160 : index
    %54 = vector.load %arg16[%c0_55, %c0_56, %c7_57, %c160] : memref<2x8x8x576xbf16, #tpu.memory_space<vmem>>, vector<2x8x1x32xbf16>
    tpu.vector_store %arg16[%c0_55, %c0_56, %c7_57, %c160], %38 {strides = array<i32>} : memref<2x8x8x576xbf16, #tpu.memory_space<vmem>>, vector<2x8x1x32xbf16>,
    %55 = vector.extract_strided_slice %36 {offsets = [0, 0, 1, 0], sizes = [2, 8, 7, 32], strides = [1, 1, 1, 1]} : vector<2x8x8x32xbf16> to vector<2x8x7x32xbf16>
    %c0_58 = arith.constant 0 : index
    %c0_59 = arith.constant 0 : index
    %c0_60 = arith.constant 0 : index
    %c160_61 = arith.constant 160 : index
    %56 = vector.load %arg16[%c0_58, %c0_59, %c0_60, %c160_61] : memref<2x8x8x576xbf16, #tpu.memory_space<vmem>>, vector<2x8x7x32xbf16>
    tpu.vector_store %arg16[%c0_58, %c0_59, %c0_60, %c160_61], %55 {strides = array<i32>} : memref<2x8x8x576xbf16, #tpu.memory_space<vmem>>, vector<2x8x7x32xbf16>,
    %c0_62 = arith.constant 0 : index
    %c7_63 = arith.constant 7 : index
    %c0_64 = arith.constant 0 : index
    %c192 = arith.constant 192 : index
    %57 = vector.load %arg16[%c0_62, %c7_63, %c0_64, %c192] : memref<2x8x8x576xbf16, #tpu.memory_space<vmem>>, vector<2x1x8x32xbf16>
    tpu.vector_store %arg16[%c0_62, %c7_63, %c0_64, %c192], %37 {strides = array<i32>} : memref<2x8x8x576xbf16, #tpu.memory_space<vmem>>, vector<2x1x8x32xbf16>,
    %c0_65 = arith.constant 0 : index
    %c0_66 = arith.constant 0 : index
    %c0_67 = arith.constant 0 : index
    %c192_68 = arith.constant 192 : index
    %58 = vector.load %arg16[%c0_65, %c0_66, %c0_67, %c192_68] : memref<2x8x8x576xbf16, #tpu.memory_space<vmem>>, vector<2x8x1x32xbf16>
    tpu.vector_store %arg16[%c0_65, %c0_66, %c0_67, %c192_68], %38 {strides = array<i32>} : memref<2x8x8x576xbf16, #tpu.memory_space<vmem>>, vector<2x8x1x32xbf16>,
    %59 = vector.extract_strided_slice %36 {offsets = [0, 1, 0, 0], sizes = [2, 7, 7, 32], strides = [1, 1, 1, 1]} : vector<2x8x8x32xbf16> to vector<2x7x7x32xbf16>
    %c0_69 = arith.constant 0 : index
    %c0_70 = arith.constant 0 : index
    %c1_71 = arith.constant 1 : index
    %c192_72 = arith.constant 192 : index
    %60 = vector.load %arg16[%c0_69, %c0_70, %c1_71, %c192_72] : memref<2x8x8x576xbf16, #tpu.memory_space<vmem>>, vector<2x7x7x32xbf16>
    tpu.vector_store %arg16[%c0_69, %c0_70, %c1_71, %c192_72], %59 {strides = array<i32>} : memref<2x8x8x576xbf16, #tpu.memory_space<vmem>>, vector<2x7x7x32xbf16>,
    %c0_73 = arith.constant 0 : index
    %c7_74 = arith.constant 7 : index
    %c0_75 = arith.constant 0 : index
    %c224 = arith.constant 224 : index
    %61 = vector.load %arg16[%c0_73, %c7_74, %c0_75, %c224] : memref<2x8x8x576xbf16, #tpu.memory_space<vmem>>, vector<2x1x8x32xbf16>
    tpu.vector_store %arg16[%c0_73, %c7_74, %c0_75, %c224], %37 {strides = array<i32>} : memref<2x8x8x576xbf16, #tpu.memory_space<vmem>>, vector<2x1x8x32xbf16>,
    %62 = vector.extract_strided_slice %36 {offsets = [0, 1, 0, 0], sizes = [2, 7, 8, 32], strides = [1, 1, 1, 1]} : vector<2x8x8x32xbf16> to vector<2x7x8x32xbf16>
    %c0_76 = arith.constant 0 : index
    %c0_77 = arith.constant 0 : index
    %c0_78 = arith.constant 0 : index
    %c224_79 = arith.constant 224 : index
    %63 = vector.load %arg16[%c0_76, %c0_77, %c0_78, %c224_79] : memref<2x8x8x576xbf16, #tpu.memory_space<vmem>>, vector<2x7x8x32xbf16>
    tpu.vector_store %arg16[%c0_76, %c0_77, %c0_78, %c224_79], %62 {strides = array<i32>} : memref<2x8x8x576xbf16, #tpu.memory_space<vmem>>, vector<2x7x8x32xbf16>,
    %c0_80 = arith.constant 0 : index
    %c7_81 = arith.constant 7 : index
    %c0_82 = arith.constant 0 : index
    %c256 = arith.constant 256 : index
    %64 = vector.load %arg16[%c0_80, %c7_81, %c0_82, %c256] : memref<2x8x8x576xbf16, #tpu.memory_space<vmem>>, vector<2x1x8x32xbf16>
    tpu.vector_store %arg16[%c0_80, %c7_81, %c0_82, %c256], %37 {strides = array<i32>} : memref<2x8x8x576xbf16, #tpu.memory_space<vmem>>, vector<2x1x8x32xbf16>,
    %c0_83 = arith.constant 0 : index
    %c0_84 = arith.constant 0 : index
    %c7_85 = arith.constant 7 : index
    %c256_86 = arith.constant 256 : index
    %65 = vector.load %arg16[%c0_83, %c0_84, %c7_85, %c256_86] : memref<2x8x8x576xbf16, #tpu.memory_space<vmem>>, vector<2x8x1x32xbf16>
    tpu.vector_store %arg16[%c0_83, %c0_84, %c7_85, %c256_86], %38 {strides = array<i32>} : memref<2x8x8x576xbf16, #tpu.memory_space<vmem>>, vector<2x8x1x32xbf16>,
    %66 = vector.extract_strided_slice %36 {offsets = [0, 1, 1, 0], sizes = [2, 7, 7, 32], strides = [1, 1, 1, 1]} : vector<2x8x8x32xbf16> to vector<2x7x7x32xbf16>
    %c0_87 = arith.constant 0 : index
    %c0_88 = arith.constant 0 : index
    %c0_89 = arith.constant 0 : index
    %c256_90 = arith.constant 256 : index
    %67 = vector.load %arg16[%c0_87, %c0_88, %c0_89, %c256_90] : memref<2x8x8x576xbf16, #tpu.memory_space<vmem>>, vector<2x7x7x32xbf16>
    tpu.vector_store %arg16[%c0_87, %c0_88, %c0_89, %c256_90], %66 {strides = array<i32>} : memref<2x8x8x576xbf16, #tpu.memory_space<vmem>>, vector<2x7x7x32xbf16>,
    %c0_91 = arith.constant 0 : index
    %c0_92 = arith.constant 0 : index
    %c0_93 = arith.constant 0 : index
    %c0_94 = arith.constant 0 : index
    %68 = vector.load %arg16[%c0_91, %c0_92, %c0_93, %c0_94] : memref<2x8x8x576xbf16, #tpu.memory_space<vmem>>, vector<2x8x8x288xbf16>
    %69 = vector.shape_cast %68 : vector<2x8x8x288xbf16> to vector<128x288xbf16>
    %c0_95 = arith.constant 0 : index
    %c0_96 = arith.constant 0 : index
    %70 = vector.load %arg6[%c0_95, %c0_96] : memref<288x64xbf16, #tpu.memory_space<vmem>>, vector<288x64xbf16>
    %cst_97 = arith.constant dense<0.000000e+00> : vector<128x64xf32>
    %71 = tpu.matmul %69, %70, %cst_97 {dimension_numbers = #tpu.dot_dimension_numbers<[1], [0], [0], [1], [0, 0, 1, 1], [], []>} : vector<128x288xbf16>, vector<288x64xbf16>, vector<128x64xf32> -> vector<128x64xf32>
    %72 = vector.shape_cast %71 : vector<128x64xf32> to vector<2x64x64xf32>
    %c0_98 = arith.constant 0 : index
    %c0_99 = arith.constant 0 : index
    %73 = vector.load %arg7[%c0_98, %c0_99] : memref<1x64xf32, #tpu.memory_space<vmem>>, vector<1x64xf32>
    %74 = vector.shape_cast %73 : vector<1x64xf32> to vector<1x1x64xf32>
    %75 = vector.broadcast %74 : vector<1x1x64xf32> to vector<2x64x64xf32>
    %76 = arith.addf %72, %75 : vector<2x64x64xf32>
    %c0_100 = arith.constant 0 : index
    %c0_101 = arith.constant 0 : index
    %c0_102 = arith.constant 0 : index
    %77 = vector.load %arg2[%c0_100, %c0_101, %c0_102] : memref<2x1x64xf32, #tpu.memory_space<vmem>>, vector<2x1x64xf32>
    %78 = vector.broadcast %77 : vector<2x1x64xf32> to vector<2x64x64xf32>
    %79 = arith.addf %76, %78 : vector<2x64x64xf32>
    %c0_103 = arith.constant 0 : index
    %c0_104 = arith.constant 0 : index
    %80 = vector.load %arg8[%c0_103, %c0_104] : memref<1x64xf32, #tpu.memory_space<vmem>>, vector<1x64xf32>
    %c0_105 = arith.constant 0 : index
    %c0_106 = arith.constant 0 : index
    %81 = vector.load %arg9[%c0_105, %c0_106] : memref<1x64xf32, #tpu.memory_space<vmem>>, vector<1x64xf32>
    %c0_107 = arith.constant 0 : index
    %c0_108 = arith.constant 0 : index
    %82 = vector.load %arg10[%c0_107, %c0_108] : memref<64x64xf32, #tpu.memory_space<vmem>>, vector<64x64xf32>
    %cst_109 = arith.constant dense<0.000000e+00> : vector<2x64xf32>
    %83 = vector.multi_reduction <add>, %79, %cst_109 [1] : vector<2x64x64xf32> to vector<2x64xf32>
    %84 = arith.mulf %79, %79 : vector<2x64x64xf32>
    %cst_110 = arith.constant dense<0.000000e+00> : vector<2x64xf32>
    %85 = vector.multi_reduction <add>, %84, %cst_110 [1] : vector<2x64x64xf32> to vector<2x64xf32>
    %cst_111 = arith.constant dense<0.000000e+00> : vector<2x64xf32>
    %86 = tpu.matmul %83, %82, %cst_111 {dimension_numbers = #tpu.dot_dimension_numbers<[1], [0], [0], [1], [0, 0, 1, 1], [], []>} : vector<2x64xf32>, vector<64x64xf32>, vector<2x64xf32> -> vector<2x64xf32>
    %87 = vector.shape_cast %86 : vector<2x64xf32> to vector<2x1x64xf32>
    %cst_112 = arith.constant dense<0.000000e+00> : vector<2x64xf32>
    %88 = tpu.matmul %85, %82, %cst_112 {dimension_numbers = #tpu.dot_dimension_numbers<[1], [0], [0], [1], [0, 0, 1, 1], [], []>} : vector<2x64xf32>, vector<64x64xf32>, vector<2x64xf32> -> vector<2x64xf32>
    %89 = vector.shape_cast %88 : vector<2x64xf32> to vector<2x1x64xf32>
    %90 = arith.mulf %87, %87 : vector<2x1x64xf32>
    %91 = arith.subf %89, %90 : vector<2x1x64xf32>
    %cst_113 = arith.constant 0.000000e+00 : f32
    %92 = vector.broadcast %cst_113 : f32 to vector<2x1x64xf32>
    %93 = arith.maximumf %91, %92 : vector<2x1x64xf32>
    %cst_114 = arith.constant 9.99999997E-7 : f32
    %94 = vector.broadcast %cst_114 : f32 to vector<2x1x64xf32>
    %95 = arith.addf %93, %94 : vector<2x1x64xf32>
    %96 = math.rsqrt %95 : vector<2x1x64xf32>
    %97 = vector.broadcast %87 : vector<2x1x64xf32> to vector<2x64x64xf32>
    %98 = arith.subf %79, %97 : vector<2x64x64xf32>
    %99 = vector.shape_cast %80 : vector<1x64xf32> to vector<1x1x64xf32>
    %100 = vector.broadcast %99 : vector<1x1x64xf32> to vector<2x1x64xf32>
    %101 = arith.mulf %96, %100 : vector<2x1x64xf32>
    %102 = vector.broadcast %101 : vector<2x1x64xf32> to vector<2x64x64xf32>
    %103 = arith.mulf %98, %102 : vector<2x64x64xf32>
    %104 = vector.shape_cast %81 : vector<1x64xf32> to vector<1x1x64xf32>
    %105 = vector.broadcast %104 : vector<1x1x64xf32> to vector<2x64x64xf32>
    %106 = arith.addf %103, %105 : vector<2x64x64xf32>
    %107 = arith.negf %106 : vector<2x64x64xf32>
    %108 = math.exp %107 : vector<2x64x64xf32>
    %cst_115 = arith.constant 1.000000e+00 : f32
    %109 = vector.broadcast %cst_115 : f32 to vector<2x64x64xf32>
    %110 = arith.addf %109, %108 : vector<2x64x64xf32>
    %111 = arith.divf %109, %110 : vector<2x64x64xf32>
    %112 = arith.mulf %106, %111 : vector<2x64x64xf32>
    %113 = arith.truncf %112 : vector<2x64x64xf32> to vector<2x64x64xbf16>
    %114 = vector.shape_cast %113 : vector<2x64x64xbf16> to vector<2x8x8x64xbf16>
    %cst_116 = arith.constant 0.000000e+00 : bf16
    %115 = vector.broadcast %cst_116 : bf16 to vector<2x1x8x64xbf16>
    %cst_117 = arith.constant 0.000000e+00 : bf16
    %116 = vector.broadcast %cst_117 : bf16 to vector<2x8x1x64xbf16>
    %c0_118 = arith.constant 0 : index
    %c0_119 = arith.constant 0 : index
    %c0_120 = arith.constant 0 : index
    %c0_121 = arith.constant 0 : index
    %117 = vector.load %arg16[%c0_118, %c0_119, %c0_120, %c0_121] : memref<2x8x8x576xbf16, #tpu.memory_space<vmem>>, vector<2x1x8x64xbf16>
    tpu.vector_store %arg16[%c0_118, %c0_119, %c0_120, %c0_121], %115 {strides = array<i32>} : memref<2x8x8x576xbf16, #tpu.memory_space<vmem>>, vector<2x1x8x64xbf16>,
    %c0_122 = arith.constant 0 : index
    %c0_123 = arith.constant 0 : index
    %c0_124 = arith.constant 0 : index
    %c0_125 = arith.constant 0 : index
    %118 = vector.load %arg16[%c0_122, %c0_123, %c0_124, %c0_125] : memref<2x8x8x576xbf16, #tpu.memory_space<vmem>>, vector<2x8x1x64xbf16>
    tpu.vector_store %arg16[%c0_122, %c0_123, %c0_124, %c0_125], %116 {strides = array<i32>} : memref<2x8x8x576xbf16, #tpu.memory_space<vmem>>, vector<2x8x1x64xbf16>,
    %119 = vector.extract_strided_slice %114 {offsets = [0, 0, 0, 0], sizes = [2, 7, 7, 64], strides = [1, 1, 1, 1]} : vector<2x8x8x64xbf16> to vector<2x7x7x64xbf16>
    %c0_126 = arith.constant 0 : index
    %c1_127 = arith.constant 1 : index
    %c1_128 = arith.constant 1 : index
    %c0_129 = arith.constant 0 : index
    %120 = vector.load %arg16[%c0_126, %c1_127, %c1_128, %c0_129] : memref<2x8x8x576xbf16, #tpu.memory_space<vmem>>, vector<2x7x7x64xbf16>
    tpu.vector_store %arg16[%c0_126, %c1_127, %c1_128, %c0_129], %119 {strides = array<i32>} : memref<2x8x8x576xbf16, #tpu.memory_space<vmem>>, vector<2x7x7x64xbf16>,
    %c0_130 = arith.constant 0 : index
    %c0_131 = arith.constant 0 : index
    %c0_132 = arith.constant 0 : index
    %c64_133 = arith.constant 64 : index
    %121 = vector.load %arg16[%c0_130, %c0_131, %c0_132, %c64_133] : memref<2x8x8x576xbf16, #tpu.memory_space<vmem>>, vector<2x1x8x64xbf16>
    tpu.vector_store %arg16[%c0_130, %c0_131, %c0_132, %c64_133], %115 {strides = array<i32>} : memref<2x8x8x576xbf16, #tpu.memory_space<vmem>>, vector<2x1x8x64xbf16>,
    %122 = vector.extract_strided_slice %114 {offsets = [0, 0, 0, 0], sizes = [2, 7, 8, 64], strides = [1, 1, 1, 1]} : vector<2x8x8x64xbf16> to vector<2x7x8x64xbf16>
    %c0_134 = arith.constant 0 : index
    %c1_135 = arith.constant 1 : index
    %c0_136 = arith.constant 0 : index
    %c64_137 = arith.constant 64 : index
    %123 = vector.load %arg16[%c0_134, %c1_135, %c0_136, %c64_137] : memref<2x8x8x576xbf16, #tpu.memory_space<vmem>>, vector<2x7x8x64xbf16>
    tpu.vector_store %arg16[%c0_134, %c1_135, %c0_136, %c64_137], %122 {strides = array<i32>} : memref<2x8x8x576xbf16, #tpu.memory_space<vmem>>, vector<2x7x8x64xbf16>,
    %c0_138 = arith.constant 0 : index
    %c0_139 = arith.constant 0 : index
    %c0_140 = arith.constant 0 : index
    %c128_141 = arith.constant 128 : index
    %124 = vector.load %arg16[%c0_138, %c0_139, %c0_140, %c128_141] : memref<2x8x8x576xbf16, #tpu.memory_space<vmem>>, vector<2x1x8x64xbf16>
    tpu.vector_store %arg16[%c0_138, %c0_139, %c0_140, %c128_141], %115 {strides = array<i32>} : memref<2x8x8x576xbf16, #tpu.memory_space<vmem>>, vector<2x1x8x64xbf16>,
    %c0_142 = arith.constant 0 : index
    %c0_143 = arith.constant 0 : index
    %c7_144 = arith.constant 7 : index
    %c128_145 = arith.constant 128 : index
    %125 = vector.load %arg16[%c0_142, %c0_143, %c7_144, %c128_145] : memref<2x8x8x576xbf16, #tpu.memory_space<vmem>>, vector<2x8x1x64xbf16>
    tpu.vector_store %arg16[%c0_142, %c0_143, %c7_144, %c128_145], %116 {strides = array<i32>} : memref<2x8x8x576xbf16, #tpu.memory_space<vmem>>, vector<2x8x1x64xbf16>,
    %126 = vector.extract_strided_slice %114 {offsets = [0, 0, 1, 0], sizes = [2, 7, 7, 64], strides = [1, 1, 1, 1]} : vector<2x8x8x64xbf16> to vector<2x7x7x64xbf16>
    %c0_146 = arith.constant 0 : index
    %c1_147 = arith.constant 1 : index
    %c0_148 = arith.constant 0 : index
    %c128_149 = arith.constant 128 : index
    %127 = vector.load %arg16[%c0_146, %c1_147, %c0_148, %c128_149] : memref<2x8x8x576xbf16, #tpu.memory_space<vmem>>, vector<2x7x7x64xbf16>
    tpu.vector_store %arg16[%c0_146, %c1_147, %c0_148, %c128_149], %126 {strides = array<i32>} : memref<2x8x8x576xbf16, #tpu.memory_space<vmem>>, vector<2x7x7x64xbf16>,
    %c0_150 = arith.constant 0 : index
    %c0_151 = arith.constant 0 : index
    %c0_152 = arith.constant 0 : index
    %c192_153 = arith.constant 192 : index
    %128 = vector.load %arg16[%c0_150, %c0_151, %c0_152, %c192_153] : memref<2x8x8x576xbf16, #tpu.memory_space<vmem>>, vector<2x8x1x64xbf16>
    tpu.vector_store %arg16[%c0_150, %c0_151, %c0_152, %c192_153], %116 {strides = array<i32>} : memref<2x8x8x576xbf16, #tpu.memory_space<vmem>>, vector<2x8x1x64xbf16>,
    %129 = vector.extract_strided_slice %114 {offsets = [0, 0, 0, 0], sizes = [2, 8, 7, 64], strides = [1, 1, 1, 1]} : vector<2x8x8x64xbf16> to vector<2x8x7x64xbf16>
    %c0_154 = arith.constant 0 : index
    %c0_155 = arith.constant 0 : index
    %c1_156 = arith.constant 1 : index
    %c192_157 = arith.constant 192 : index
    %130 = vector.load %arg16[%c0_154, %c0_155, %c1_156, %c192_157] : memref<2x8x8x576xbf16, #tpu.memory_space<vmem>>, vector<2x8x7x64xbf16>
    tpu.vector_store %arg16[%c0_154, %c0_155, %c1_156, %c192_157], %129 {strides = array<i32>} : memref<2x8x8x576xbf16, #tpu.memory_space<vmem>>, vector<2x8x7x64xbf16>,
    %c0_158 = arith.constant 0 : index
    %c0_159 = arith.constant 0 : index
    %c0_160 = arith.constant 0 : index
    %c256_161 = arith.constant 256 : index
    %131 = vector.load %arg16[%c0_158, %c0_159, %c0_160, %c256_161] : memref<2x8x8x576xbf16, #tpu.memory_space<vmem>>, vector<2x8x8x64xbf16>
    tpu.vector_store %arg16[%c0_158, %c0_159, %c0_160, %c256_161], %114 {strides = array<i32>} : memref<2x8x8x576xbf16, #tpu.memory_space<vmem>>, vector<2x8x8x64xbf16>,
    %c0_162 = arith.constant 0 : index
    %c0_163 = arith.constant 0 : index
    %c7_164 = arith.constant 7 : index
    %c320 = arith.constant 320 : index
    %132 = vector.load %arg16[%c0_162, %c0_163, %c7_164, %c320] : memref<2x8x8x576xbf16, #tpu.memory_space<vmem>>, vector<2x8x1x64xbf16>
    tpu.vector_store %arg16[%c0_162, %c0_163, %c7_164, %c320], %116 {strides = array<i32>} : memref<2x8x8x576xbf16, #tpu.memory_space<vmem>>, vector<2x8x1x64xbf16>,
    %133 = vector.extract_strided_slice %114 {offsets = [0, 0, 1, 0], sizes = [2, 8, 7, 64], strides = [1, 1, 1, 1]} : vector<2x8x8x64xbf16> to vector<2x8x7x64xbf16>
    %c0_165 = arith.constant 0 : index
    %c0_166 = arith.constant 0 : index
    %c0_167 = arith.constant 0 : index
    %c320_168 = arith.constant 320 : index
    %134 = vector.load %arg16[%c0_165, %c0_166, %c0_167, %c320_168] : memref<2x8x8x576xbf16, #tpu.memory_space<vmem>>, vector<2x8x7x64xbf16>
    tpu.vector_store %arg16[%c0_165, %c0_166, %c0_167, %c320_168], %133 {strides = array<i32>} : memref<2x8x8x576xbf16, #tpu.memory_space<vmem>>, vector<2x8x7x64xbf16>,
    %c0_169 = arith.constant 0 : index
    %c7_170 = arith.constant 7 : index
    %c0_171 = arith.constant 0 : index
    %c384 = arith.constant 384 : index
    %135 = vector.load %arg16[%c0_169, %c7_170, %c0_171, %c384] : memref<2x8x8x576xbf16, #tpu.memory_space<vmem>>, vector<2x1x8x64xbf16>
    tpu.vector_store %arg16[%c0_169, %c7_170, %c0_171, %c384], %115 {strides = array<i32>} : memref<2x8x8x576xbf16, #tpu.memory_space<vmem>>, vector<2x1x8x64xbf16>,
    %c0_172 = arith.constant 0 : index
    %c0_173 = arith.constant 0 : index
    %c0_174 = arith.constant 0 : index
    %c384_175 = arith.constant 384 : index
    %136 = vector.load %arg16[%c0_172, %c0_173, %c0_174, %c384_175] : memref<2x8x8x576xbf16, #tpu.memory_space<vmem>>, vector<2x8x1x64xbf16>
    tpu.vector_store %arg16[%c0_172, %c0_173, %c0_174, %c384_175], %116 {strides = array<i32>} : memref<2x8x8x576xbf16, #tpu.memory_space<vmem>>, vector<2x8x1x64xbf16>,
    %137 = vector.extract_strided_slice %114 {offsets = [0, 1, 0, 0], sizes = [2, 7, 7, 64], strides = [1, 1, 1, 1]} : vector<2x8x8x64xbf16> to vector<2x7x7x64xbf16>
    %c0_176 = arith.constant 0 : index
    %c0_177 = arith.constant 0 : index
    %c1_178 = arith.constant 1 : index
    %c384_179 = arith.constant 384 : index
    %138 = vector.load %arg16[%c0_176, %c0_177, %c1_178, %c384_179] : memref<2x8x8x576xbf16, #tpu.memory_space<vmem>>, vector<2x7x7x64xbf16>
    tpu.vector_store %arg16[%c0_176, %c0_177, %c1_178, %c384_179], %137 {strides = array<i32>} : memref<2x8x8x576xbf16, #tpu.memory_space<vmem>>, vector<2x7x7x64xbf16>,
    %c0_180 = arith.constant 0 : index
    %c7_181 = arith.constant 7 : index
    %c0_182 = arith.constant 0 : index
    %c448 = arith.constant 448 : index
    %139 = vector.load %arg16[%c0_180, %c7_181, %c0_182, %c448] : memref<2x8x8x576xbf16, #tpu.memory_space<vmem>>, vector<2x1x8x64xbf16>
    tpu.vector_store %arg16[%c0_180, %c7_181, %c0_182, %c448], %115 {strides = array<i32>} : memref<2x8x8x576xbf16, #tpu.memory_space<vmem>>, vector<2x1x8x64xbf16>,
    %140 = vector.extract_strided_slice %114 {offsets = [0, 1, 0, 0], sizes = [2, 7, 8, 64], strides = [1, 1, 1, 1]} : vector<2x8x8x64xbf16> to vector<2x7x8x64xbf16>
    %c0_183 = arith.constant 0 : index
    %c0_184 = arith.constant 0 : index
    %c0_185 = arith.constant 0 : index
    %c448_186 = arith.constant 448 : index
    %141 = vector.load %arg16[%c0_183, %c0_184, %c0_185, %c448_186] : memref<2x8x8x576xbf16, #tpu.memory_space<vmem>>, vector<2x7x8x64xbf16>
    tpu.vector_store %arg16[%c0_183, %c0_184, %c0_185, %c448_186], %140 {strides = array<i32>} : memref<2x8x8x576xbf16, #tpu.memory_space<vmem>>, vector<2x7x8x64xbf16>,
    %c0_187 = arith.constant 0 : index
    %c7_188 = arith.constant 7 : index
    %c0_189 = arith.constant 0 : index
    %c512 = arith.constant 512 : index
    %142 = vector.load %arg16[%c0_187, %c7_188, %c0_189, %c512] : memref<2x8x8x576xbf16, #tpu.memory_space<vmem>>, vector<2x1x8x64xbf16>
    tpu.vector_store %arg16[%c0_187, %c7_188, %c0_189, %c512], %115 {strides = array<i32>} : memref<2x8x8x576xbf16, #tpu.memory_space<vmem>>, vector<2x1x8x64xbf16>,
    %c0_190 = arith.constant 0 : index
    %c0_191 = arith.constant 0 : index
    %c7_192 = arith.constant 7 : index
    %c512_193 = arith.constant 512 : index
    %143 = vector.load %arg16[%c0_190, %c0_191, %c7_192, %c512_193] : memref<2x8x8x576xbf16, #tpu.memory_space<vmem>>, vector<2x8x1x64xbf16>
    tpu.vector_store %arg16[%c0_190, %c0_191, %c7_192, %c512_193], %116 {strides = array<i32>} : memref<2x8x8x576xbf16, #tpu.memory_space<vmem>>, vector<2x8x1x64xbf16>,
    %144 = vector.extract_strided_slice %114 {offsets = [0, 1, 1, 0], sizes = [2, 7, 7, 64], strides = [1, 1, 1, 1]} : vector<2x8x8x64xbf16> to vector<2x7x7x64xbf16>
    %c0_194 = arith.constant 0 : index
    %c0_195 = arith.constant 0 : index
    %c0_196 = arith.constant 0 : index
    %c512_197 = arith.constant 512 : index
    %145 = vector.load %arg16[%c0_194, %c0_195, %c0_196, %c512_197] : memref<2x8x8x576xbf16, #tpu.memory_space<vmem>>, vector<2x7x7x64xbf16>
    tpu.vector_store %arg16[%c0_194, %c0_195, %c0_196, %c512_197], %144 {strides = array<i32>} : memref<2x8x8x576xbf16, #tpu.memory_space<vmem>>, vector<2x7x7x64xbf16>,
    %c0_198 = arith.constant 0 : index
    %c0_199 = arith.constant 0 : index
    %c0_200 = arith.constant 0 : index
    %c0_201 = arith.constant 0 : index
    %146 = vector.load %arg16[%c0_198, %c0_199, %c0_200, %c0_201] : memref<2x8x8x576xbf16, #tpu.memory_space<vmem>>, vector<2x8x8x576xbf16>
    %147 = vector.shape_cast %146 : vector<2x8x8x576xbf16> to vector<128x576xbf16>
    %c0_202 = arith.constant 0 : index
    %c0_203 = arith.constant 0 : index
    %148 = vector.load %arg11[%c0_202, %c0_203] : memref<576x64xbf16, #tpu.memory_space<vmem>>, vector<576x64xbf16>
    %cst_204 = arith.constant dense<0.000000e+00> : vector<128x64xf32>
    %149 = tpu.matmul %147, %148, %cst_204 {dimension_numbers = #tpu.dot_dimension_numbers<[1], [0], [0], [1], [0, 0, 1, 1], [], []>} : vector<128x576xbf16>, vector<576x64xbf16>, vector<128x64xf32> -> vector<128x64xf32>
    %150 = vector.shape_cast %149 : vector<128x64xf32> to vector<2x64x64xf32>
    %c0_205 = arith.constant 0 : index
    %c0_206 = arith.constant 0 : index
    %151 = vector.load %arg12[%c0_205, %c0_206] : memref<1x64xf32, #tpu.memory_space<vmem>>, vector<1x64xf32>
    %152 = vector.shape_cast %151 : vector<1x64xf32> to vector<1x1x64xf32>
    %153 = vector.broadcast %152 : vector<1x1x64xf32> to vector<2x64x64xf32>
    %154 = arith.addf %150, %153 : vector<2x64x64xf32>
    %155 = vector.shape_cast %1 : vector<2x64x32xf32> to vector<128x32xf32>
    %156 = arith.truncf %155 : vector<128x32xf32> to vector<128x32xbf16>
    %c0_207 = arith.constant 0 : index
    %c0_208 = arith.constant 0 : index
    %157 = vector.load %arg13[%c0_207, %c0_208] : memref<32x64xbf16, #tpu.memory_space<vmem>>, vector<32x64xbf16>
    %cst_209 = arith.constant dense<0.000000e+00> : vector<128x64xf32>
    %158 = tpu.matmul %156, %157, %cst_209 {dimension_numbers = #tpu.dot_dimension_numbers<[1], [0], [0], [1], [0, 0, 1, 1], [], []>} : vector<128x32xbf16>, vector<32x64xbf16>, vector<128x64xf32> -> vector<128x64xf32>
    %159 = vector.shape_cast %158 : vector<128x64xf32> to vector<2x64x64xf32>
    %c0_210 = arith.constant 0 : index
    %c0_211 = arith.constant 0 : index
    %160 = vector.load %arg14[%c0_210, %c0_211] : memref<1x64xf32, #tpu.memory_space<vmem>>, vector<1x64xf32>
    %161 = vector.shape_cast %160 : vector<1x64xf32> to vector<1x1x64xf32>
    %162 = vector.broadcast %161 : vector<1x1x64xf32> to vector<2x64x64xf32>
    %163 = arith.addf %159, %162 : vector<2x64x64xf32>
    %164 = arith.addf %163, %154 : vector<2x64x64xf32>
    %165 = vector.shape_cast %164 : vector<2x64x64xf32> to vector<2x8x8x64xf32>
    %c0_212 = arith.constant 0 : index
    %c0_213 = arith.constant 0 : index
    %c0_214 = arith.constant 0 : index
    %c0_215 = arith.constant 0 : index
    %166 = vector.load %arg15[%c0_212, %c0_213, %c0_214, %c0_215] : memref<2x8x8x64xf32, #tpu.memory_space<vmem>>, vector<2x8x8x64xf32>
    tpu.vector_store %arg15[%c0_212, %c0_213, %c0_214, %c0_215], %165 {strides = array<i32>} : memref<2x8x8x64xf32, #tpu.memory_space<vmem>>, vector<2x8x8x64xf32>,
    return
  }
  func.func @transform_0(%arg0: i32) -> (i32, i32, i32, i32) {
    %c0_i32 = arith.constant 0 : i32
    %c0_i32_0 = arith.constant 0 : i32
    %c0_i32_1 = arith.constant 0 : i32
    %c0_i32_2 = arith.constant 0 : i32
    return %arg0, %c0_i32, %c0_i32_0, %c0_i32_1 : i32, i32, i32, i32
  }
  func.func @transform_1(%arg0: i32) -> (i32, i32, i32) {
    %c0_i32 = arith.constant 0 : i32
    %c0_i32_0 = arith.constant 0 : i32
    %c0_i32_1 = arith.constant 0 : i32
    return %arg0, %c0_i32, %c0_i32_0 : i32, i32, i32
  }
  func.func @transform_2(%arg0: i32) -> (i32, i32) {
    %c0_i32 = arith.constant 0 : i32
    %c0_i32_0 = arith.constant 0 : i32
    %c0_i32_1 = arith.constant 0 : i32
    return %c0_i32, %c0_i32_0 : i32, i32
  }
  func.func @transform_3(%arg0: i32) -> (i32, i32) {
    %c0_i32 = arith.constant 0 : i32
    %c0_i32_0 = arith.constant 0 : i32
    %c0_i32_1 = arith.constant 0 : i32
    return %c0_i32, %c0_i32_0 : i32, i32
  }
  func.func @transform_4(%arg0: i32) -> (i32, i32) {
    %c0_i32 = arith.constant 0 : i32
    %c0_i32_0 = arith.constant 0 : i32
    %c0_i32_1 = arith.constant 0 : i32
    return %c0_i32, %c0_i32_0 : i32, i32
  }
  func.func @transform_5(%arg0: i32) -> (i32, i32) {
    %c0_i32 = arith.constant 0 : i32
    %c0_i32_0 = arith.constant 0 : i32
    %c0_i32_1 = arith.constant 0 : i32
    return %c0_i32, %c0_i32_0 : i32, i32
  }
  func.func @transform_6(%arg0: i32) -> (i32, i32) {
    %c0_i32 = arith.constant 0 : i32
    %c0_i32_0 = arith.constant 0 : i32
    %c0_i32_1 = arith.constant 0 : i32
    return %c0_i32, %c0_i32_0 : i32, i32
  }
  func.func @transform_7(%arg0: i32) -> (i32, i32) {
    %c0_i32 = arith.constant 0 : i32
    %c0_i32_0 = arith.constant 0 : i32
    %c0_i32_1 = arith.constant 0 : i32
    return %c0_i32, %c0_i32_0 : i32, i32
  }
  func.func @transform_8(%arg0: i32) -> (i32, i32) {
    %c0_i32 = arith.constant 0 : i32
    %c0_i32_0 = arith.constant 0 : i32
    %c0_i32_1 = arith.constant 0 : i32
    return %c0_i32, %c0_i32_0 : i32, i32
  }
  func.func @transform_9(%arg0: i32) -> (i32, i32) {
    %c0_i32 = arith.constant 0 : i32
    %c0_i32_0 = arith.constant 0 : i32
    %c0_i32_1 = arith.constant 0 : i32
    return %c0_i32, %c0_i32_0 : i32, i32
  }
  func.func @transform_10(%arg0: i32) -> (i32, i32) {
    %c0_i32 = arith.constant 0 : i32
    %c0_i32_0 = arith.constant 0 : i32
    %c0_i32_1 = arith.constant 0 : i32
    return %c0_i32, %c0_i32_0 : i32, i32
  }
  func.func @transform_11(%arg0: i32) -> (i32, i32) {
    %c0_i32 = arith.constant 0 : i32
    %c0_i32_0 = arith.constant 0 : i32
    %c0_i32_1 = arith.constant 0 : i32
    return %c0_i32, %c0_i32_0 : i32, i32
  }
  func.func @transform_12(%arg0: i32) -> (i32, i32) {
    %c0_i32 = arith.constant 0 : i32
    %c0_i32_0 = arith.constant 0 : i32
    %c0_i32_1 = arith.constant 0 : i32
    return %c0_i32, %c0_i32_0 : i32, i32
  }
  func.func @transform_13(%arg0: i32) -> (i32, i32) {
    %c0_i32 = arith.constant 0 : i32
    %c0_i32_0 = arith.constant 0 : i32
    %c0_i32_1 = arith.constant 0 : i32
    return %c0_i32, %c0_i32_0 : i32, i32
  }
  func.func @transform_14(%arg0: i32) -> (i32, i32, i32, i32) {
    %c0_i32 = arith.constant 0 : i32
    %c0_i32_0 = arith.constant 0 : i32
    %c0_i32_1 = arith.constant 0 : i32
    %c0_i32_2 = arith.constant 0 : i32
    return %arg0, %c0_i32, %c0_i32_0, %c0_i32_1 : i32, i32, i32, i32
  }
}

</mosaic_0001>

<bundles_post_ra>
// kernel: tpu_custom_call.1
= control target key start
LH: loop header
LB: loop body
LE: loop exit
PB: predicated region body
PF: predicated region fallthrough
CT: control target
= control target key end

     0   :  { %v9006_v3 = vmov 0.0|0.0   ;;  %vm71_vm0 = vcmask 261120   ;;  %vm9014_vm1 = vmmov 0   ;;  %v9005_v9 = vmov 0.0   ;;  %s8990_s0 = inlined_call_operand.vmem [shape: f32[2,8,8,32], index: 0, kind: input, shape index: {}]   ;;  %s8991_s1 = inlined_call_operand.vmem [shape: f32[2,1,64], index: 1, kind: input, shape index: {}]   ;;  %s8992_s2 = inlined_call_operand.vmem [shape: f32[1,32], index: 2, kind: input, shape index: {}]   ;;  %s8993_s3 = inlined_call_operand.vmem [shape: f32[1,32], index: 3, kind: input, shape index: {}]   ;;  %s8994_s4 = inlined_call_operand.vmem [shape: f32[32,32], index: 4, kind: input, shape index: {}]   ;;  %s8995_s5 = inlined_call_operand.vmem [shape: bf16[288,64], index: 5, kind: input, shape index: {}]   ;;  %s8996_s6 = inlined_call_operand.vmem [shape: f32[1,64], index: 6, kind: input, shape index: {}]   ;;  %s8997_s7 = inlined_call_operand.vmem [shape: f32[1,64], index: 7, kind: input, shape index: {}]   ;;  %s8998_s8 = inlined_call_operand.vmem [shape: f32[1,64], index: 8, kind: input, shape index: {}]   ;;  %s8999_s9 = inlined_call_operand.vmem [shape: f32[64,64], index: 9, kind: input, shape index: {}]   ;;  %s9000_s10 = inlined_call_operand.vmem [shape: bf16[576,64], index: 10, kind: input, shape index: {}]   ;;  %s9001_s11 = inlined_call_operand.vmem [shape: f32[1,64], index: 11, kind: input, shape index: {}]   ;;  %s9002_s12 = inlined_call_operand.vmem [shape: bf16[32,64], index: 12, kind: input, shape index: {}]   ;;  %s9003_s13 = inlined_call_operand.vmem [shape: f32[1,64], index: 13, kind: input, shape index: {}]   ;;  %s9004_s14 = inlined_call_operand.hbm [shape: f32[2,8,8,64], index: 14, kind: output, shape index: {}]  }
   0x1   :  { %v67_v0 = vld [vmem:[%s8994_s4] sm:$0xff]  ;;  %v68_v1 = vld [vmem:[%s8994_s4 + $0x8] sm:$0xff]  ;;  %v69_v2 = vld [vmem:[%s8994_s4 + $0x10] sm:$0xff]  ;;  %5580 = vmatprep.subr.bf16.mxu0 %v9006_v3  ;;  %5586 = vmatprep.subr.bf16.mxu1 %v9006_v3  ;;  %vm9015_vm2 = vcmask 1041409  }
   0x2   :  { %v5581_v4 = vpack.c.bf16 %v68_v1, %v67_v0  ;;  %v70_v5 = vld [vmem:[%s8994_s4 + $0x18] sm:$0xff]  ;;  %v6102_v6 = vld [vmem:[%s8990_s0] sm:$0xff]  ;;  %v6107_v7 = vld [vmem:[%s8990_s0 + $0x8] sm:$0xff]  ;;  %5464 = vmatprep.mubr.msk.f32.mxu0 %vm9014_vm1, %v9005_v9  ;;  %5475 = vmatprep.mubr.msk.f32.mxu1 %vm9014_vm1, %v9005_v9 }
   0x3   :  { %v5584_v8 = vpack.c.bf16 %v70_v5, %v69_v2  ;;  %v6114_v10 = vld [vmem:[%s8990_s0 + $0x10] sm:$0xff]  ;;  %v6119_v11 = vld [vmem:[%s8990_s0 + $0x18] sm:$0xff]  ;;  %v6124_v12 = vld [vmem:[%s8990_s0 + $0x20] sm:$0xff]  ;;  %v72_v13 = vsel %vm71_vm0, %v6102_v6, 0.0  ;;  %v73_v14 = vsel %vm71_vm0, %v6107_v7, 0.0  ;;  %v114_v45 = vmul.f32 %v6102_v6, %v6102_v6 }
   0x4   :  { %5582 = vmatpush3.bf16.msra.mxu0 %v5581_v4  ;;  %5588 = vmatpush3.bf16.msra.mxu1 %v5581_v4  ;;  %v6135_v15 = vld [vmem:[%s8990_s0 + $0x28] sm:$0xff]  ;;  %v6140_v16 = vld [vmem:[%s8990_s0 + $0x30] sm:$0xff]  ;;  %v6145_v17 = vld [vmem:[%s8990_s0 + $0x38] sm:$0xff]  ;;  %v74_v18 = vadd.f32 %v73_v14, %v72_v13  ;;  %v75_v19 = vsel %vm71_vm0, %v6114_v10, 0.0  ;;  %v77_v20 = vsel %vm71_vm0, %v6119_v11, 0.0  ;;  %v79_v21 = vsel %vm71_vm0, %v6124_v12, 0.0 }
   0x5   :  { %5583 = vmatprep.subr.bf16.mxu0 %v9006_v3  ;;  %5589 = vmatprep.subr.bf16.mxu1 %v9006_v3  ;;  %v6158_v22 = vld [vmem:[%s8990_s0 + $0x40] sm:$0xff]  ;;  %v6163_v23 = vld [vmem:[%s8990_s0 + $0x48] sm:$0xff]  ;;  %v6168_v24 = vld [vmem:[%s8990_s0 + $0x50] sm:$0xff]  ;;  %v81_v25 = vsel %vm71_vm0, %v6135_v15, 0.0  ;;  %v83_v26 = vsel %vm71_vm0, %v6140_v16, 0.0  ;;  %v85_v27 = vsel %vm71_vm0, %v6145_v17, 0.0  ;;  %v115_v46 = vmul.f32 %v6107_v7, %v6107_v7 }
   0x6   :  { %v6179_v28 = vld [vmem:[%s8990_s0 + $0x58] sm:$0xff]  ;;  %v6184_v29 = vld [vmem:[%s8990_s0 + $0x60] sm:$0xff]  ;;  %v6189_v30 = vld [vmem:[%s8990_s0 + $0x68] sm:$0xff]  ;;  %v76_v31 = vadd.f32 %v75_v19, %v74_v18  ;;  %v93_v32 = vsel %vm71_vm0, %v6158_v22, 0.0  ;;  %v94_v33 = vsel %vm71_vm0, %v6163_v23, 0.0  ;;  %v96_v34 = vsel %vm71_vm0, %v6168_v24, 0.0 }
   0x7   :  { %v6200_v35 = vld [vmem:[%s8990_s0 + $0x70] sm:$0xff]  ;;  %v6205_v36 = vld [vmem:[%s8990_s0 + $0x78] sm:$0xff]  ;;  %v95_v37 = vadd.f32 %v94_v33, %v93_v32  ;;  %v98_v38 = vsel %vm71_vm0, %v6179_v28, 0.0  ;;  %v100_v39 = vsel %vm71_vm0, %v6184_v29, 0.0  ;;  %v102_v40 = vsel %vm71_vm0, %v6189_v30, 0.0 }
   0x8   :  { %5585 = vmatpush3.bf16.msra.mxu0 %v5584_v8  ;;  %5591 = vmatpush3.bf16.msra.mxu1 %v5584_v8  ;;  %v78_v41 = vadd.f32 %v77_v20, %v76_v31  ;;  %v104_v42 = vsel %vm71_vm0, %v6200_v35, 0.0  ;;  %v106_v43 = vsel %vm71_vm0, %v6205_v36, 0.0  ;;  %v116_v48 = vmul.f32 %v6114_v10, %v6114_v10 }
   0x9   :  { %v97_v44 = vadd.f32 %v96_v34, %v95_v37  ;;  %5592 = vmatprep.subr.bf16.mxu1 %v9006_v3  ;;  %v117_v50 = vmul.f32 %v6119_v11, %v6119_v11  ;;  %v118_v51 = vmul.f32 %v6124_v12, %v6124_v12  ;;  %v119_v52 = vmul.f32 %v6135_v15, %v6135_v15 }
   0xa   :  { %v80_v47 = vadd.f32 %v79_v21, %v78_v41  ;;  %v120_v54 = vmul.f32 %v6140_v16, %v6140_v16  ;;  %v122_v55 = vmul.f32 %v6158_v22, %v6158_v22  ;;  %v123_v56 = vmul.f32 %v6163_v23, %v6163_v23 }
   0xb   :  { %v99_v49 = vadd.f32 %v98_v38, %v97_v44  ;;  %v124_v58 = vmul.f32 %v6168_v24, %v6168_v24  ;;  %v130_v59 = vsel %vm71_vm0, %v114_v45, 0.0  ;;  %v131_v60 = vsel %vm71_vm0, %v115_v46, 0.0 }
   0xc   :  { %v82_v53 = vadd.f32 %v81_v25, %v80_v47  ;;  %v121_v62 = vmul.f32 %v6145_v17, %v6145_v17  ;;  %v132_v63 = vadd.f32 %v131_v60, %v130_v59  ;;  %v133_v0 = vsel %vm71_vm0, %v116_v48, 0.0 }
   0xd   :  { %v101_v57 = vadd.f32 %v100_v39, %v99_v49  ;;  %v125_v2 = vmul.f32 %v6179_v28, %v6179_v28  ;;  %v126_v4 = vmul.f32 %v6184_v29, %v6184_v29  ;;  %v135_v5 = vsel %vm71_vm0, %v117_v50, 0.0 }
   0xe   :  { %v84_v61 = vadd.f32 %v83_v26, %v82_v53  ;;  %v127_v13 = vmul.f32 %v6189_v30, %v6189_v30  ;;  %v134_v14 = vadd.f32 %v133_v0, %v132_v63  ;;  %v151_v18 = vsel %vm71_vm0, %v122_v55, 0.0 }
   0xf   :  { %v103_v1 = vadd.f32 %v102_v40, %v101_v57  ;;  %v137_v20 = vsel %vm71_vm0, %v118_v51, 0.0  ;;  %v152_v21 = vsel %vm71_vm0, %v123_v56, 0.0  ;;  %v154_v25 = vsel %vm71_vm0, %v124_v58, 0.0 }
  0x10   :  { %v86_v8 = vadd.f32 %v85_v27, %v84_v61  ;;  %v136_v31 = vadd.f32 %v135_v5, %v134_v14  ;;  %v139_v32 = vsel %vm71_vm0, %v119_v52, 0.0  ;;  %v153_v33 = vadd.f32 %v152_v21, %v151_v18 }
  0x11   :  { %v105_v19 = vadd.f32 %v104_v42, %v103_v1  ;;  %v141_v27 = vsel %vm71_vm0, %v120_v54, 0.0  ;;  %v143_v37 = vsel %vm71_vm0, %v121_v62, 0.0  ;;  %v156_v38 = vsel %vm71_vm0, %v125_v2, 0.0 }
  0x12   :  { %v87_v26 = vrot.slane %v86_v8, 4  ;;  %v138_v40 = vadd.f32 %v137_v20, %v136_v31  ;;  %v155_v41 = vadd.f32 %v154_v25, %v153_v33  ;;  %v128_v44 = vmul.f32 %v6200_v35, %v6200_v35 }
  0x13   :  { %v107_v34 = vadd.f32 %v106_v43, %v105_v19  ;;  %v129_v45 = vmul.f32 %v6205_v36, %v6205_v36  ;;  %v158_v46 = vsel %vm71_vm0, %v126_v4, 0.0  ;;  %v160_v49 = vsel %vm71_vm0, %v127_v13, 0.0 }
  0x14   :  { %v88_v39 = vadd.f32 %v87_v26, %v86_v8  ;;  %v140_v43 = vadd.f32 %v139_v32, %v138_v40  ;;  %v157_v48 = vadd.f32 %v156_v38, %v155_v41  ;;  %v162_v55 = vsel %vm71_vm0, %v128_v44, 0.0 }
  0x15   :  { %v108_v42 = vrot.slane %v107_v34, 4  ;;  %v164_v59 = vsel %vm71_vm0, %v129_v45, 0.0 }
  0x16   :  { %v89_v47 = vrot.slane %v88_v39, 2  ;;  %v142_v52 = vadd.f32 %v141_v27, %v140_v43  ;;  %v159_v53 = vadd.f32 %v158_v46, %v157_v48 }
  0x17   :  { %v109_v50 = vadd.f32 %v108_v42, %v107_v34 }
  0x18   :  { %v90_v51 = vadd.f32 %v89_v47, %v88_v39  ;;  %v144_v57 = vadd.f32 %v143_v37, %v142_v52  ;;  %v161_v58 = vadd.f32 %v160_v49, %v159_v53 }
  0x19   :  { %v110_v54 = vrot.slane %v109_v50, 2 }
  0x1a   :  { %v91_v56 = vrot.slane %v90_v51, 1  ;;  %v145_v61 = vrot.slane %v144_v57, 4  ;;  %v163_v62 = vadd.f32 %v162_v55, %v161_v58 }
  0x1b   :  { %v111_v60 = vadd.f32 %v110_v54, %v109_v50 }
  0x1c   :  { %v92_v63 = vadd.f32 %v91_v56, %v90_v51  ;;  %v146_v1 = vadd.f32 %v145_v61, %v144_v57  ;;  %v165_v2 = vadd.f32 %v164_v59, %v163_v62 }
  0x1d   :  { %v112_v0 = vrot.slane %v111_v60, 1 }
  0x1e   :  { %v147_v5 = vrot.slane %v146_v1, 2  ;;  %v166_v8 = vrot.slane %v165_v2, 4 }
  0x1f   :  { %v113_v4 = vadd.f32 %v112_v0, %v111_v60 }
  0x20   :  { %v148_v14 = vadd.f32 %v147_v5, %v146_v1  ;;  %v167_v18 = vadd.f32 %v166_v8, %v165_v2 }
  0x21   :  { %v175_v13 = vsel %vm9015_vm2, %v113_v4, %v92_v63 }
  0x22   :  { %5465 = vmatmul.mubr.msk.f32.vlgmr.msra.gmra.mrb[0].mxu0 %vm71_vm0, %v175_v13  ;;  %v149_v19 = vrot.slane %v148_v14, 1  ;;  %v168_v20 = vrot.slane %v167_v18, 2 }
  0x24   :  { %v169_v21 = vadd.f32 %v168_v20, %v167_v18  ;;  %v150_v25 = vadd.f32 %v149_v19, %v148_v14 }
  0x26   :  { %v170_v26 = vrot.slane %v169_v21, 1 }
  0x28   :  { %v171_v31 = vadd.f32 %v170_v26, %v169_v21 }
  0x2a   :  { %v275_v32 = vsel %vm9015_vm2, %v171_v31, %v150_v25 }
  0x2b   :  { %5476 = vmatmul.mubr.msk.f32.vlgmr.msra.gmra.mrb[0].mxu1 %vm71_vm0, %v275_v32 }
  0x2c   :  { %5514 = vmatprep.mubr.msk.f32.mxu1 %vm9014_vm1, %v9005_v9 }
  0x2d   :  { %19 = vsyncpa [#allocation4], 0  ;;  %vm640_vm3 = vcmask 253952   ;;  %vm641_vm4 = vsmask.f32 256  ;;  %vm1638_vm6 = vcmask 257027  }
  0x2e   :  { %vm6273_vm5 = vmand %vm640_vm3, %vm641_vm4  ;;  %v649_v34 = vld [vmem:[#allocation2 + $0x28] sm:$0x1]  ;;  %v646_v27 = vld [vmem:[#allocation2 + $0x14] sm:$0x1]  ;;  %vm912_vm7 = vsmask.f32 7950 }
  0x2f   :  { %v650_v37 = vsel %vm6273_vm5, 0, %v649_v34  ;;  %v647_v38 = vsel %vm6273_vm5, 0, %v646_v27  ;;  %v652_v39 = vld [vmem:[#allocation2 + $0x3c] sm:$0x1]  ;;  %v658_v40 = vld [vmem:[#allocation2 + $0x64] sm:$0x1]  ;;  %vm6292_vm8 = vmand %vm1638_vm6, %vm912_vm7 }
  0x30   :  { %651 = vst [vmem:[#allocation2 + $0x28] sm:$0x1] %v650_v37  ;;  %648 = vst [vmem:[#allocation2 + $0x14] sm:$0x1] %v647_v38  ;;  %v653_v41 = vsel %vm6273_vm5, 0, %v652_v39  ;;  %v659_v42 = vsel %vm6273_vm5, 0, %v658_v40 }
  0x31   :  { %v655_v44 = vld [vmem:[#allocation2 + $0x50] sm:$0x1]  ;;  %v664_v45 = vld [vmem:[#allocation2 + $0x8c] sm:$0x1]  ;;  %654 = vst [vmem:[#allocation2 + $0x3c] sm:$0x1] %v653_v41 }
  0x32   :  { %660 = vst [vmem:[#allocation2 + $0x64] sm:$0x1] %v659_v42  ;;  %v656_v46 = vsel %vm6273_vm5, 0, %v655_v44  ;;  %v665_v47 = vsel %vm6273_vm5, 0, %v664_v45  ;;  %v661_v43 = vld [vmem:[#allocation2 + $0x78] sm:$0x1] }
  0x33   :  { %657 = vst [vmem:[#allocation2 + $0x50] sm:$0x1] %v656_v46  ;;  %666 = vst [vmem:[#allocation2 + $0x8c] sm:$0x1] %v665_v47  ;;  %v662_v48 = vsel %vm6273_vm5, 0, %v661_v43  ;;  %v252_v43 = vlaneseq  ;;  %vm637_vm9 = vcmask 257024  }
  0x34   :  { %v1646_v49 = vld [vmem:[#allocation2 + $0x30] sm:$0x8]  ;;  %663 = vst [vmem:[#allocation2 + $0x78] sm:$0x1] %v662_v48  ;;  %v1640_v51 = vld [vmem:[#allocation2 + $0x8] sm:$0x8] }
  0x35   :  { %v1643_v52 = vld [vmem:[#allocation2 + $0x1c] sm:$0x8]  ;;  %v1647_v53 = vsel %vm6292_vm8, 0, %v1646_v49  ;;  %v1641_v54 = vsel %vm6292_vm8, 0, %v1640_v51  ;;  %v1649_v56 = vld [vmem:[#allocation2 + $0x44] sm:$0x8] }
  0x36   :  { %v1644_v55 = vsel %vm6292_vm8, 0, %v1643_v52  ;;  %1648 = vst [vmem:[#allocation2 + $0x30] sm:$0x8] %v1647_v53  ;;  %1642 = vst [vmem:[#allocation2 + $0x8] sm:$0x8] %v1641_v54  ;;  %v1650_v57 = vsel %vm6292_vm8, 0, %v1649_v56 }
  0x37   :  { %1645 = vst [vmem:[#allocation2 + $0x1c] sm:$0x8] %v1644_v55  ;;  %v1652_v58 = vld [vmem:[#allocation2 + $0x58] sm:$0x8]  ;;  %v1655_v59 = vld [vmem:[#allocation2 + $0x6c] sm:$0x8] }
  0x38   :  { %1651 = vst [vmem:[#allocation2 + $0x44] sm:$0x8] %v1650_v57  ;;  %v1653_v60 = vsel %vm6292_vm8, 0, %v1652_v58  ;;  %v1656_v61 = vsel %vm6292_vm8, 0, %v1655_v59  ;;  %v676_v62 = vld [vmem:[#allocation2 + $0xdc] sm:$0x1] }
  0x39   :  { %1654 = vst [vmem:[#allocation2 + $0x58] sm:$0x8] %v1653_v60  ;;  %1657 = vst [vmem:[#allocation2 + $0x6c] sm:$0x8] %v1656_v61  ;;  %v677_v63 = vsel %vm6273_vm5, 0, %v676_v62  ;;  %v253_v49 = vshrl.u32 %v252_v43, 7 }
  0x3a   :  { %678 = vst [vmem:[#allocation2 + $0xdc] sm:$0x1] %v677_v63  ;;  %v1658_v0 = vld [vmem:[#allocation2 + $0x80] sm:$0x8]  ;;  %v673_v1 = vld [vmem:[#allocation2 + $0xc8] sm:$0x1] }
  0x3b   :  { %v1659_v2 = vsel %vm6292_vm8, 0, %v1658_v0  ;;  %v674_v4 = vsel %vm6273_vm5, 0, %v673_v1  ;;  %v679_v5 = vld [vmem:[#allocation2 + $0xf0] sm:$0x1]  ;;  %v670_v8 = vld [vmem:[#allocation2 + $0xb4] sm:$0x1] }
  0x3c   :  { %1660 = vst [vmem:[#allocation2 + $0x80] sm:$0x8] %v1659_v2  ;;  %675 = vst [vmem:[#allocation2 + $0xc8] sm:$0x1] %v674_v4  ;;  %v680_v13 = vsel %vm6273_vm5, 0, %v679_v5  ;;  %v671_v14 = vsel %vm6273_vm5, 0, %v670_v8 }
  0x3d   :  { %v682_v18 = vld [vmem:[#allocation2 + $0x104] sm:$0x1]  ;;  %681 = vst [vmem:[#allocation2 + $0xf0] sm:$0x1] %v680_v13  ;;  %672 = vst [vmem:[#allocation2 + $0xb4] sm:$0x1] %v671_v14 }
  0x3e   :  { %v683_v19 = vsel %vm6273_vm5, 0, %v682_v18  ;;  %v1664_v20 = vld [vmem:[#allocation2 + $0xa8] sm:$0x8]  ;;  %v1670_v21 = vld [vmem:[#allocation2 + $0xd0] sm:$0x8]  ;;  %v9010_v0 = vmov 0  }
  0x3f   :  { %684 = vst [vmem:[#allocation2 + $0x104] sm:$0x1] %v683_v19  ;;  %v1665_v25 = vsel %vm6292_vm8, 0, %v1664_v20  ;;  %v1671_v26 = vsel %vm6292_vm8, 0, %v1670_v21  ;;  %v1667_v31 = vld [vmem:[#allocation2 + $0xbc] sm:$0x8] }
  0x40   :  { %v1676_v32 = vld [vmem:[#allocation2 + $0xf8] sm:$0x8]  ;;  %1666 = vst [vmem:[#allocation2 + $0xa8] sm:$0x8] %v1665_v25  ;;  %1672 = vst [vmem:[#allocation2 + $0xd0] sm:$0x8] %v1671_v26 }
  0x41   :  { %v1668_v34 = vsel %vm6292_vm8, 0, %v1667_v31  ;;  %v1677_v27 = vsel %vm6292_vm8, 0, %v1676_v32  ;;  %v1673_v37 = vld [vmem:[#allocation2 + $0xe4] sm:$0x8]  ;;  %v1679_v38 = vld [vmem:[#allocation2 + $0x10c] sm:$0x8] }
  0x42   :  { %1669 = vst [vmem:[#allocation2 + $0xbc] sm:$0x8] %v1668_v34  ;;  %1678 = vst [vmem:[#allocation2 + $0xf8] sm:$0x8] %v1677_v27  ;;  %v1674_v39 = vsel %vm6292_vm8, 0, %v1673_v37  ;;  %v1680_v40 = vsel %vm6292_vm8, 0, %v1679_v38 }
  0x43   :  { %v688_v41 = vld [vmem:[#allocation2 + $0x12c] sm:$0x1]  ;;  %v685_v42 = vld [vmem:[#allocation2 + $0x118] sm:$0x1]  ;;  %1675 = vst [vmem:[#allocation2 + $0xe4] sm:$0x8] %v1674_v39 }
  0x44   :  { %1681 = vst [vmem:[#allocation2 + $0x10c] sm:$0x8] %v1680_v40  ;;  %v689_v44 = vsel %vm6273_vm5, 0, %v688_v41  ;;  %v686_v45 = vsel %vm6273_vm5, 0, %v685_v42  ;;  %v6002_v46 = vmov 1966171168  }
  0x45   :  { %690 = vst [vmem:[#allocation2 + $0x12c] sm:$0x1] %v689_v44  ;;  %687 = vst [vmem:[#allocation2 + $0x118] sm:$0x1] %v686_v45  ;;  %v250_v47 = vunpack.c.l.s4 %v6002_v46  ;;  %v1682_v58 = vld [vmem:[#allocation2 + $0x120] sm:$0x8] }
  0x46   :  { %v1683_v60 = vsel %vm6292_vm8, 0, %v1682_v58  ;;  %638 = vst.msk [vmem:[#allocation2] sm:$0xf] %vm637_vm9, %v9010_v0  ;;  %639 = vst.msk [vmem:[#allocation2 + $0xa0] sm:$0xf] %vm637_vm9, %v9010_v0  ;;  %v6358_v32 = vsub.s32 0, %v253_v49 }
  0x47   :  { %v251_v48 = vunpack.c.0.s8 %v250_v47  ;;  %1684 = vst [vmem:[#allocation2 + $0x120] sm:$0x8] %v1683_v60  ;;  %1636 = vst.msk [vmem:[#allocation2 + $0x94] sm:$0xf] %vm637_vm9, %v9010_v0  ;;  %v65_v27 = vld [vmem:[%s8992_s2] sm:$0x1] }
  0x48   :  { %1637 = vst.msk [vmem:[#allocation2 + $0x134] sm:$0xf] %vm637_vm9, %v9010_v0  ;;  %9021 = vst [vmem:[#allocation6_spill] sm:$0xff] %v6358_v32  ;;  %vm805_vm10 = vsmask.f32 7938  ;;  %s6005_s22 = smov 96  }
  0x49   :  { %v6336_v51 = vsub.s32 %v251_v48, %v253_v49  ;;  %vm6502_vm11 = vmand %vm637_vm9, %vm805_vm10  ;;  %vm9016_vm12 = vsmask.f32 3328  ;;  %vm1283_vm14 = vcmask 519427   ;;  %vm849_vm3 = vcmask 519424   ;;  %s6006_s23 = smov 64  }
  0x4a   :  { %vm6639_vm13 = vmand %vm637_vm9, %vm9016_vm12  ;;  %v1733_v9 = vld [vmem:[#allocation2 + $0xe4] sm:$0xf]  ;;  %vm908_vm6 = vcmask 781824  }
  0x4b   :  { %vm6804_vm15 = vmand %vm1283_vm14, %vm912_vm7  ;;  %vm1105_vm14 = vcmask 1041152  }
  0x4c   :  { %vm6874_vm1 = vmand %vm1105_vm14, %vm641_vm4 }
  0x4d   :  { %vm7230_vm14 = vmand %vm908_vm6, %vm805_vm10 }
  0x4e   :  { %v1661_v18 = vld [vmem:[#allocation2 + $0x94] sm:$0x8] }
  0x4f   :  { %v1685_v19 = vld [vmem:[#allocation2 + $0x134] sm:$0x8]  ;;  %v1662_v25 = vsel %vm6292_vm8, 0, %v1661_v18 }
  0x50   :  { %v1686_v26 = vsel %vm6292_vm8, 0, %v1685_v19  ;;  %1663 = vst [vmem:[#allocation2 + $0x94] sm:$0x8] %v1662_v25  ;;  %vm2887_vm8 = vcmask 519168  }
  0x51   :  { %1687 = vst [vmem:[#allocation2 + $0x134] sm:$0x8] %v1686_v26 }
  0xf5   :  { %v244_v52 = vpop.f32.mrb[0].mxu0 }
  0xf6   :  { %v5466_v53 = vpop.f32.mrb[1].mxu0  ;;  %v255_v54 = vrot.slane %v244_v52, %v6336_v51 }
  0xf8   :  { %v256_v55 = vcombine.high %v255_v54, %v255_v54  ;;  %v263_v56 = vrot.slane %v255_v54, %v6336_v51 }
  0xfa   :  { %v270_v57 = vrot.slane %v256_v55, %v6336_v51  ;;  %v373_v61 = vmul.f32 %v263_v56, %v263_v56  ;;  %v386_v34 = vrot.slane %v263_v56, %v6358_v32 }
  0xfc   :  { %v374_v1 = vmul.f32 %v270_v57, %v270_v57  ;;  %v6365_v37 = vrot.slane %v270_v57, %v6358_v32  ;;  %v395_v50 = vsub.f32 %v6114_v10, %v386_v34  ;;  %v393_v40 = vsub.f32 %v6102_v6, %v386_v34 }
  0xfd   :  { %v396_v41 = vsub.f32 %v6119_v11, %v386_v34  ;;  %v394_v42 = vsub.f32 %v6107_v7, %v386_v34  ;;  %v399_v45 = vsub.f32 %v6140_v16, %v386_v34  ;;  %v397_v46 = vsub.f32 %v6124_v12, %v386_v34  ;;  %v6383_v7 = vld [vmem:[%s8993_s3] ss:$0 sm:$0xff]  ;;  %s6004_s3 = smov 32  }
  0xfe   :  { %v344_v59 = vpop.f32.mrb[0].mxu1  ;;  %v398_v47 = vsub.f32 %v6135_v15, %v386_v34  ;;  %v400_v43 = vsub.f32 %v6145_v17, %v386_v34  ;;  %v402_v10 = vsub.f32 %v6163_v23, %v6365_v37  ;;  %v401_v6 = vsub.f32 %v6158_v22, %v6365_v37 }
  0xff   :  { %v355_v62 = vrot.slane %v344_v59, %v6336_v51  ;;  %v5477_v63 = vpop.f32.mrb[1].mxu1  ;;  %v405_v11 = vsub.f32 %v6184_v29, %v6365_v37  ;;  %v403_v12 = vsub.f32 %v6168_v24, %v6365_v37  ;;  %v407_v15 = vsub.f32 %v6200_v35, %v6365_v37 }
 0x100   :  { %v404_v16 = vsub.f32 %v6179_v28, %v6365_v37 }
 0x101   :  { %v356_v2 = vcombine.high %v355_v62, %v355_v62  ;;  %v363_v4 = vrot.slane %v355_v62, %v6336_v51 }
 0x103   :  { %v370_v5 = vrot.slane %v356_v2, %v6336_v51  ;;  %v375_v8 = vsub.f32 %v363_v4, %v373_v61 }
 0x105   :  { %v376_v13 = vsub.f32 %v370_v5, %v374_v1  ;;  %v377_v14 = vmax.f32 %v375_v8, 0.0  ;;  %v406_v1 = vsub.f32 %v6189_v30, %v6365_v37 }
 0x107   :  { %v378_v20 = vmax.f32 %v376_v13, 0.0  ;;  %v379_v21 = vadd.f32 1e-06, %v377_v14 }
 0x109   :  { %v380_v31 = vadd.f32 1e-06, %v378_v20  ;;  %5822 = vrsqrt.f32 %v379_v21 }
 0x10b   :  { %5824 = vrsqrt.f32 %v380_v31 }
 0x113   :  { %v5823_v38 = vpop.eup %5822 }
 0x114   :  { %v409_v39 = vmul.f32 %v5823_v38, %v65_v27 }
 0x115   :  { %v5825_v44 = vpop.eup %5824 }
 0x116   :  { %v410_v48 = vmul.f32 %v5825_v44, %v65_v27  ;;  %v416_v49 = vrot.slane %v409_v39, %v6358_v32  ;;  %v408_v39 = vsub.f32 %v6205_v36, %v6365_v37 }
 0x118   :  { %v420_v17 = vrot.slane %v410_v48, %v6358_v32  ;;  %v425_v22 = vmul.f32 %v416_v49, %v395_v50  ;;  %v423_v23 = vmul.f32 %v416_v49, %v393_v40  ;;  %v426_v52 = vmul.f32 %v416_v49, %v396_v41 }
 0x119   :  { %v424_v53 = vmul.f32 %v416_v49, %v394_v42  ;;  %v429_v54 = vmul.f32 %v416_v49, %v399_v45  ;;  %v427_v55 = vmul.f32 %v416_v49, %v397_v46  ;;  %v428_v56 = vmul.f32 %v416_v49, %v398_v47 }
 0x11a   :  { %v6395_v29 = vadd.f32 %v6383_v7, %v425_v22  ;;  %v6398_v24 = vadd.f32 %v6383_v7, %v423_v23  ;;  %v6401_v35 = vadd.f32 %v6383_v7, %v426_v52  ;;  %v430_v57 = vmul.f32 %v416_v49, %v400_v43 }
 0x11b   :  { %v6404_v28 = vadd.f32 %v6383_v7, %v424_v53  ;;  %v6407_v58 = vadd.f32 %v6383_v7, %v429_v54  ;;  %v6410_v59 = vadd.f32 %v6383_v7, %v427_v55  ;;  %v6413_v60 = vadd.f32 %v6383_v7, %v428_v56 }
 0x11c   :  { %v4958_v61 = vmul.f32 -1.442695, %v6395_v29  ;;  %v4956_v62 = vmul.f32 -1.442695, %v6398_v24  ;;  %v4959_v63 = vmul.f32 -1.442695, %v6401_v35  ;;  %v6423_v5 = vadd.f32 %v6383_v7, %v430_v57 }
 0x11d   :  { %v4957_v2 = vmul.f32 -1.442695, %v6404_v28  ;;  %v4962_v4 = vmul.f32 -1.442695, %v6407_v58  ;;  %v432_v8 = vmul.f32 %v420_v17, %v402_v10  ;;  %v4960_v13 = vmul.f32 -1.442695, %v6410_v59 }
 0x11e   :  { %5826 = vpow2.f32 %v4958_v61  ;;  %v4961_v14 = vmul.f32 -1.442695, %v6413_v60  ;;  %v431_v18 = vmul.f32 %v420_v17, %v401_v6  ;;  %v435_v20 = vmul.f32 %v420_v17, %v405_v11 }
 0x11f   :  { %5828 = vpow2.f32 %v4956_v62  ;;  %v6428_v19 = vadd.f32 %v6383_v7, %v432_v8  ;;  %v433_v30 = vmul.f32 %v420_v17, %v403_v12  ;;  %v437_v25 = vmul.f32 %v420_v17, %v407_v15 }
 0x120   :  { %5830 = vpow2.f32 %v4959_v63  ;;  %v6431_v21 = vadd.f32 %v6383_v7, %v431_v18  ;;  %v434_v26 = vmul.f32 %v420_v17, %v404_v16  ;;  %v4963_v31 = vmul.f32 -1.442695, %v6423_v5 }
 0x121   :  { %5832 = vpow2.f32 %v4957_v2  ;;  %v6435_v34 = vadd.f32 %v6383_v7, %v435_v20  ;;  %v6438_v27 = vadd.f32 %v6383_v7, %v433_v30  ;;  %v4965_v38 = vmul.f32 -1.442695, %v6428_v19 }
 0x122   :  { %5834 = vpow2.f32 %v4962_v4  ;;  %v6442_v50 = vadd.f32 %v6383_v7, %v437_v25  ;;  %v4964_v40 = vmul.f32 -1.442695, %v6431_v21  ;;  %v436_v41 = vmul.f32 %v420_v17, %v406_v1 }
 0x123   :  { %5836 = vpow2.f32 %v4960_v13  ;;  %v4968_v42 = vmul.f32 -1.442695, %v6435_v34  ;;  %v438_v44 = vmul.f32 %v420_v17, %v408_v39  ;;  %v4966_v45 = vmul.f32 -1.442695, %v6438_v27 }
 0x124   :  { %5838 = vpow2.f32 %v4961_v14  ;;  %v4970_v46 = vmul.f32 -1.442695, %v6442_v50  ;;  %v6454_v55 = vadd.f32 %v6383_v7, %v434_v26  ;;  %v6457_v61 = vadd.f32 %v6383_v7, %v436_v41 }
 0x125   :  { %5840 = vpow2.f32 %v4963_v31  ;;  %v6451_v47 = vadd.f32 %v6383_v7, %v438_v44 }
 0x126   :  { %5842 = vpow2.f32 %v4965_v38  ;;  %v4967_v13 = vmul.f32 -1.442695, %v6454_v55  ;;  %v4969_v20 = vmul.f32 -1.442695, %v6457_v61 }
 0x127   :  { %5844 = vpow2.f32 %v4964_v40 }
 0x128   :  { %v5827_v43 = vpop.eup %5826  ;;  %5846 = vpow2.f32 %v4968_v42 }
 0x129   :  { %v5829_v36 = vpop.eup %5828  ;;  %v511_v37 = vadd.f32 1.0, %v5827_v43  ;;  %5848 = vpow2.f32 %v4966_v45 }
 0x12a   :  { %v5831_v48 = vpop.eup %5830  ;;  %v509_v49 = vadd.f32 1.0, %v5829_v36  ;;  %5850 = vpow2.f32 %v4970_v46 }
 0x12b   :  { %v5833_v10 = vpop.eup %5832  ;;  %5852 = vrcp.f32 %v511_v37  ;;  %v512_v6 = vadd.f32 1.0, %v5831_v48 }
 0x12c   :  { %v5835_v11 = vpop.eup %5834  ;;  %5854 = vrcp.f32 %v509_v49  ;;  %v510_v12 = vadd.f32 1.0, %v5833_v10 }
 0x12d   :  { %v5837_v15 = vpop.eup %5836  ;;  %5856 = vrcp.f32 %v512_v6  ;;  %v515_v16 = vadd.f32 1.0, %v5835_v11 }
 0x12e   :  { %v5839_v17 = vpop.eup %5838  ;;  %5858 = vrcp.f32 %v510_v12  ;;  %v513_v22 = vadd.f32 1.0, %v5837_v15 }
 0x12f   :  { %v5841_v23 = vpop.eup %5840  ;;  %5860 = vrcp.f32 %v515_v16  ;;  %v514_v52 = vadd.f32 1.0, %v5839_v17  ;;  %v813_v17 = vld [vmem:[#allocation2 + $0x3c] sm:$0xf] }
 0x130   :  { %v5843_v53 = vpop.eup %5842  ;;  %5862 = vrcp.f32 %v513_v22  ;;  %v516_v54 = vadd.f32 1.0, %v5841_v23 }
 0x131   :  { %v5845_v56 = vpop.eup %5844  ;;  %5864 = vrcp.f32 %v514_v52  ;;  %v518_v57 = vadd.f32 1.0, %v5843_v53 }
 0x132   :  { %v5847_v62 = vpop.eup %5846  ;;  %5866 = vrcp.f32 %v516_v54  ;;  %v517_v63 = vadd.f32 1.0, %v5845_v56 }
 0x133   :  { %v5849_v1 = vpop.eup %5848  ;;  %5868 = vrcp.f32 %v518_v57  ;;  %v521_v2 = vadd.f32 1.0, %v5847_v62  ;;  %v807_v62 = vld [vmem:[#allocation2 + $0x14] sm:$0xf] }
 0x134   :  { %v5851_v4 = vpop.eup %5850  ;;  %5870 = vrcp.f32 %v517_v63  ;;  %v519_v8 = vadd.f32 1.0, %v5849_v1 }
 0x135   :  { %v5853_v14 = vpop.eup %5852  ;;  %5872 = vrcp.f32 %v521_v2  ;;  %v523_v18 = vadd.f32 1.0, %v5851_v4 }
 0x136   :  { %v5855_v30 = vpop.eup %5854  ;;  %v559_v7 = vmul.f32 %v5853_v14, %v6395_v29  ;;  %5874 = vrcp.f32 %v519_v8  ;;  %v810_v8 = vld [vmem:[#allocation2 + $0x28] sm:$0xf] }
 0x137   :  { %v5857_v25 = vpop.eup %5856  ;;  %v557_v26 = vmul.f32 %v5855_v30, %v6398_v24  ;;  %5876 = vrcp.f32 %v523_v18 }
 0x138   :  { %v5859_v31 = vpop.eup %5858  ;;  %v6463_v38 = vpack.c.bf16 %v559_v7, %v559_v7  ;;  %v560_v39 = vmul.f32 %v5857_v25, %v6401_v35  ;;  %5878 = vpow2.f32 %v4967_v13 }
 0x139   :  { %v5861_v40 = vpop.eup %5860  ;;  %v6466_v41 = vpack.c.bf16 %v557_v26, %v557_v26  ;;  %v558_v42 = vmul.f32 %v5859_v31, %v6404_v28  ;;  %5880 = vpow2.f32 %v4969_v20 }
 0x13a   :  { %v5863_v44 = vpop.eup %5862  ;;  %856 = vrot.lane.b32.xlu1 %v6463_v38, %s6004_s3  ;;  %v6471_v29 = vpack.c.bf16 %v560_v39, %v560_v39  ;;  %v563_v24 = vmul.f32 %v5861_v40, %v6407_v58  ;;  %1269 = vst.msk [vmem:[#allocation2 + $0x2c] sm:$0xf] %vm637_vm9, %v6463_v38  ;;  %v706_v35 = vshrl.u32 %v6463_v38, 16  ;;  %v709_v45 = vshll.u32 %v6463_v38, 16 }
 0x13b   :  { %v5865_v46 = vpop.eup %5864  ;;  %852 = vrot.lane.b32.xlu0 %v6466_v41, %s6004_s3  ;;  %v6480_v28 = vpack.c.bf16 %v558_v42, %v558_v42  ;;  %v561_v43 = vmul.f32 %v5863_v44, %v6410_v59  ;;  %1267 = vst.msk [vmem:[#allocation2 + $0x4] sm:$0xf] %vm637_vm9, %v6466_v41  ;;  %v692_v58 = vshrl.u32 %v6466_v41, 16  ;;  %v695_v36 = vshll.u32 %v6466_v41, 16  ;;  %v819_v44 = vld [vmem:[#allocation2 + $0x64] sm:$0xf] }
 0x13c   :  { %v5867_v37 = vpop.eup %5866  ;;  %v6487_v48 = vpack.c.bf16 %v563_v24, %v563_v24  ;;  %v562_v49 = vmul.f32 %v5865_v46, %v6413_v60  ;;  %1270 = vst.msk [vmem:[#allocation2 + $0x40] sm:$0xf] %vm637_vm9, %v6471_v29  ;;  %v708_v10 = vrot.slane %v706_v35, 7  ;;  %v713_v59 = vshrl.u32 %v6471_v29, 16 }
 0x13d   :  { %v5869_v6 = vpop.eup %5868  ;;  %v6495_v11 = vpack.c.bf16 %v561_v43, %v561_v43  ;;  %v564_v12 = vmul.f32 %v5867_v37, %v6423_v5  ;;  %v699_v15 = vshrl.u32 %v6480_v28, 16  ;;  %v702_v16 = vshll.u32 %v6480_v28, 16  ;;  %1268 = vst.msk [vmem:[#allocation2 + $0x18] sm:$0xf] %vm637_vm9, %v6480_v28 }
 0x13e   :  { %v5871_v22 = vpop.eup %5870  ;;  %858 = vrot.lane.b32.xlu1 %v6471_v29, %s6004_s3  ;;  %v6510_v23 = vpack.c.bf16 %v562_v49, %v562_v49  ;;  %v566_v5 = vmul.f32 %v5869_v6, %v6428_v19  ;;  %1273 = vst.msk [vmem:[#allocation2 + $0x7c] sm:$0xf] %vm637_vm9, %v6487_v48  ;;  %v694_v52 = vrot.slane %v692_v58, 7  ;;  %v6519_v53 = vor.u32 %v709_v45, %v708_v10  ;;  %v816_v10 = vld [vmem:[#allocation2 + $0x50] sm:$0xf] }
 0x13f   :  { %v5873_v54 = vpop.eup %5872  ;;  %854 = vrot.lane.b32.xlu0 %v6480_v28, %s6004_s3  ;;  %v6523_v56 = vpack.c.bf16 %v564_v12, %v564_v12  ;;  %v565_v57 = vmul.f32 %v5871_v22, %v6431_v21  ;;  %v701_v19 = vrot.slane %v699_v15, 7  ;;  %1271 = vst.msk [vmem:[#allocation2 + $0x54] sm:$0xf] %vm637_vm9, %v6495_v11  ;;  %v720_v63 = vshrl.u32 %v6495_v11, 16 }
 0x140   :  { %v5875_v1 = vpop.eup %5874  ;;  %v6531_v2 = vpack.c.bf16 %v566_v5, %v566_v5  ;;  %v569_v4 = vmul.f32 %v5873_v54, %v6435_v34  ;;  %1272 = vst.msk [vmem:[#allocation2 + $0x68] sm:$0xf] %vm637_vm9, %v6510_v23  ;;  %v6538_v21 = vor.u32 %v695_v36, %v694_v52  ;;  %v814_v13 = vsel %vm6502_vm11, %v6519_v53, %v813_v17 }
 0x141   :  { %v5877_v14 = vpop.eup %5876  ;;  %v6543_v18 = vpack.c.bf16 %v565_v57, %v565_v57  ;;  %v567_v20 = vmul.f32 %v5875_v1, %v6438_v27  ;;  %v6548_v34 = vor.u32 %v702_v16, %v701_v19  ;;  %1274 = vst.msk [vmem:[#allocation2 + $0x90] sm:$0xf] %vm637_vm9, %v6523_v56  ;;  %815 = vst [vmem:[#allocation2 + $0x3c] sm:$0xf] %v814_v13  ;;  %v722_v30 = vrot.slane %v720_v63, 7 }
 0x142   :  { %v5879_v7 = vpop.eup %5878  ;;  %864 = vrot.lane.b32.xlu1 %v6487_v48, %s6004_s3  ;;  %v6556_v25 = vpack.c.bf16 %v569_v4, %v569_v4  ;;  %v571_v27 = vmul.f32 %v5877_v14, %v6442_v50  ;;  %1276 = vst.msk [vmem:[#allocation2 + $0xb8] sm:$0xf] %vm637_vm9, %v6531_v2  ;;  %v808_v26 = vsel %vm6502_vm11, %v6538_v21, %v807_v62  ;;  %v723_v31 = vshll.u32 %v6495_v11, 16  ;;  %v825_v4 = vld [vmem:[#allocation2 + $0x8c] sm:$0xf] }
 0x143   :  { %v5881_v39 = vpop.eup %5880  ;;  %860 = vrot.lane.b32.xlu0 %v6495_v11, %s6004_s3  ;;  %v6567_v40 = vpack.c.bf16 %v567_v20, %v567_v20  ;;  %v520_v42 = vadd.f32 1.0, %v5879_v7  ;;  %v811_v50 = vsel %vm6502_vm11, %v6548_v34, %v810_v8  ;;  %1275 = vst.msk [vmem:[#allocation2 + $0xa4] sm:$0xf] %vm637_vm9, %v6543_v18  ;;  %809 = vst [vmem:[#allocation2 + $0x14] sm:$0xf] %v808_v26  ;;  %v715_v24 = vrot.slane %v713_v59, 7 }
 0x144   :  { %v6576_v46 = vpack.c.bf16 %v571_v27, %v571_v27  ;;  %v522_v43 = vadd.f32 1.0, %v5881_v39  ;;  %812 = vst [vmem:[#allocation2 + $0x28] sm:$0xf] %v811_v50  ;;  %1279 = vst.msk [vmem:[#allocation2 + $0xf4] sm:$0xf] %vm637_vm9, %v6556_v25  ;;  %v6580_v37 = vor.u32 %v723_v31, %v722_v30  ;;  %v716_v49 = vshll.u32 %v6471_v29, 16 }
 0x145   :  { %5882 = vrcp.f32 %v520_v42  ;;  %1277 = vst.msk [vmem:[#allocation2 + $0xcc] sm:$0xf] %vm637_vm9, %v6567_v40  ;;  %v734_v6 = vshrl.u32 %v6487_v48, 16  ;;  %v737_v12 = vshll.u32 %v6487_v48, 16  ;;  %v727_v17 = vshrl.u32 %v6510_v23, 16 }
 0x146   :  { %1580 = vrot.lane.b32.xlu1 %v6480_v28, %s6005_s22  ;;  %5884 = vrcp.f32 %v522_v43  ;;  %1281 = vst.msk [vmem:[#allocation2 + $0x11c] sm:$0xf] %vm637_vm9, %v6576_v46  ;;  %v820_v22 = vsel %vm6502_vm11, %v6580_v37, %v819_v44  ;;  %v6595_v5 = vor.u32 %v716_v49, %v715_v24  ;;  %v730_v52 = vshll.u32 %v6510_v23, 16  ;;  %v822_v8 = vld [vmem:[#allocation2 + $0x78] sm:$0xf] }
 0x147   :  { %862 = vrot.lane.b32.xlu0 %v6510_v23, %s6004_s3  ;;  %821 = vst [vmem:[#allocation2 + $0x64] sm:$0xf] %v820_v22  ;;  %v736_v54 = vrot.slane %v734_v6, 7  ;;  %v729_v57 = vrot.slane %v727_v17, 7  ;;  %v6602_v19 = vrot.slane %v692_v58, 4  ;;  %v6606_v62 = vrot.slane %v695_v36, 5 }
 0x148   :  { %v817_v1 = vsel %vm6502_vm11, %v6595_v5, %v816_v10  ;;  %v974_v13 = vrot.slane %v713_v59, 4  ;;  %v975_v41 = vrot.slane %v716_v49, 5  ;;  %v966_v36 = vrot.slane %v699_v15, 4  ;;  %v1703_v24 = vld [vmem:[#allocation2 + $0x8] sm:$0xf] }
 0x149   :  { %818 = vst [vmem:[#allocation2 + $0x50] sm:$0xf] %v817_v1  ;;  %v6613_v14 = vor.u32 %v737_v12, %v736_v54  ;;  %v6615_v20 = vor.u32 %v730_v52, %v729_v57  ;;  %v967_v30 = vrot.slane %v702_v16, 5  ;;  %v970_v59 = vrot.slane %v706_v35, 4  ;;  %v1709_v16 = vld [vmem:[#allocation2 + $0x30] sm:$0xf] }
 0x14a   :  { %1586 = vrot.lane.b32.xlu1 %v6495_v11, %s6005_s22  ;;  %v9009_v26 = vshrl.u32 %v6523_v56, 16  ;;  %v976_v15 = vor.u32 %v975_v41, %v974_v13  ;;  %v9008_v28 = vshll.u32 %v6523_v56, 16  ;;  %v971_v42 = vrot.slane %v709_v45, 5  ;;  %v1706_v45 = vld [vmem:[#allocation2 + $0x1c] sm:$0xf]  ;;  %v5694_v35 = vld [vmem:[%s8995_s5 + $0x8] sm:$0xff]  }
 0x14b   :  { %1582 = vrot.lane.b32.xlu0 %v6463_v38, %s6005_s22  ;;  %v826_v7 = vsel %vm6502_vm11, %v6613_v14, %v825_v4  ;;  %v823_v27 = vsel %vm6502_vm11, %v6615_v20, %v822_v8  ;;  %v968_v39 = vor.u32 %v967_v30, %v966_v36  ;;  %v978_v50 = vrot.slane %v720_v63, 4  ;;  %v1718_v30 = vld [vmem:[#allocation2 + $0x6c] sm:$0xf]  ;;  %v843_v58 = vld [vmem:[#allocation2 + $0x118] sm:$0xf] }
 0x14c   :  { %827 = vst [vmem:[#allocation2 + $0x8c] sm:$0xf] %v826_v7  ;;  %824 = vst [vmem:[#allocation2 + $0x78] sm:$0xf] %v823_v27  ;;  %v6647_v44 = vrot.slane %v976_v15, 4  ;;  %v979_v43 = vrot.slane %v723_v31, 5  ;;  %v972_v54 = vor.u32 %v971_v42, %v970_v59 }
 0x14d   :  { %v982_v49 = vrot.slane %v727_v17, 4  ;;  %v983_v10 = vrot.slane %v730_v52, 5  ;;  %v6651_v22 = vrot.slane %v968_v39, 4  ;;  %v986_v57 = vrot.slane %v734_v6, 4  ;;  %v1715_v52 = vld [vmem:[#allocation2 + $0x58] sm:$0xf] }
 0x14e   :  { %1590 = vrot.lane.b32.xlu1 %v6487_v48, %s6005_s22  ;;  %v987_v1 = vrot.slane %v737_v12, 5  ;;  %v1710_v38 = vsel %vm6639_vm13, %v6647_v44, %v1709_v16  ;;  %v980_v11 = vor.u32 %v979_v43, %v978_v50  ;;  %v755_v31 = vshrl.u32 %v6567_v40, 16  ;;  %v834_v42 = vld [vmem:[#allocation2 + $0xdc] sm:$0xf]  ;;  %v1285_v0 = vld [vmem:[#allocation2 + $0x4] sm:$0x8] }
 0x14f   :  { %v5883_v4 = vpop.eup %5882  ;;  %1584 = vrot.lane.b32.xlu0 %v6471_v29, %s6005_s22  ;;  %v984_v63 = vor.u32 %v983_v10, %v982_v49  ;;  %1711 = vst [vmem:[#allocation2 + $0x30] sm:$0xf] %v1710_v38  ;;  %v1704_v6 = vsel %vm6639_vm13, %v6651_v22, %v1703_v24  ;;  %v6663_v12 = vrot.slane %v972_v54, 4  ;;  %v1712_v29 = vld [vmem:[#allocation2 + $0x44] sm:$0xf]  ;;  %v1333_v50 = vrot.slane %v9009_v26, 4 }
 0x150   :  { %v5885_v17 = vpop.eup %5884  ;;  %v568_v48 = vmul.f32 %v5883_v4, %v6454_v55  ;;  %v988_v8 = vor.u32 %v987_v1, %v986_v57  ;;  %1705 = vst [vmem:[#allocation2 + $0x8] sm:$0xf] %v1704_v6  ;;  %v6666_v41 = vrot.slane %v980_v11, 4  ;;  %v757_v55 = vrot.slane %v755_v31, 7  ;;  %v1721_v10 = vld [vmem:[#allocation2 + $0x80] sm:$0xf] }
 0x151   :  { %v570_v13 = vmul.f32 %v5885_v17, %v6457_v61  ;;  %v6668_v36 = vrot.slane %v984_v63, 4  ;;  %v1707_v7 = vsel %vm6639_vm13, %v6663_v12, %v1706_v45  ;;  %v758_v61 = vshll.u32 %v6567_v40, 16  ;;  %v831_v57 = vld [vmem:[#allocation2 + $0xc8] sm:$0xf]  ;;  %v837_v17 = vld [vmem:[#allocation2 + $0xf0] sm:$0xf] }
 0x152   :  { %1592 = vrot.lane.b32.xlu1 %v6523_v56, %s6005_s22  ;;  %v6674_v59 = vpack.c.bf16 %v568_v48, %v568_v48  ;;  %v6679_v27 = vrot.slane %v988_v8, 4  ;;  %1708 = vst [vmem:[#allocation2 + $0x1c] sm:$0xf] %v1707_v7  ;;  %v1713_v16 = vsel %vm6639_vm13, %v6666_v41, %v1712_v29  ;;  %v1334_v43 = vrot.slane %v9008_v28, 5  ;;  %v828_v6 = vld [vmem:[#allocation2 + $0xb4] sm:$0xf] }
 0x153   :  { %1588 = vrot.lane.b32.xlu0 %v6510_v23, %s6005_s22  ;;  %v6684_v15 = vpack.c.bf16 %v570_v13, %v570_v13  ;;  %v1716_v39 = vsel %vm6639_vm13, %v6668_v36, %v1715_v52  ;;  %1714 = vst [vmem:[#allocation2 + $0x44] sm:$0xf] %v1713_v16  ;;  %v6701_v24 = vor.u32 %v758_v61, %v757_v55  ;;  %v748_v49 = vshrl.u32 %v6531_v2, 16  ;;  %v643_v26 = vld [vmem:[#allocation2] sm:$0x1] }
 0x154   :  { %1278 = vst.msk [vmem:[#allocation2 + $0xe0] sm:$0xf] %vm637_vm9, %v6674_v59  ;;  %1717 = vst [vmem:[#allocation2 + $0x58] sm:$0xf] %v1716_v39  ;;  %v1719_v23 = vsel %vm6639_vm13, %v6679_v27, %v1718_v30  ;;  %v751_v54 = vshll.u32 %v6531_v2, 16  ;;  %v762_v1 = vshrl.u32 %v6674_v59, 16  ;;  %v1335_v11 = vor.u32 %v1334_v43, %v1333_v50 }
 0x155   :  { %1280 = vst.msk [vmem:[#allocation2 + $0x108] sm:$0xf] %vm637_vm9, %v6684_v15  ;;  %1720 = vst [vmem:[#allocation2 + $0x6c] sm:$0xf] %v1719_v23  ;;  %v765_v4 = vshll.u32 %v6674_v59, 16  ;;  %v741_v38 = vshrl.u32 %v6543_v18, 16  ;;  %v835_v45 = vsel %vm6502_vm11, %v6701_v24, %v834_v42 }
 0x156   :  { %868 = vrot.lane.b32.xlu1 %v6531_v2, %s6004_s3  ;;  %v750_v63 = vrot.slane %v748_v49, 7  ;;  %v744_v48 = vshll.u32 %v6543_v18, 16  ;;  %836 = vst [vmem:[#allocation2 + $0xdc] sm:$0xf] %v835_v45  ;;  %v764_v29 = vrot.slane %v762_v1, 7  ;;  %v769_v8 = vshrl.u32 %v6556_v25, 16 }
 0x157   :  { %866 = vrot.lane.b32.xlu0 %v6543_v18, %s6004_s3  ;;  %v743_v52 = vrot.slane %v741_v38, 7  ;;  %v772_v13 = vshll.u32 %v6556_v25, 16  ;;  %v6722_v30 = vrot.slane %v1335_v11, 4  ;;  %v6726_v7 = vrot.slane %v741_v38, 4  ;;  %v840_v38 = vld [vmem:[#allocation2 + $0x104] sm:$0xf] }
 0x158   :  { %v6724_v55 = vor.u32 %v751_v54, %v750_v63  ;;  %v6728_v16 = vrot.slane %v744_v48, 5  ;;  %v6730_v39 = vor.u32 %v765_v4, %v764_v29  ;;  %v771_v18 = vrot.slane %v769_v8, 7 }
 0x159   :  { %v6732_v42 = vor.u32 %v744_v48, %v743_v52  ;;  %v994_v50 = vrot.slane %v748_v49, 4  ;;  %v1722_v23 = vsel %vm6639_vm13, %v6722_v30, %v1721_v10  ;;  %v995_v11 = vrot.slane %v751_v54, 5  ;;  %v1724_v54 = vld [vmem:[#allocation2 + $0xa8] sm:$0xf] }
 0x15a   :  { %874 = vrot.lane.b32.xlu1 %v6556_v25, %s6004_s3  ;;  %v832_v43 = vsel %vm6502_vm11, %v6724_v55, %v831_v57  ;;  %1723 = vst [vmem:[#allocation2 + $0x80] sm:$0xf] %v1722_v23  ;;  %v838_v49 = vsel %vm6502_vm11, %v6730_v39, %v837_v17  ;;  %v6752_v63 = vor.u32 %v772_v13, %v771_v18  ;;  %v1002_v57 = vrot.slane %v762_v1, 4 }
 0x15b   :  { %870 = vrot.lane.b32.xlu0 %v6567_v40, %s6004_s3  ;;  %833 = vst [vmem:[#allocation2 + $0xc8] sm:$0xf] %v832_v43  ;;  %v829_v10 = vsel %vm6502_vm11, %v6732_v42, %v828_v6  ;;  %839 = vst [vmem:[#allocation2 + $0xf0] sm:$0xf] %v838_v49  ;;  %v996_v48 = vor.u32 %v995_v11, %v994_v50  ;;  %v1003_v29 = vrot.slane %v765_v4, 5  ;;  %v998_v52 = vrot.slane %v755_v31, 4 }
 0x15c   :  { %830 = vst [vmem:[#allocation2 + $0xb4] sm:$0xf] %v829_v10  ;;  %v4971_v23 = vmul.f32 -1.442695, %v6451_v47  ;;  %v841_v17 = vsel %vm6502_vm11, %v6752_v63, %v840_v38  ;;  %v1730_v43 = vld [vmem:[#allocation2 + $0xd0] sm:$0xf] }
 0x15d   :  { %v999_v6 = vrot.slane %v758_v61, 5  ;;  %v776_v1 = vshrl.u32 %v6684_v15, 16  ;;  %v779_v18 = vshll.u32 %v6684_v15, 16  ;;  %842 = vst [vmem:[#allocation2 + $0x104] sm:$0xf] %v841_v17  ;;  %v6766_v4 = vrot.slane %v996_v48, 4 }
 0x15e   :  { %878 = vrot.lane.b32.xlu1 %v6576_v46, %s6004_s3  ;;  %v1004_v31 = vor.u32 %v1003_v29, %v1002_v57  ;;  %v1727_v50 = vld [vmem:[#allocation2 + $0xbc] sm:$0xf]  ;;  %v1006_v11 = vrot.slane %v769_v8, 4  ;;  %v1007_v49 = vrot.slane %v772_v13, 5  ;;  %v783_v3 = vshrl.u32 %v6576_v46, 16 }
 0x15f   :  { %872 = vrot.lane.b32.xlu0 %v6674_v59, %s6004_s3  ;;  %v1000_v38 = vor.u32 %v999_v6, %v998_v52  ;;  %v1010_v10 = vrot.slane %v776_v1, 4  ;;  %v1011_v61 = vrot.slane %v779_v18, 5  ;;  %v1725_v45 = vsel %vm6639_vm13, %v6766_v4, %v1724_v54  ;;  %v1736_v48 = vld [vmem:[#allocation2 + $0xf8] sm:$0xf]  ;;  %v846_v13 = vld [vmem:[#allocation2 + $0x12c] sm:$0xf] }
 0x160   :  { %v6774_v17 = vrot.slane %v1004_v31, 4  ;;  %v1008_v57 = vor.u32 %v1007_v49, %v1006_v11  ;;  %v786_v8 = vshll.u32 %v6576_v46, 16  ;;  %1726 = vst [vmem:[#allocation2 + $0xa8] sm:$0xf] %v1725_v45  ;;  %v1014_v6 = vrot.slane %v783_v3, 4 }
 0x161   :  { %v6777_v29 = vrot.slane %v1000_v38, 4  ;;  %v1012_v52 = vor.u32 %v1011_v61, %v1010_v10  ;;  %v785_v28 = vrot.slane %v783_v3, 7  ;;  %v778_v49 = vrot.slane %v776_v1, 7  ;;  %v1294_v45 = vld [vmem:[#allocation2 + $0x40] sm:$0x8] }
 0x162   :  { %1596 = vrot.lane.b32.xlu1 %v6567_v40, %s6005_s22  ;;  %v1731_v54 = vsel %vm6639_vm13, %v6774_v17, %v1730_v43  ;;  %v6784_v31 = vrot.slane %v1008_v57, 4  ;;  %v1015_v11 = vrot.slane %v786_v8, 5  ;;  %v1739_v40 = vld [vmem:[#allocation2 + $0x10c] sm:$0xf]  ;;  %5886 = vpow2.f32 %v4971_v23  ;;  %v1288_v43 = vld [vmem:[#allocation2 + $0x18] sm:$0x8] }
 0x163   :  { %876 = vrot.lane.b32.xlu0 %v6684_v15, %s6004_s3  ;;  %1732 = vst [vmem:[#allocation2 + $0xd0] sm:$0xf] %v1731_v54  ;;  %v1728_v3 = vsel %vm6639_vm13, %v6777_v29, %v1727_v50  ;;  %v6791_v38 = vrot.slane %v1012_v52, 4  ;;  %v6793_v10 = vor.u32 %v786_v8, %v785_v28  ;;  %v1291_v61 = vld [vmem:[#allocation2 + $0x2c] sm:$0x8]  ;;  %v6798_v54 = vor.u32 %v779_v18, %v778_v49  ;;  %v5698_v28 = vld [vmem:[%s8995_s5 + $0x18] sm:$0xff]  }
 0x164   :  { %v1297_v57 = vld [vmem:[#allocation2 + $0x54] sm:$0x8]  ;;  %1729 = vst [vmem:[#allocation2 + $0xbc] sm:$0xf] %v1728_v3  ;;  %v1734_v1 = vsel %vm6639_vm13, %v6784_v31, %v1733_v9  ;;  %v1016_v32 = vor.u32 %v1015_v11, %v1014_v6  ;;  %v644_v50 = vsel %vm6273_vm5, 0, %v643_v26  ;;  %v9028_v3 = vmov 0  }
 0x165   :  { %v1300_v23 = vld [vmem:[#allocation2 + $0x68] sm:$0x8]  ;;  %v1303_v8 = vld [vmem:[#allocation2 + $0x7c] sm:$0x8]  ;;  %v1306_v52 = vld [vmem:[#allocation2 + $0x90] sm:$0x8]  ;;  %v1737_v9 = vsel %vm6639_vm13, %v6791_v38, %v1736_v48  ;;  %v847_v18 = vsel %vm6502_vm11, %v6793_v10, %v846_v13  ;;  %v844_v48 = vsel %vm6502_vm11, %v6798_v54, %v843_v58 }
 0x166   :  { %1735 = vst [vmem:[#allocation2 + $0xe4] sm:$0xf] %v1734_v1  ;;  %645 = vst [vmem:[#allocation2] sm:$0x1] %v644_v50  ;;  %v1309_v26 = vld [vmem:[#allocation2 + $0xa4] sm:$0x8]  ;;  %1598 = vrot.lane.b32.xlu1 %v6674_v59, %s6005_s22 }
 0x167   :  { %v1312_v6 = vld [vmem:[#allocation2 + $0xb8] sm:$0x8]  ;;  %v1315_v11 = vld [vmem:[#allocation2 + $0xcc] sm:$0x8]  ;;  %1738 = vst [vmem:[#allocation2 + $0xf8] sm:$0xf] %v1737_v9  ;;  %1594 = vrot.lane.b32.xlu0 %v6531_v2, %s6005_s22 }
 0x168   :  { %v6816_v49 = vrot.slane %v1016_v32, 4  ;;  %848 = vst [vmem:[#allocation2 + $0x12c] sm:$0xf] %v847_v18  ;;  %850 = vst.msk [vmem:[#allocation2] sm:$0xf] %vm849_vm3, %v9028_v3  ;;  %v1286_v32 = vsel %vm6804_vm15, 0, %v1285_v0 }
 0x169   :  { %v1318_v13 = vld [vmem:[#allocation2 + $0xe0] sm:$0x8]  ;;  %v1321_v1 = vld [vmem:[#allocation2 + $0xf4] sm:$0x8]  ;;  %v1327_v50 = vld [vmem:[#allocation2 + $0x11c] sm:$0x8] }
 0x16a   :  { %845 = vst [vmem:[#allocation2 + $0x118] sm:$0xf] %v844_v48  ;;  %909 = vst.msk [vmem:[#allocation2] sm:$0xf] %vm908_vm6, %v9028_v3  ;;  %v1295_v60 = vsel %vm6804_vm15, 0, %v1294_v45  ;;  %v1740_v58 = vsel %vm6639_vm13, %v6816_v49, %v1739_v40  ;;  %v1289_v59 = vsel %vm6804_vm15, 0, %v1288_v43  ;;  %1492 = vrot.lane.b32.xlu1 %v6548_v34, %s6006_s23 }
 0x16b   :  { %3653 = vst.msk [vmem:[#allocation2 + $0x98] sm:$0xf] %vm2887_vm8, %v9028_v3  ;;  %3654 = vst.msk [vmem:[#allocation2 + $0x138] sm:$0xf] %vm2887_vm8, %v9028_v3  ;;  %v1324_v2 = vld [vmem:[#allocation2 + $0x108] sm:$0x8]  ;;  %1600 = vrot.lane.b32.xlu0 %v6556_v25, %s6005_s22 }
 0x16c   :  { %3769 = vst.msk [vmem:[#allocation2 + $0x9c] sm:$0xf] %vm2887_vm8, %v9028_v3  ;;  %3770 = vst.msk [vmem:[#allocation2 + $0x13c] sm:$0xf] %vm2887_vm8, %v9028_v3  ;;  %v1292_v9 = vsel %vm6804_vm15, 0, %v1291_v61  ;;  %v1298_v18 = vsel %vm6804_vm15, 0, %v1297_v57  ;;  %v5887_v25 = vpop.eup %5886 }
 0x16d   :  { %1287 = vst [vmem:[#allocation2 + $0x4] sm:$0x8] %v1286_v32  ;;  %1296 = vst [vmem:[#allocation2 + $0x40] sm:$0x8] %v1295_v60  ;;  %v1301_v0 = vsel %vm6804_vm15, 0, %v1300_v23  ;;  %v1304_v45 = vsel %vm6804_vm15, 0, %v1303_v8 }
 0x16e   :  { %1741 = vst [vmem:[#allocation2 + $0x10c] sm:$0xf] %v1740_v58  ;;  %1290 = vst [vmem:[#allocation2 + $0x18] sm:$0x8] %v1289_v59  ;;  %v1307_v40 = vsel %vm6804_vm15, 0, %v1306_v52  ;;  %v1310_v43 = vsel %vm6804_vm15, 0, %v1309_v26  ;;  %1169 = vrot.lane.b32.xlu1 %v6538_v21, %s6005_s22 }
 0x16f   :  { %1293 = vst [vmem:[#allocation2 + $0x2c] sm:$0x8] %v1292_v9  ;;  %1299 = vst [vmem:[#allocation2 + $0x54] sm:$0x8] %v1298_v18  ;;  %v1313_v61 = vsel %vm6804_vm15, 0, %v1312_v6  ;;  %v1319_v57 = vsel %vm6804_vm15, 0, %v1318_v13  ;;  %1494 = vrot.lane.b32.xlu0 %v6519_v53, %s6006_s23 }
 0x170   :  { %1302 = vst [vmem:[#allocation2 + $0x68] sm:$0x8] %v1301_v0  ;;  %1305 = vst [vmem:[#allocation2 + $0x7c] sm:$0x8] %v1304_v45  ;;  %v1316_v23 = vsel %vm6804_vm15, 0, %v1315_v11  ;;  %v1325_v8 = vsel %vm6804_vm15, 0, %v1324_v2  ;;  %v9034_v0 = vor.u32 %v6606_v62, %v6602_v19 }
 0x171   :  { %1308 = vst [vmem:[#allocation2 + $0x90] sm:$0x8] %v1307_v40  ;;  %1311 = vst [vmem:[#allocation2 + $0xa4] sm:$0x8] %v1310_v43  ;;  %vm911_vm11 = vcmask 781827   ;;  %v1322_v52 = vsel %vm6804_vm15, 0, %v1321_v1 }
 0x172   :  { %1314 = vst [vmem:[#allocation2 + $0xb8] sm:$0x8] %v1313_v61  ;;  %1320 = vst [vmem:[#allocation2 + $0xe0] sm:$0x8] %v1319_v57  ;;  %v1328_v26 = vsel %vm6804_vm15, 0, %v1327_v50  ;;  %v524_v48 = vadd.f32 1.0, %v5887_v25  ;;  %1498 = vrot.lane.b32.xlu1 %v6580_v37, %s6006_s23 }
 0x173   :  { %1317 = vst [vmem:[#allocation2 + $0xcc] sm:$0x8] %v1316_v23  ;;  %1326 = vst [vmem:[#allocation2 + $0x108] sm:$0x8] %v1325_v8  ;;  %v914_v13 = vld [vmem:[#allocation2] sm:$0x8]  ;;  %1171 = vrot.lane.b32.xlu0 %v6548_v34, %s6005_s22 }
 0x174   :  { %1323 = vst [vmem:[#allocation2 + $0xf4] sm:$0x8] %v1322_v52  ;;  %1329 = vst [vmem:[#allocation2 + $0x11c] sm:$0x8] %v1328_v26  ;;  %v1107_v1 = vld [vmem:[#allocation2] sm:$0x1]  ;;  %5888 = vrcp.f32 %v524_v48 }
 0x175   :  { %vm6881_vm2 = vmand %vm911_vm11, %vm912_vm7  ;;  %v1108_v32 = vsel %vm6874_vm1, 0, %v1107_v1  ;;  %v9033_v58 = vshrl.u32 %v6523_v56, 16  ;;  %v965_v45 = vrot.slane %v9034_v0, 4  ;;  %v1742_v40 = vld [vmem:[#allocation2 + $0x120] sm:$0xf]  ;;  %v9035_v43 = vshll.u32 %v6523_v56, 16 }
 0x176   :  { %v915_v50 = vsel %vm6881_vm2, 0, %v914_v13  ;;  %1109 = vst [vmem:[#allocation2] sm:$0x1] %v1108_v32  ;;  %1175 = vrot.lane.b32.xlu1 %v6595_v5, %s6005_s22  ;;  %v5691_v56 = vld [vmem:[%s8995_s5 + $0x40] sm:$0xff]   ;;  %v5693_v62 = vld [vmem:[%s8995_s5 + $0x48] sm:$0xff]   ;;  %v5703_v52 = vld [vmem:[%s8995_s5 + $0x70] sm:$0xff]  }
 0x177   :  { %916 = vst [vmem:[#allocation2] sm:$0x8] %v915_v50  ;;  %1496 = vrot.lane.b32.xlu0 %v6595_v5, %s6006_s23  ;;  %5214 = vmatprep.subr.bf16.mxu0 %v5691_v56  ;;  %v5692_v19 = vld [vmem:[%s8995_s5] sm:$0xff]   ;;  %v5704_v48 = vld [vmem:[%s8995_s5 + $0x30] sm:$0xff]   ;;  %v5705_v1 = vld [vmem:[%s8995_s5 + $0x78] sm:$0xff]   ;;  %vm2890_vm11 = vcmask 516096  }
 0x178   :  { %5215 = vmatpush3.bf16.msra.mxu0 %v5692_v19  ;;  %v5699_v8 = vld [vmem:[%s8995_s5 + $0x60] sm:$0xff]  }
 0x179   :  { %5216 = vmatprep.subr.bf16.mxu0 %v5693_v62  ;;  %v667_v26 = vld [vmem:[#allocation2 + $0xa0] sm:$0x1] }
 0x17a   :  { %1502 = vrot.lane.b32.xlu1 %v6613_v14, %s6006_s23 }
 0x17b   :  { %1173 = vrot.lane.b32.xlu0 %v6519_v53, %s6005_s22  ;;  %v1158_v53 = vrot.slane %v9033_v58, 7 }
 0x17c   :  { %5217 = vmatpush3.bf16.msra.mxu0 %v5694_v35 }
 0x17d   :  { %v1161_v61 = vor.u32 %v9035_v43, %v1158_v53 }
 0x17e   :  { %v5889_v21 = vpop.eup %5888  ;;  %1179 = vrot.lane.b32.xlu1 %v6615_v20, %s6005_s22 }
 0x17f   :  { %v572_v60 = vmul.f32 %v5889_v21, %v6451_v47  ;;  %1500 = vrot.lane.b32.xlu0 %v6615_v20, %s6006_s23  ;;  %v9036_v21 = vor.u32 %v6728_v16, %v6726_v7 }
 0x181   :  { %v6904_v2 = vpack.c.bf16 %v572_v60, %v572_v60  ;;  %v993_v60 = vrot.slane %v9036_v21, 4 }
 0x182   :  { %1181 = vrot.lane.b32.xlu1 %v6613_v14, %s6005_s22 }
 0x183   :  { %v1163_v34 = vshrl.u32 %v6904_v2, 16  ;;  %v1166_v5 = vshll.u32 %v6904_v2, 16  ;;  %1282 = vst.msk [vmem:[#allocation2 + $0x130] sm:$0xf] %vm637_vm9, %v6904_v2  ;;  %1177 = vrot.lane.b32.xlu0 %v6580_v37, %s6005_s22 }
 0x185   :  { %v1337_v59 = vrot.slane %v1163_v34, 4  ;;  %v1338_v47 = vrot.slane %v1166_v5, 5  ;;  %v1165_v9 = vrot.slane %v1163_v34, 7 }
 0x186   :  { %1341 = vrot.lane.b32.xlu1 %v965_v45, %s6004_s3 }
 0x187   :  { %v1339_v20 = vor.u32 %v1338_v47, %v1337_v59  ;;  %v6920_v18 = vor.u32 %v1166_v5, %v1165_v9  ;;  %1504 = vrot.lane.b32.xlu0 %v1161_v61, %s6006_s23 }
 0x189   :  { %v6927_v57 = vrot.slane %v1339_v20, 4 }
 0x18a   :  { %v1330_v23 = vld [vmem:[#allocation2 + $0x130] sm:$0x8]  ;;  %1018 = vrot.lane.b32.xlu1 %v965_v45, %s6006_s23 }
 0x18b   :  { %v1743_v37 = vsel %vm6639_vm13, %v6927_v57, %v1742_v40  ;;  %v1331_v14 = vsel %vm6804_vm15, 0, %v1330_v23  ;;  %1183 = vrot.lane.b32.xlu0 %v1161_v61, %s6005_s22  ;;  %vm7203_vm13 = vmand %vm908_vm6, %vm9016_vm12  ;;  %vm1442_vm15 = vcmask 778752  }
 0x18c   :  { %1744 = vst [vmem:[#allocation2 + $0x120] sm:$0xf] %v1743_v37  ;;  %1332 = vst [vmem:[#allocation2 + $0x130] sm:$0x8] %v1331_v14  ;;  %v7071_v14 = vld [vmem:[%s8995_s5 + $0x80] sm:$0xff]  }
 0x18e   :  { %1347 = vrot.lane.b32.xlu1 %v6647_v44, %s6004_s3 }
 0x18f   :  { %1343 = vrot.lane.b32.xlu0 %v6651_v22, %s6004_s3 }
 0x192   :  { %1022 = vrot.lane.b32.xlu1 %v6663_v12, %s6006_s23 }
 0x193   :  { %1345 = vrot.lane.b32.xlu0 %v6663_v12, %s6004_s3  ;;  %v5695_v12 = vld [vmem:[%s8995_s5 + $0x50] sm:$0xff]  }
 0x194   :  { %5218 = vmatprep.subr.bf16.mxu0 %v5695_v12 }
 0x196   :  { %1349 = vrot.lane.b32.xlu1 %v6666_v41, %s6004_s3 }
 0x197   :  { %1020 = vrot.lane.b32.xlu0 %v6651_v22, %s6006_s23  ;;  %v5696_v22 = vld [vmem:[%s8995_s5 + $0x10] sm:$0xff]  }
 0x198   :  { %5219 = vmatpush3.bf16.msra.mxu0 %v5696_v22 }
 0x19a   :  { %1024 = vrot.lane.b32.xlu1 %v6647_v44, %s6006_s23  ;;  %v5697_v44 = vld [vmem:[%s8995_s5 + $0x58] sm:$0xff]  }
 0x19b   :  { %1351 = vrot.lane.b32.xlu0 %v6668_v36, %s6004_s3  ;;  %5220 = vmatprep.subr.bf16.mxu0 %v5697_v44 }
 0x19c   :  { %5221 = vmatpush3.bf16.msra.mxu0 %v5698_v28 }
 0x19d   :  { %5222 = vmatprep.subr.bf16.mxu0 %v5699_v8 }
 0x19e   :  { %1353 = vrot.lane.b32.xlu1 %v6679_v27, %s6004_s3 }
 0x19f   :  { %1026 = vrot.lane.b32.xlu0 %v6666_v41, %s6006_s23  ;;  %v5700_v41 = vld [vmem:[%s8995_s5 + $0x20] sm:$0xff]  }
 0x1a0   :  { %5223 = vmatpush3.bf16.msra.mxu0 %v5700_v41 }
 0x1a2   :  { %1030 = vrot.lane.b32.xlu1 %v6679_v27, %s6006_s23  ;;  %v5701_v27 = vld [vmem:[%s8995_s5 + $0x68] sm:$0xff]  }
 0x1a3   :  { %1028 = vrot.lane.b32.xlu0 %v6668_v36, %s6006_s23  ;;  %5224 = vmatprep.subr.bf16.mxu0 %v5701_v27  ;;  %v5702_v36 = vld [vmem:[%s8995_s5 + $0x28] sm:$0xff]  }
 0x1a4   :  { %5225 = vmatpush3.bf16.msra.mxu0 %v5702_v36 }
 0x1a5   :  { %5226 = vmatprep.subr.bf16.mxu0 %v5703_v52 }
 0x1a6   :  { %1508 = vrot.lane.b32.xlu1 %v6701_v24, %s6006_s23 }
 0x1a7   :  { %1355 = vrot.lane.b32.xlu0 %v6722_v30, %s6004_s3  ;;  %v668_v30 = vsel %vm6273_vm5, 0, %v667_v26  ;;  %vm1217_vm5 = vcmask 1044224  }
 0x1a8   :  { %669 = vst [vmem:[#allocation2 + $0xa0] sm:$0x1] %v668_v30  ;;  %5227 = vmatpush3.bf16.msra.mxu0 %v5704_v48  ;;  %vm7153_vm9 = vmand %vm1217_vm5, %vm805_vm10 }
 0x1a9   :  { %851 = vst.msk [vmem:[#allocation2 + $0xa0] sm:$0xf] %vm849_vm3, %v9028_v3  ;;  %5228 = vmatprep.subr.bf16.mxu0 %v5705_v1 }
 0x1aa   :  { %1187 = vrot.lane.b32.xlu1 %v6724_v55, %s6005_s22  ;;  %910 = vst.msk [vmem:[#allocation2 + $0xa0] sm:$0xf] %vm908_vm6, %v9028_v3 }
 0x1ab   :  { %1506 = vrot.lane.b32.xlu0 %v6724_v55, %s6006_s23  ;;  %v5706_v55 = vld [vmem:[%s8995_s5 + $0x38] sm:$0xff]  }
 0x1ac   :  { %v857_v25 = vpop.permute.xlu1 %856  ;;  %5229 = vmatpush3.bf16.msra.mxu0 %v5706_v55 }
 0x1ad   :  { %896 = vst.msk [vmem:[#allocation2 + $0x3c] sm:$0xf] %vm849_vm3, %v857_v25  ;;  %v853_v13 = vpop.permute.xlu0 %852  ;;  %5478 = vmatprep.subr.bf16.mxu0 %v7071_v14 }
 0x1ae   :  { %894 = vst.msk [vmem:[#allocation2 + $0x14] sm:$0xf] %vm849_vm3, %v853_v13  ;;  %1510 = vrot.lane.b32.xlu1 %v6730_v39, %s6006_s23 }
 0x1af   :  { %1185 = vrot.lane.b32.xlu0 %v6732_v42, %s6005_s22 }
 0x1b0   :  { %v859_v33 = vpop.permute.xlu1 %858 }
 0x1b1   :  { %897 = vst.msk [vmem:[#allocation2 + $0x50] sm:$0xf] %vm849_vm3, %v859_v33  ;;  %v855_v50 = vpop.permute.xlu0 %854  ;;  %v938_v53 = vld [vmem:[#allocation2 + $0xa0] sm:$0x8]  ;;  %v1131_v16 = vld [vmem:[#allocation2 + $0xa0] sm:$0x1] }
 0x1b2   :  { %895 = vst.msk [vmem:[#allocation2 + $0x28] sm:$0xf] %vm849_vm3, %v855_v50  ;;  %1189 = vrot.lane.b32.xlu1 %v6701_v24, %s6005_s22  ;;  %v939_v7 = vsel %vm6881_vm2, 0, %v938_v53  ;;  %v1132_v59 = vsel %vm6874_vm1, 0, %v1131_v16 }
 0x1b3   :  { %1512 = vrot.lane.b32.xlu0 %v6752_v63, %s6006_s23  ;;  %940 = vst [vmem:[#allocation2 + $0xa0] sm:$0x8] %v939_v7  ;;  %1133 = vst [vmem:[#allocation2 + $0xa0] sm:$0x1] %v1132_v59 }
 0x1b4   :  { %v923_v32 = vld [vmem:[#allocation2 + $0x3c] sm:$0x8]  ;;  %v865_v42 = vpop.permute.xlu1 %864 }
 0x1b5   :  { %v924_v34 = vsel %vm6881_vm2, 0, %v923_v32  ;;  %v917_v5 = vld [vmem:[#allocation2 + $0x14] sm:$0x8]  ;;  %900 = vst.msk [vmem:[#allocation2 + $0x8c] sm:$0xf] %vm849_vm3, %v865_v42  ;;  %v861_v58 = vpop.permute.xlu0 %860 }
 0x1b6   :  { %925 = vst [vmem:[#allocation2 + $0x3c] sm:$0x8] %v924_v34  ;;  %v918_v24 = vsel %vm6881_vm2, 0, %v917_v5  ;;  %898 = vst.msk [vmem:[#allocation2 + $0x64] sm:$0xf] %vm849_vm3, %v861_v58  ;;  %1357 = vrot.lane.b32.xlu1 %v993_v60, %s6004_s3 }
 0x1b7   :  { %919 = vst [vmem:[#allocation2 + $0x14] sm:$0x8] %v918_v24  ;;  %1191 = vrot.lane.b32.xlu0 %v6730_v39, %s6005_s22  ;;  %v1219_v34 = vld [vmem:[#allocation2] sm:$0xf] }
 0x1b8   :  { %v926_v47 = vld [vmem:[#allocation2 + $0x50] sm:$0x8]  ;;  %v7052_v9 = vpop.permute.xlu1 %1580 }
 0x1b9   :  { %v927_v20 = vsel %vm6881_vm2, 0, %v926_v47  ;;  %v920_v0 = vld [vmem:[#allocation2 + $0x28] sm:$0x8]  ;;  %v863_v45 = vpop.permute.xlu0 %862 }
 0x1ba   :  { %928 = vst [vmem:[#allocation2 + $0x50] sm:$0x8] %v927_v20  ;;  %v921_v40 = vsel %vm6881_vm2, 0, %v920_v0  ;;  %899 = vst.msk [vmem:[#allocation2 + $0x78] sm:$0xf] %vm849_vm3, %v863_v45  ;;  %1032 = vrot.lane.b32.xlu1 %v993_v60, %s6006_s23 }
 0x1bb   :  { %922 = vst [vmem:[#allocation2 + $0x28] sm:$0x8] %v921_v40  ;;  %1359 = vrot.lane.b32.xlu0 %v6766_v4, %s6004_s3 }
 0x1bc   :  { %v935_v39 = vld [vmem:[#allocation2 + $0x8c] sm:$0x8]  ;;  %v7062_v43 = vpop.permute.xlu1 %1586 }
 0x1bd   :  { %v936_v61 = vsel %vm6881_vm2, 0, %v935_v39  ;;  %v929_v23 = vld [vmem:[#allocation2 + $0x64] sm:$0x8]  ;;  %v7066_v37 = vpop.permute.xlu0 %1582 }
 0x1be   :  { %937 = vst [vmem:[#allocation2 + $0x8c] sm:$0x8] %v936_v61  ;;  %v930_v56 = vsel %vm6881_vm2, 0, %v929_v23  ;;  %1363 = vrot.lane.b32.xlu1 %v6774_v17, %s6004_s3  ;;  %v1063_v39 = vld [vmem:[#allocation2 + $0x14] sm:$0xf] }
 0x1bf   :  { %931 = vst [vmem:[#allocation2 + $0x64] sm:$0x8] %v930_v56  ;;  %1361 = vrot.lane.b32.xlu0 %v6777_v29, %s6004_s3 }
 0x1c0   :  { %v7080_v19 = vpop.permute.xlu1 %1590 }
 0x1c1   :  { %v932_v62 = vld [vmem:[#allocation2 + $0x78] sm:$0x8]  ;;  %v7082_v35 = vpop.permute.xlu0 %1584 }
 0x1c2   :  { %v933_v12 = vsel %vm6881_vm2, 0, %v932_v62  ;;  %1036 = vrot.lane.b32.xlu1 %v6777_v29, %s6006_s23 }
 0x1c3   :  { %934 = vst [vmem:[#allocation2 + $0x78] sm:$0x8] %v933_v12  ;;  %1034 = vrot.lane.b32.xlu0 %v6766_v4, %s6006_s23  ;;  %v1400_v12 = vld [vmem:[#allocation2 + $0x40] sm:$0xf] }
 0x1c4   :  { %v7090_v22 = vpop.permute.xlu1 %1592 }
 0x1c5   :  { %v7092_v44 = vpop.permute.xlu0 %1588 }
 0x1c6   :  { %1367 = vrot.lane.b32.xlu1 %v6791_v38, %s6004_s3 }
 0x1c7   :  { %1365 = vrot.lane.b32.xlu0 %v6784_v31, %s6004_s3 }
 0x1c8   :  { %v869_v28 = vpop.permute.xlu1 %868 }
 0x1c9   :  { %902 = vst.msk [vmem:[#allocation2 + $0xc8] sm:$0xf] %vm849_vm3, %v869_v28  ;;  %v867_v8 = vpop.permute.xlu0 %866 }
 0x1ca   :  { %901 = vst.msk [vmem:[#allocation2 + $0xb4] sm:$0xf] %vm849_vm3, %v867_v8  ;;  %1040 = vrot.lane.b32.xlu1 %v6784_v31, %s6006_s23 }
 0x1cb   :  { %1038 = vrot.lane.b32.xlu0 %v6774_v17, %s6006_s23 }
 0x1cc   :  { %v875_v4 = vpop.permute.xlu1 %874 }
 0x1cd   :  { %905 = vst.msk [vmem:[#allocation2 + $0x104] sm:$0xf] %vm849_vm3, %v875_v4  ;;  %v871_v29 = vpop.permute.xlu0 %870 }
 0x1ce   :  { %903 = vst.msk [vmem:[#allocation2 + $0xdc] sm:$0xf] %vm849_vm3, %v871_v29  ;;  %1042 = vrot.lane.b32.xlu1 %v6791_v38, %s6006_s23  ;;  %v1394_v29 = vld [vmem:[#allocation2 + $0x18] sm:$0xf] }
 0x1cf   :  { %1369 = vrot.lane.b32.xlu0 %v6816_v49, %s6004_s3 }
 0x1d0   :  { %v944_v41 = vld [vmem:[#allocation2 + $0xc8] sm:$0x8]  ;;  %v879_v27 = vpop.permute.xlu1 %878 }
 0x1d1   :  { %v945_v31 = vsel %vm6881_vm2, 0, %v944_v41  ;;  %v941_v36 = vld [vmem:[#allocation2 + $0xb4] sm:$0x8]  ;;  %v873_v52 = vpop.permute.xlu0 %872  ;;  %907 = vst.msk [vmem:[#allocation2 + $0x12c] sm:$0xf] %vm849_vm3, %v879_v27 }
 0x1d2   :  { %946 = vst [vmem:[#allocation2 + $0xc8] sm:$0x8] %v945_v31  ;;  %v942_v17 = vsel %vm6881_vm2, 0, %v941_v36  ;;  %904 = vst.msk [vmem:[#allocation2 + $0xf0] sm:$0xf] %vm849_vm3, %v873_v52  ;;  %1516 = vrot.lane.b32.xlu1 %v6793_v10, %s6006_s23 }
 0x1d3   :  { %943 = vst [vmem:[#allocation2 + $0xb4] sm:$0x8] %v942_v17  ;;  %1044 = vrot.lane.b32.xlu0 %v6816_v49, %s6006_s23  ;;  %v1069_v36 = vld [vmem:[#allocation2 + $0x3c] sm:$0xf] }
 0x1d4   :  { %v953_v38 = vld [vmem:[#allocation2 + $0x104] sm:$0x8]  ;;  %v7120_v26 = vpop.permute.xlu1 %1596 }
 0x1d5   :  { %v954_v30 = vsel %vm6881_vm2, 0, %v953_v38  ;;  %v947_v25 = vld [vmem:[#allocation2 + $0xdc] sm:$0x8]  ;;  %v877_v48 = vpop.permute.xlu0 %876 }
 0x1d6   :  { %955 = vst [vmem:[#allocation2 + $0x104] sm:$0x8] %v954_v30  ;;  %v948_v13 = vsel %vm6881_vm2, 0, %v947_v25  ;;  %906 = vst.msk [vmem:[#allocation2 + $0x118] sm:$0xf] %vm849_vm3, %v877_v48  ;;  %1195 = vrot.lane.b32.xlu1 %v6798_v54, %s6005_s22 }
 0x1d7   :  { %949 = vst [vmem:[#allocation2 + $0xdc] sm:$0x8] %v948_v13  ;;  %1514 = vrot.lane.b32.xlu0 %v6798_v54, %s6006_s23  ;;  %v1397_v30 = vld [vmem:[#allocation2 + $0x2c] sm:$0xf] }
 0x1d8   :  { %v959_v49 = vld [vmem:[#allocation2 + $0x12c] sm:$0x8]  ;;  %v7131_v1 = vpop.permute.xlu1 %1598 }
 0x1d9   :  { %v950_v33 = vld [vmem:[#allocation2 + $0xf0] sm:$0x8]  ;;  %v960_v55 = vsel %vm6881_vm2, 0, %v959_v49  ;;  %v7135_v50 = vpop.permute.xlu0 %1594 }
 0x1da   :  { %v951_v32 = vsel %vm6881_vm2, 0, %v950_v33  ;;  %961 = vst [vmem:[#allocation2 + $0x12c] sm:$0x8] %v960_v55  ;;  %1371 = vrot.lane.b32.xlu1 %v6927_v57, %s6004_s3  ;;  %v1403_v33 = vld [vmem:[#allocation2 + $0x54] sm:$0xf] }
 0x1db   :  { %952 = vst [vmem:[#allocation2 + $0xf0] sm:$0x8] %v951_v32  ;;  %1193 = vrot.lane.b32.xlu0 %v6752_v63, %s6005_s22 }
 0x1dc   :  { %v7143_v54 = vpop.permute.xlu1 %1492 }
 0x1dd   :  { %v956_v42 = vld [vmem:[#allocation2 + $0x118] sm:$0x8]  ;;  %v7145_v21 = vpop.permute.xlu0 %1600 }
 0x1de   :  { %v957_v60 = vsel %vm6881_vm2, 0, %v956_v42  ;;  %1604 = vrot.lane.b32.xlu1 %v6576_v46, %s6005_s22  ;;  %vm7193_vm2 = vmand %vm849_vm3, %vm9016_vm12 }
 0x1df   :  { %958 = vst [vmem:[#allocation2 + $0x118] sm:$0x8] %v957_v60  ;;  %1602 = vrot.lane.b32.xlu0 %v6684_v15, %s6005_s22  ;;  %vm7212_vm3 = vmand %vm1442_vm15, %vm641_vm4  ;;  %v1066_v60 = vld [vmem:[#allocation2 + $0x28] sm:$0xf]  ;;  %vm3157_vm15 = vcmask 519171  }
 0x1e0   :  { %v1170_v63 = vpop.permute.xlu1 %1169  ;;  %vm7294_vm12 = vmand %vm2890_vm11, %vm641_vm4 }
 0x1e1   :  { %v1220_v5 = vsel %vm7153_vm9, %v1170_v63, %v1219_v34  ;;  %v7161_v11 = vpop.permute.xlu0 %1494  ;;  %vm7311_vm11 = vmand %vm3157_vm15, %vm912_vm7  ;;  %vm3096_vm15 = vcmask 1043968  }
 0x1e2   :  { %1221 = vst [vmem:[#allocation2] sm:$0xf] %v1220_v5  ;;  %1197 = vrot.lane.b32.xlu1 %v6793_v10, %s6005_s22 }
 0x1e3   :  { %1518 = vrot.lane.b32.xlu0 %v6920_v18, %s6006_s23 }
 0x1e4   :  { %v7167_v46 = vpop.permute.xlu1 %1498 }
 0x1e5   :  { %v7169_v58 = vpop.permute.xlu0 %1171 }
 0x1e6   :  { %1606 = vrot.lane.b32.xlu1 %v6904_v2, %s6005_s22 }
 0x1e7   :  { %1199 = vrot.lane.b32.xlu0 %v6920_v18, %s6005_s22  ;;  %v1391_v18 = vld [vmem:[#allocation2 + $0x4] sm:$0xf] }
 0x1e8   :  { %v7175_v15 = vpop.permute.xlu1 %1175 }
 0x1e9   :  { %v7177_v53 = vpop.permute.xlu0 %1496 }
 0x1ec   :  { %v7179_v24 = vpop.permute.xlu1 %1502 }
 0x1ed   :  { %v7181_v10 = vpop.permute.xlu0 %1173 }
 0x1f0   :  { %v7183_v7 = vpop.permute.xlu1 %1179 }
 0x1f1   :  { %v7185_v16 = vpop.permute.xlu0 %1500 }
 0x1f4   :  { %v7187_v59 = vpop.permute.xlu1 %1181 }
 0x1f5   :  { %v7189_v47 = vpop.permute.xlu0 %1177 }
 0x1f8   :  { %v1342_v20 = vpop.permute.xlu1 %1341 }
 0x1f9   :  { %v1392_v0 = vsel %vm7193_vm2, %v1342_v20, %v1391_v18  ;;  %v7199_v45 = vpop.permute.xlu0 %1504 }
 0x1fa   :  { %1393 = vst [vmem:[#allocation2 + $0x4] sm:$0xf] %v1392_v0 }
 0x1fc   :  { %v1019_v61 = vpop.permute.xlu1 %1018 }
 0x1fd   :  { %v1064_v23 = vsel %vm7203_vm13, %v1019_v61, %v1063_v39  ;;  %v7209_v56 = vpop.permute.xlu0 %1183  ;;  %v1072_v61 = vld [vmem:[#allocation2 + $0x50] sm:$0xf] }
 0x1fe   :  { %1065 = vst [vmem:[#allocation2 + $0x14] sm:$0xf] %v1064_v23 }
 0x200   :  { %v1348_v28 = vpop.permute.xlu1 %1347 }
 0x201   :  { %v1444_v8 = vld [vmem:[#allocation2 + $0x4] sm:$0x1]  ;;  %v1401_v4 = vsel %vm7193_vm2, %v1348_v28, %v1400_v12  ;;  %v1344_v41 = vpop.permute.xlu0 %1343 }
 0x202   :  { %v1445_v27 = vsel %vm7212_vm3, 0, %v1444_v8  ;;  %1402 = vst [vmem:[#allocation2 + $0x40] sm:$0xf] %v1401_v4  ;;  %v1395_v31 = vsel %vm7193_vm2, %v1344_v41, %v1394_v29  ;;  %v1406_v8 = vld [vmem:[#allocation2 + $0x68] sm:$0xf] }
 0x203   :  { %1446 = vst [vmem:[#allocation2 + $0x4] sm:$0x1] %v1445_v27  ;;  %1396 = vst [vmem:[#allocation2 + $0x18] sm:$0xf] %v1395_v31 }
 0x204   :  { %v1023_v52 = vpop.permute.xlu1 %1022 }
 0x205   :  { %v1110_v17 = vld [vmem:[#allocation2 + $0x14] sm:$0x1]  ;;  %v1070_v38 = vsel %vm7203_vm13, %v1023_v52, %v1069_v36  ;;  %v1346_v25 = vpop.permute.xlu0 %1345  ;;  %v1409_v36 = vld [vmem:[#allocation2 + $0x7c] sm:$0xf] }
 0x206   :  { %v1111_v48 = vsel %vm6874_vm1, 0, %v1110_v17  ;;  %1071 = vst [vmem:[#allocation2 + $0x3c] sm:$0xf] %v1070_v38  ;;  %v1398_v13 = vsel %vm7193_vm2, %v1346_v25, %v1397_v30  ;;  %v1075_v30 = vld [vmem:[#allocation2 + $0x64] sm:$0xf] }
 0x207   :  { %1112 = vst [vmem:[#allocation2 + $0x14] sm:$0x1] %v1111_v48  ;;  %1399 = vst [vmem:[#allocation2 + $0x2c] sm:$0xf] %v1398_v13 }
 0x208   :  { %v1350_v55 = vpop.permute.xlu1 %1349 }
 0x209   :  { %v1453_v32 = vld [vmem:[#allocation2 + $0x40] sm:$0x1]  ;;  %v1404_v42 = vsel %vm7193_vm2, %v1350_v55, %v1403_v33  ;;  %v1021_v34 = vpop.permute.xlu0 %1020 }
 0x20a   :  { %v1535_v63 = vld [vmem:[#allocation2 + $0x4] sm:$0xf]  ;;  %v1454_v5 = vsel %vm7212_vm3, 0, %v1453_v32  ;;  %v1447_v18 = vld [vmem:[#allocation2 + $0x18] sm:$0x1]  ;;  %v1067_v20 = vsel %vm7203_vm13, %v1021_v34, %v1066_v60 }
 0x20b   :  { %1405 = vst [vmem:[#allocation2 + $0x54] sm:$0xf] %v1404_v42  ;;  %v1536_v0 = vsel %vm7230_vm14, %v7143_v54, %v1535_v63  ;;  %1455 = vst [vmem:[#allocation2 + $0x40] sm:$0x1] %v1454_v5  ;;  %v1448_v39 = vsel %vm7212_vm3, 0, %v1447_v18 }
 0x20c   :  { %1068 = vst [vmem:[#allocation2 + $0x28] sm:$0xf] %v1067_v20  ;;  %1537 = vst [vmem:[#allocation2 + $0x4] sm:$0xf] %v1536_v0  ;;  %v1025_v23 = vpop.permute.xlu1 %1024  ;;  %v1081_v34 = vld [vmem:[#allocation2 + $0x8c] sm:$0xf] }
 0x20d   :  { %1449 = vst [vmem:[#allocation2 + $0x18] sm:$0x1] %v1448_v39  ;;  %1622 = vst.msk [vmem:[#allocation2 + $0x4] sm:$0xf] %vm1217_vm5, %v7052_v9  ;;  %v1116_v12 = vld [vmem:[#allocation2 + $0x3c] sm:$0x1]  ;;  %v1073_v28 = vsel %vm7203_vm13, %v1025_v23, %v1072_v61  ;;  %v1352_v4 = vpop.permute.xlu0 %1351 }
 0x20e   :  { %v1222_v29 = vld [vmem:[#allocation2 + $0x14] sm:$0xf]  ;;  %v1117_v54 = vsel %vm6874_vm1, 0, %v1116_v12  ;;  %v1450_v41 = vld [vmem:[#allocation2 + $0x2c] sm:$0x1]  ;;  %v1407_v27 = vsel %vm7193_vm2, %v1352_v4, %v1406_v8 }
 0x20f   :  { %1074 = vst [vmem:[#allocation2 + $0x50] sm:$0xf] %v1073_v28  ;;  %v1223_v31 = vsel %vm7153_vm9, %v7169_v58, %v1222_v29  ;;  %1118 = vst [vmem:[#allocation2 + $0x3c] sm:$0x1] %v1117_v54  ;;  %v1451_v9 = vsel %vm7212_vm3, 0, %v1450_v41 }
 0x210   :  { %1408 = vst [vmem:[#allocation2 + $0x68] sm:$0xf] %v1407_v27  ;;  %1224 = vst [vmem:[#allocation2 + $0x14] sm:$0xf] %v1223_v31  ;;  %v1354_v52 = vpop.permute.xlu1 %1353  ;;  %v1078_v18 = vld [vmem:[#allocation2 + $0x78] sm:$0xf] }
 0x211   :  { %1452 = vst [vmem:[#allocation2 + $0x2c] sm:$0x1] %v1451_v9  ;;  %v1410_v38 = vsel %vm7193_vm2, %v1354_v52, %v1409_v36  ;;  %v1027_v25 = vpop.permute.xlu0 %1026  ;;  %v1412_v4 = vld [vmem:[#allocation2 + $0x90] sm:$0xf] }
 0x212   :  { %v1456_v17 = vld [vmem:[#allocation2 + $0x54] sm:$0x1]  ;;  %v1544_v48 = vld [vmem:[#allocation2 + $0x40] sm:$0xf]  ;;  %1411 = vst [vmem:[#allocation2 + $0x7c] sm:$0xf] %v1410_v38  ;;  %v1076_v33 = vsel %vm7203_vm13, %v1027_v25, %v1075_v30 }
 0x213   :  { %v1457_v13 = vsel %vm7212_vm3, 0, %v1456_v17  ;;  %v1113_v58 = vld [vmem:[#allocation2 + $0x28] sm:$0x1]  ;;  %v1545_v55 = vsel %vm7230_vm14, %v7167_v46, %v1544_v48  ;;  %1077 = vst [vmem:[#allocation2 + $0x64] sm:$0xf] %v1076_v33 }
 0x214   :  { %v1538_v32 = vld [vmem:[#allocation2 + $0x18] sm:$0xf]  ;;  %1458 = vst [vmem:[#allocation2 + $0x54] sm:$0x1] %v1457_v13  ;;  %v1114_v42 = vsel %vm6874_vm1, 0, %v1113_v58  ;;  %v1031_v63 = vpop.permute.xlu1 %1030  ;;  %v1745_v38 = vld [vmem:[#allocation2] sm:$0xff] }
 0x215   :  { %1546 = vst [vmem:[#allocation2 + $0x40] sm:$0xf] %v1545_v55  ;;  %v1539_v60 = vsel %vm7230_vm14, %v7161_v11, %v1538_v32  ;;  %1115 = vst [vmem:[#allocation2 + $0x28] sm:$0x1] %v1114_v42  ;;  %v1082_v46 = vsel %vm7203_vm13, %v1031_v63, %v1081_v34  ;;  %v1029_v20 = vpop.permute.xlu0 %1028  ;;  %v1243_v58 = vld [vmem:[#allocation2 + $0xa0] sm:$0xf] }
 0x216   :  { %1625 = vst.msk [vmem:[#allocation2 + $0x40] sm:$0xf] %vm1217_vm5, %v7062_v43  ;;  %1540 = vst [vmem:[#allocation2 + $0x18] sm:$0xf] %v1539_v60  ;;  %v1119_v5 = vld [vmem:[#allocation2 + $0x50] sm:$0x1]  ;;  %v1079_v61 = vsel %vm7203_vm13, %v1029_v20, %v1078_v18 }
 0x217   :  { %1623 = vst.msk [vmem:[#allocation2 + $0x18] sm:$0xf] %vm1217_vm5, %v7066_v37  ;;  %v1228_v0 = vld [vmem:[#allocation2 + $0x3c] sm:$0xf]  ;;  %v1120_v11 = vsel %vm6874_vm1, 0, %v1119_v5  ;;  %v5718_v42 = vld [vmem:[%s8995_s5 + $0x88] sm:$0xff]  }
 0x218   :  { %v1459_v39 = vld [vmem:[#allocation2 + $0x68] sm:$0x1]  ;;  %1083 = vst [vmem:[#allocation2 + $0x8c] sm:$0xf] %v1082_v46  ;;  %v1229_v43 = vsel %vm7153_vm9, %v7175_v15, %v1228_v0  ;;  %v1541_v23 = vld [vmem:[#allocation2 + $0x2c] sm:$0xf]  ;;  %v7290_v28 = vpop.permute.xlu1 %1508 }
 0x219   :  { %1121 = vst [vmem:[#allocation2 + $0x50] sm:$0x1] %v1120_v11  ;;  %v1460_v12 = vsel %vm7212_vm3, 0, %v1459_v39  ;;  %1080 = vst [vmem:[#allocation2 + $0x78] sm:$0xf] %v1079_v61  ;;  %v1542_v37 = vsel %vm7230_vm14, %v7177_v53, %v1541_v23  ;;  %v1356_v29 = vpop.permute.xlu0 %1355 }
 0x21a   :  { %1230 = vst [vmem:[#allocation2 + $0x3c] sm:$0xf] %v1229_v43  ;;  %1461 = vst [vmem:[#allocation2 + $0x68] sm:$0x1] %v1460_v12  ;;  %v1462_v8 = vld [vmem:[#allocation2 + $0x7c] sm:$0x1]  ;;  %v1413_v31 = vsel %vm7193_vm2, %v1356_v29, %v1412_v4 }
 0x21b   :  { %1543 = vst [vmem:[#allocation2 + $0x2c] sm:$0xf] %v1542_v37  ;;  %v2895_v15 = vld [vmem:[#allocation2 + $0x14] sm:$0x1]  ;;  %v1463_v53 = vsel %vm7212_vm3, 0, %v1462_v8 }
 0x21c   :  { %1624 = vst.msk [vmem:[#allocation2 + $0x2c] sm:$0xf] %vm1217_vm5, %v7082_v35  ;;  %v1547_v41 = vld [vmem:[#allocation2 + $0x54] sm:$0xf]  ;;  %v1122_v27 = vld [vmem:[#allocation2 + $0x64] sm:$0x1] }
 0x21d   :  { %v1548_v9 = vsel %vm7230_vm14, %v7185_v16, %v1547_v41  ;;  %v1225_v36 = vld [vmem:[#allocation2 + $0x28] sm:$0xf]  ;;  %1464 = vst [vmem:[#allocation2 + $0x7c] sm:$0x1] %v1463_v53  ;;  %v1123_v52 = vsel %vm6874_vm1, 0, %v1122_v27  ;;  %v7320_v16 = vpop.permute.xlu1 %1187  ;;  %v7324_v25 = vpop.permute.xlu0 %1506 }
 0x21e   :  { %1414 = vst [vmem:[#allocation2 + $0x90] sm:$0xf] %v1413_v31  ;;  %1549 = vst [vmem:[#allocation2 + $0x54] sm:$0xf] %v1548_v9  ;;  %v1226_v17 = vsel %vm7153_vm9, %v7181_v10, %v1225_v36  ;;  %v1747_v48 = vld [vmem:[#allocation2 + $0x14] sm:$0xff]  ;;  %v2896_v10 = vsel %vm7294_vm12, 0, %v2895_v15 }
 0x21f   :  { %1124 = vst [vmem:[#allocation2 + $0x64] sm:$0x1] %v1123_v52  ;;  %1440 = vst.msk [vmem:[#allocation2 + $0x90] sm:$0xf] %vm908_vm6, %v9028_v3  ;;  %v1128_v30 = vld [vmem:[#allocation2 + $0x8c] sm:$0x1] }
 0x220   :  { %1626 = vst.msk [vmem:[#allocation2 + $0x54] sm:$0xf] %vm1217_vm5, %v7092_v44  ;;  %1227 = vst [vmem:[#allocation2 + $0x28] sm:$0xf] %v1226_v17  ;;  %v5707_v13 = vld [vmem:[#allocation2 + $0x4] ss:$20 sps:$4 sm:$0xff]   ;;  %v4988_v44 = vcombine.low %v1745_v38, %v1747_v48 }
 0x221   :  { %v1231_v33 = vld [vmem:[#allocation2 + $0x50] sm:$0xf]  ;;  %v1129_v55 = vsel %vm6874_vm1, 0, %v1128_v30  ;;  %v1125_v32 = vld [vmem:[#allocation2 + $0x78] sm:$0x1]  ;;  %2097 = vmatprep.mubr.bf16.mxu0 %v5707_v13  ;;  %v7347_v20 = vpop.permute.xlu1 %1510  ;;  %v1186_v0 = vpop.permute.xlu0 %1185  ;;  %v1751_v37 = vld [vmem:[#allocation2 + $0x3c] sm:$0xff] }
 0x222   :  { %2888 = vst.msk [vmem:[#allocation2] sm:$0xf] %vm2887_vm8, %v9028_v3  ;;  %3155 = vst.msk [vmem:[#allocation2 + $0x4] sm:$0xf] %vm2887_vm8, %v9028_v3  ;;  %v1232_v60 = vsel %vm7153_vm9, %v7189_v47, %v1231_v33  ;;  %v1550_v34 = vld [vmem:[#allocation2 + $0x68] sm:$0xf]  ;;  %2098 = vmatmul.mubr.bf16.vlgmr.msra.gmra.mrb[4].mxu0 %v4988_v44 }
 0x223   :  { %2897 = vst [vmem:[#allocation2 + $0x14] sm:$0x1] %v2896_v10  ;;  %1130 = vst [vmem:[#allocation2 + $0x8c] sm:$0x1] %v1129_v55  ;;  %v1126_v63 = vsel %vm6874_vm1, 0, %v1125_v32  ;;  %v1551_v46 = vsel %vm7230_vm14, %v7179_v24, %v1550_v34  ;;  %5479 = vmatpush3.bf16.msra.mxu0 %v7071_v14  ;;  %v1244_v24 = vsel %vm7153_vm9, %v1186_v0, %v1243_v58 }
 0x224   :  { %v3162_v5 = vld [vmem:[#allocation2 + $0x18] sm:$0x8]  ;;  %1233 = vst [vmem:[#allocation2 + $0x50] sm:$0xf] %v1232_v60  ;;  %1127 = vst [vmem:[#allocation2 + $0x78] sm:$0x1] %v1126_v63  ;;  %5480 = vmatprep.subr.bf16.mxu0 %v5718_v42 }
 0x225   :  { %v3163_v18 = vsel %vm7311_vm11, 0, %v3162_v5  ;;  %v3168_v47 = vld [vmem:[#allocation2 + $0x40] sm:$0x8]  ;;  %1552 = vst [vmem:[#allocation2 + $0x68] sm:$0xf] %v1551_v46  ;;  %v7364_v4 = vpop.permute.xlu1 %1189 }
 0x226   :  { %3164 = vst [vmem:[#allocation2 + $0x18] sm:$0x8] %v3163_v18  ;;  %v3165_v11 = vld [vmem:[#allocation2 + $0x2c] sm:$0x8]  ;;  %v2901_v39 = vld [vmem:[#allocation2 + $0x3c] sm:$0x1] }
 0x227   :  { %1627 = vst.msk [vmem:[#allocation2 + $0x68] sm:$0xf] %vm1217_vm5, %v7080_v19  ;;  %v1553_v61 = vld [vmem:[#allocation2 + $0x7c] sm:$0xf]  ;;  %v1234_v23 = vld [vmem:[#allocation2 + $0x64] sm:$0xf]  ;;  %5481 = vmatpush3.bf16.msra.mxu0 %v5718_v42 }
 0x228   :  { %v1554_v43 = vsel %vm7230_vm14, %v7199_v45, %v1553_v61  ;;  %v1465_v12 = vld [vmem:[#allocation2 + $0x90] sm:$0x1]  ;;  %1245 = vst [vmem:[#allocation2 + $0xa0] sm:$0xf] %v1244_v24  ;;  %v3169_v14 = vsel %vm7311_vm11, 0, %v3168_v47  ;;  %v1235_v19 = vsel %vm7153_vm9, %v7183_v7, %v1234_v23  ;;  %v1749_v29 = vld [vmem:[#allocation2 + $0x28] sm:$0xff]  ;;  %v7372_v7 = vpop.permute.xlu0 %1512 }
 0x229   :  { %1555 = vst [vmem:[#allocation2 + $0x7c] sm:$0xf] %v1554_v43  ;;  %v1466_v8 = vsel %vm7212_vm3, 0, %v1465_v12  ;;  %v5709_v15 = vld [vmem:[#allocation2 + $0x2c] ss:$20 sps:$4 sm:$0xff]   ;;  %v3166_v45 = vsel %vm7311_vm11, 0, %v3165_v11  ;;  %v4991_v27 = vcombine.low %v1749_v29, %v1751_v37  ;;  %v1358_v48 = vpop.permute.xlu1 %1357 }
 0x22a   :  { %v2902_v41 = vsel %vm7294_vm12, 0, %v2901_v39  ;;  %1628 = vst.msk [vmem:[#allocation2 + $0x7c] sm:$0xf] %vm1217_vm5, %v7090_v22  ;;  %1236 = vst [vmem:[#allocation2 + $0x64] sm:$0xf] %v1235_v19  ;;  %2105 = vmatprep.mubr.bf16.mxu0 %v5709_v15 }
 0x22b   :  { %1467 = vst [vmem:[#allocation2 + $0x90] sm:$0x1] %v1466_v8  ;;  %v2892_v53 = vld [vmem:[#allocation2] sm:$0x1]  ;;  %3167 = vst [vmem:[#allocation2 + $0x2c] sm:$0x8] %v3166_v45  ;;  %2106 = vmatmul.mubr.bf16.gmra.mrb[8].mxu0 %v4991_v27 }
 0x22c   :  { %3170 = vst [vmem:[#allocation2 + $0x40] sm:$0x8] %v3169_v14  ;;  %v2898_v31 = vld [vmem:[#allocation2 + $0x28] sm:$0x1]  ;;  %2903 = vst [vmem:[#allocation2 + $0x3c] sm:$0x1] %v2902_v41 }
 0x22d   :  { %v1240_v9 = vld [vmem:[#allocation2 + $0x8c] sm:$0xf]  ;;  %1578 = vst.msk [vmem:[#allocation2 + $0x90] sm:$0xf] %vm1217_vm5, %v9028_v3  ;;  %v2893_v36 = vsel %vm7294_vm12, 0, %v2892_v53  ;;  %v2899_v22 = vsel %vm7294_vm12, 0, %v2898_v31  ;;  %v1033_v32 = vpop.permute.xlu1 %1032 }
 0x22e   :  { %v1241_v52 = vsel %vm7153_vm9, %v7209_v56, %v1240_v9  ;;  %v1237_v17 = vld [vmem:[#allocation2 + $0x78] sm:$0xf]  ;;  %2894 = vst [vmem:[#allocation2] sm:$0x1] %v2893_v36  ;;  %2900 = vst [vmem:[#allocation2 + $0x28] sm:$0x1] %v2899_v22  ;;  %v7390_v56 = vpop.permute.xlu0 %1191 }
 0x22f   :  { %1242 = vst [vmem:[#allocation2 + $0x8c] sm:$0xf] %v1241_v52  ;;  %v1238_v38 = vsel %vm7153_vm9, %v7187_v59, %v1237_v17  ;;  %3097 = vst.msk [vmem:[#allocation2] sm:$0xf] %vm3096_vm15, %v9028_v3  ;;  %v1415_v30 = vld [vmem:[#allocation2 + $0xa4] sm:$0xf] }
 0x230   :  { %v3171_v13 = vld [vmem:[#allocation2 + $0x54] sm:$0x8]  ;;  %1239 = vst [vmem:[#allocation2 + $0x78] sm:$0xf] %v1238_v38  ;;  %v1416_v58 = vsel %vm7193_vm2, %v1358_v48, %v1415_v30  ;;  %v3174_v10 = vld [vmem:[#allocation2 + $0x68] sm:$0x8] }
 0x231   :  { %v2904_v33 = vld [vmem:[#allocation2 + $0x50] sm:$0x1]  ;;  %1417 = vst [vmem:[#allocation2 + $0xa4] sm:$0xf] %v1416_v58  ;;  %v1084_v55 = vld [vmem:[#allocation2 + $0xb4] sm:$0xf]  ;;  %v1364_v37 = vpop.permute.xlu1 %1363 }
 0x232   :  { %v3172_v59 = vsel %vm7311_vm11, 0, %v3171_v13  ;;  %v1753_v44 = vld [vmem:[#allocation2 + $0x50] sm:$0xff]  ;;  %v1755_v42 = vld [vmem:[#allocation2 + $0x64] sm:$0xff]  ;;  %v3175_v34 = vsel %vm7311_vm11, 0, %v3174_v10  ;;  %v2905_v63 = vsel %vm7294_vm12, 0, %v2904_v33  ;;  %v1085_v5 = vsel %vm7203_vm13, %v1033_v32, %v1084_v55  ;;  %v1360_v18 = vpop.permute.xlu0 %1359 }
 0x233   :  { %v5712_v60 = vld [vmem:[#allocation2 + $0x54] ss:$20 sps:$4 sm:$0xff]   ;;  %v1418_v46 = vld [vmem:[#allocation2 + $0xb8] sm:$0xf]  ;;  %v4994_v47 = vcombine.low %v1753_v44, %v1755_v42  ;;  %v3177_v0 = vld [vmem:[#allocation2 + $0x7c] sm:$0x8] }
 0x234   :  { %3173 = vst [vmem:[#allocation2 + $0x54] sm:$0x8] %v3172_v59  ;;  %3176 = vst [vmem:[#allocation2 + $0x68] sm:$0x8] %v3175_v34  ;;  %v3180_v11 = vld [vmem:[#allocation2 + $0x90] sm:$0x8]  ;;  %v1419_v39 = vsel %vm7193_vm2, %v1360_v18, %v1418_v46  ;;  %2113 = vmatprep.mubr.bf16.mxu0 %v5712_v60 }
 0x235   :  { %2906 = vst [vmem:[#allocation2 + $0x50] sm:$0x1] %v2905_v63  ;;  %1086 = vst [vmem:[#allocation2 + $0xb4] sm:$0xf] %v1085_v5  ;;  %v3181_v61 = vsel %vm7311_vm11, 0, %v3180_v11  ;;  %2114 = vmatmul.mubr.bf16.gmra.mrb[12].mxu0 %v4994_v47  ;;  %v3178_v8 = vsel %vm7311_vm11, 0, %v3177_v0  ;;  %v1037_v17 = vpop.permute.xlu1 %1036 }
 0x236   :  { %v2907_v24 = vld [vmem:[#allocation2 + $0x64] sm:$0x1]  ;;  %1420 = vst [vmem:[#allocation2 + $0xb8] sm:$0xf] %v1419_v39  ;;  %v1424_v43 = vld [vmem:[#allocation2 + $0xe0] sm:$0xf]  ;;  %v1362_v53 = vpop.permute.xlu0 %1361 }
 0x237   :  { %v2913_v23 = vld [vmem:[#allocation2 + $0x8c] sm:$0x1]  ;;  %v2908_v12 = vsel %vm7294_vm12, 0, %v2907_v24  ;;  %v5714_v14 = vld [vmem:[#allocation2 + $0x7c] ss:$20 sps:$4 sm:$0xff]   ;;  %v1425_v45 = vsel %vm7193_vm2, %v1364_v37, %v1424_v43 }
 0x238   :  { %v2914_v19 = vsel %vm7294_vm12, 0, %v2913_v23  ;;  %2909 = vst [vmem:[#allocation2 + $0x64] sm:$0x1] %v2908_v12  ;;  %v2910_v29 = vld [vmem:[#allocation2 + $0x78] sm:$0x1]  ;;  %2121 = vmatprep.mubr.bf16.mxu0 %v5714_v14 }
 0x239   :  { %v1468_v15 = vld [vmem:[#allocation2 + $0xa4] sm:$0x1]  ;;  %v1421_v41 = vld [vmem:[#allocation2 + $0xcc] sm:$0xf]  ;;  %2915 = vst [vmem:[#allocation2 + $0x8c] sm:$0x1] %v2914_v19  ;;  %v1368_v44 = vpop.permute.xlu1 %1367 }
 0x23a   :  { %3179 = vst [vmem:[#allocation2 + $0x7c] sm:$0x8] %v3178_v8  ;;  %3182 = vst [vmem:[#allocation2 + $0x90] sm:$0x8] %v3181_v61  ;;  %v2911_v27 = vsel %vm7294_vm12, 0, %v2910_v29  ;;  %v1469_v31 = vsel %vm7212_vm3, 0, %v1468_v15  ;;  %v1422_v9 = vsel %vm7193_vm2, %v1362_v53, %v1421_v41  ;;  %v1035_v13 = vpop.permute.xlu0 %1034 }
 0x23b   :  { %1426 = vst [vmem:[#allocation2 + $0xe0] sm:$0xf] %v1425_v45  ;;  %2912 = vst [vmem:[#allocation2 + $0x78] sm:$0x1] %v2911_v27  ;;  %v1090_v52 = vld [vmem:[#allocation2 + $0xdc] sm:$0xf] }
 0x23c   :  { %1470 = vst [vmem:[#allocation2 + $0xa4] sm:$0x1] %v1469_v31  ;;  %1423 = vst [vmem:[#allocation2 + $0xcc] sm:$0xf] %v1422_v9  ;;  %v1134_v38 = vld [vmem:[#allocation2 + $0xb4] sm:$0x1]  ;;  %v1091_v30 = vsel %vm7203_vm13, %v1037_v17, %v1090_v52 }
 0x23d   :  { %v1087_v48 = vld [vmem:[#allocation2 + $0xc8] sm:$0xf]  ;;  %v1135_v58 = vsel %vm6874_vm1, 0, %v1134_v38  ;;  %v1471_v10 = vld [vmem:[#allocation2 + $0xb8] sm:$0x1]  ;;  %v1041_v61 = vpop.permute.xlu1 %1040 }
 0x23e   :  { %1092 = vst [vmem:[#allocation2 + $0xdc] sm:$0xf] %v1091_v30  ;;  %v1088_v33 = vsel %vm7203_vm13, %v1035_v13, %v1087_v48  ;;  %1136 = vst [vmem:[#allocation2 + $0xb4] sm:$0x1] %v1135_v58  ;;  %v1472_v59 = vsel %vm7212_vm3, 0, %v1471_v10  ;;  %v1366_v63 = vpop.permute.xlu0 %1365 }
 0x23f   :  { %1089 = vst [vmem:[#allocation2 + $0xc8] sm:$0xf] %v1088_v33  ;;  %1473 = vst [vmem:[#allocation2 + $0xb8] sm:$0x1] %v1472_v59  ;;  %v1430_v32 = vld [vmem:[#allocation2 + $0x108] sm:$0xf] }
 0x240   :  { %v1431_v60 = vsel %vm7193_vm2, %v1368_v44, %v1430_v32  ;;  %v1427_v34 = vld [vmem:[#allocation2 + $0xf4] sm:$0xf]  ;;  %v1096_v39 = vld [vmem:[#allocation2 + $0x104] sm:$0xf]  ;;  %v1093_v23 = vld [vmem:[#allocation2 + $0xf0] sm:$0xf] }
 0x241   :  { %v1759_v22 = vld [vmem:[#allocation2 + $0x8c] sm:$0xff]  ;;  %1432 = vst [vmem:[#allocation2 + $0x108] sm:$0xf] %v1431_v60  ;;  %v1428_v47 = vsel %vm7193_vm2, %v1366_v63, %v1427_v34  ;;  %v1097_v43 = vsel %vm7203_vm13, %v1041_v61, %v1096_v39  ;;  %v1099_v45 = vld [vmem:[#allocation2 + $0x118] sm:$0xf]  ;;  %v1043_v41 = vpop.permute.xlu1 %1042 }
 0x242   :  { %v1757_v36 = vld [vmem:[#allocation2 + $0x78] sm:$0xff]  ;;  %v1477_v42 = vld [vmem:[#allocation2 + $0xe0] sm:$0x1]  ;;  %1429 = vst [vmem:[#allocation2 + $0xf4] sm:$0xf] %v1428_v47  ;;  %v1039_v12 = vpop.permute.xlu0 %1038  ;;  %v1100_v27 = vsel %vm7203_vm13, %v1043_v41, %v1099_v45 }
 0x243   :  { %v4997_v55 = vcombine.low %v1757_v36, %v1759_v22  ;;  %v1556_v5 = vld [vmem:[#allocation2 + $0xa4] sm:$0xf]  ;;  %v1478_v46 = vsel %vm7212_vm3, 0, %v1477_v42  ;;  %v1474_v18 = vld [vmem:[#allocation2 + $0xcc] sm:$0x1]  ;;  %v1094_v19 = vsel %vm7203_vm13, %v1039_v12, %v1093_v23 }
 0x244   :  { %v1557_v0 = vsel %vm7230_vm14, %v7324_v25, %v1556_v5  ;;  %1479 = vst [vmem:[#allocation2 + $0xe0] sm:$0x1] %v1478_v46  ;;  %v1475_v11 = vsel %vm7212_vm3, 0, %v1474_v18  ;;  %1098 = vst [vmem:[#allocation2 + $0x104] sm:$0xf] %v1097_v43 }
 0x245   :  { %2122 = vmatmul.mubr.bf16.gmra.mrb[16].mxu0 %v4997_v55  ;;  %1558 = vst [vmem:[#allocation2 + $0xa4] sm:$0xf] %v1557_v0  ;;  %1476 = vst [vmem:[#allocation2 + $0xcc] sm:$0x1] %v1475_v11  ;;  %v1140_v24 = vld [vmem:[#allocation2 + $0xdc] sm:$0x1]  ;;  %v1517_v30 = vpop.permute.xlu1 %1516 }
 0x246   :  { %1629 = vst.msk [vmem:[#allocation2 + $0xa4] sm:$0xf] %vm1217_vm5, %v7135_v50  ;;  %v1246_v37 = vld [vmem:[#allocation2 + $0xb4] sm:$0xf]  ;;  %v1141_v25 = vsel %vm6874_vm1, 0, %v1140_v24  ;;  %v1370_v31 = vpop.permute.xlu0 %1369 }
 0x247   :  { %v1137_v14 = vld [vmem:[#allocation2 + $0xc8] sm:$0x1]  ;;  %v1247_v8 = vsel %vm7153_vm9, %v7320_v16, %v1246_v37  ;;  %v1559_v50 = vld [vmem:[#allocation2 + $0xb8] sm:$0xf]  ;;  %1142 = vst [vmem:[#allocation2 + $0xdc] sm:$0x1] %v1141_v25 }
 0x248   :  { %v1138_v29 = vsel %vm6874_vm1, 0, %v1137_v14  ;;  %1095 = vst [vmem:[#allocation2 + $0xf0] sm:$0xf] %v1094_v19  ;;  %1248 = vst [vmem:[#allocation2 + $0xb4] sm:$0xf] %v1247_v8  ;;  %v1560_v15 = vsel %vm7230_vm14, %v7290_v28, %v1559_v50 }
 0x249   :  { %1139 = vst [vmem:[#allocation2 + $0xc8] sm:$0x1] %v1138_v29  ;;  %1561 = vst [vmem:[#allocation2 + $0xb8] sm:$0xf] %v1560_v15  ;;  %v1483_v53 = vld [vmem:[#allocation2 + $0x108] sm:$0x1]  ;;  %v1196_v44 = vpop.permute.xlu1 %1195 }
 0x24a   :  { %v1433_v16 = vld [vmem:[#allocation2 + $0x11c] sm:$0xf]  ;;  %1630 = vst.msk [vmem:[#allocation2 + $0xb8] sm:$0xf] %vm1217_vm5, %v7120_v26  ;;  %v1484_v36 = vsel %vm7212_vm3, 0, %v1483_v53 }
 0x24b   :  { %v1565_v9 = vld [vmem:[#allocation2 + $0xe0] sm:$0xf]  ;;  %v1480_v22 = vld [vmem:[#allocation2 + $0xf4] sm:$0x1]  ;;  %1101 = vst [vmem:[#allocation2 + $0x118] sm:$0xf] %v1100_v27  ;;  %v1434_v28 = vsel %vm7193_vm2, %v1370_v31, %v1433_v16 }
 0x24c   :  { %v1566_v52 = vsel %vm7230_vm14, %v7372_v7, %v1565_v9  ;;  %v1562_v17 = vld [vmem:[#allocation2 + $0xcc] sm:$0xf]  ;;  %1485 = vst [vmem:[#allocation2 + $0x108] sm:$0x1] %v1484_v36  ;;  %v1481_v38 = vsel %vm7212_vm3, 0, %v1480_v22  ;;  %v1045_v7 = vpop.permute.xlu0 %1044 }
 0x24d   :  { %1435 = vst [vmem:[#allocation2 + $0x11c] sm:$0xf] %v1434_v28  ;;  %1567 = vst [vmem:[#allocation2 + $0xe0] sm:$0xf] %v1566_v52  ;;  %v1563_v26 = vsel %vm7230_vm14, %v7347_v20, %v1562_v17  ;;  %v1146_v48 = vld [vmem:[#allocation2 + $0x104] sm:$0x1]  ;;  %v1372_v23 = vpop.permute.xlu1 %1371 }
 0x24e   :  { %1482 = vst [vmem:[#allocation2 + $0xf4] sm:$0x1] %v1481_v38  ;;  %1632 = vst.msk [vmem:[#allocation2 + $0xe0] sm:$0xf] %vm1217_vm5, %v7145_v21  ;;  %v1102_v13 = vld [vmem:[#allocation2 + $0x12c] sm:$0xf] }
 0x24f   :  { %1564 = vst [vmem:[#allocation2 + $0xcc] sm:$0xf] %v1563_v26  ;;  %v1252_v58 = vld [vmem:[#allocation2 + $0xdc] sm:$0xf]  ;;  %v1147_v10 = vsel %vm6874_vm1, 0, %v1146_v48  ;;  %v1103_v20 = vsel %vm7203_vm13, %v1045_v7, %v1102_v13  ;;  %v1761_v40 = vld [vmem:[#allocation2 + $0xa0] sm:$0xff] }
 0x250   :  { %1631 = vst.msk [vmem:[#allocation2 + $0xcc] sm:$0xf] %vm1217_vm5, %v7131_v1  ;;  %v1143_v33 = vld [vmem:[#allocation2 + $0xf0] sm:$0x1]  ;;  %v1253_v55 = vsel %vm7153_vm9, %v7390_v56, %v1252_v58  ;;  %v1249_v21 = vld [vmem:[#allocation2 + $0xc8] sm:$0xf]  ;;  %v1515_v60 = vpop.permute.xlu0 %1514 }
 0x251   :  { %1148 = vst [vmem:[#allocation2 + $0x104] sm:$0x1] %v1147_v10  ;;  %v1144_v59 = vsel %vm6874_vm1, 0, %v1143_v33  ;;  %1104 = vst [vmem:[#allocation2 + $0x12c] sm:$0xf] %v1103_v20  ;;  %v1250_v1 = vsel %vm7153_vm9, %v7364_v4, %v1249_v21  ;;  %v1763_v34 = vld [vmem:[#allocation2 + $0xb4] sm:$0xff]  ;;  %v1605_v16 = vpop.permute.xlu1 %1604 }
 0x252   :  { %v2919_v32 = vld [vmem:[#allocation2 + $0xb4] sm:$0x1]  ;;  %1254 = vst [vmem:[#allocation2 + $0xdc] sm:$0xf] %v1253_v55  ;;  %1145 = vst [vmem:[#allocation2 + $0xf0] sm:$0x1] %v1144_v59  ;;  %v5000_v4 = vcombine.low %v1761_v40, %v1763_v34 }
 0x253   :  { %v2920_v42 = vsel %vm7294_vm12, 0, %v2919_v32  ;;  %1251 = vst [vmem:[#allocation2 + $0xc8] sm:$0xf] %v1250_v1  ;;  %v1149_v56 = vld [vmem:[#allocation2 + $0x118] sm:$0x1] }
 0x254   :  { %v5716_v63 = vld [vmem:[#allocation2 + $0xa4] ss:$20 sps:$4 sm:$0xff]   ;;  %v1150_v5 = vsel %vm6874_vm1, 0, %v1149_v56  ;;  %v1486_v46 = vld [vmem:[#allocation2 + $0x11c] sm:$0x1]  ;;  %v1194_v25 = vpop.permute.xlu0 %1193 }
 0x255   :  { %v1571_v18 = vld [vmem:[#allocation2 + $0x108] sm:$0xf]  ;;  %2889 = vst.msk [vmem:[#allocation2 + $0xa0] sm:$0xf] %vm2887_vm8, %v9028_v3  ;;  %2921 = vst [vmem:[#allocation2 + $0xb4] sm:$0x1] %v2920_v42  ;;  %2129 = vmatprep.mubr.bf16.mxu0 %v5716_v63 }
 0x256   :  { %3156 = vst.msk [vmem:[#allocation2 + $0xa4] sm:$0xf] %vm2887_vm8, %v9028_v3  ;;  %1151 = vst [vmem:[#allocation2 + $0x118] sm:$0x1] %v1150_v5  ;;  %v1487_v47 = vsel %vm7212_vm3, 0, %v1486_v46  ;;  %v1572_v0 = vsel %vm7230_vm14, %v1517_v30, %v1571_v18  ;;  %2130 = vmatmul.mubr.bf16.gmra.mrb[20].mxu0 %v5000_v4  ;;  %v1198_v30 = vpop.permute.xlu1 %1197 }
 0x257   :  { %v1568_v11 = vld [vmem:[#allocation2 + $0xf4] sm:$0xf]  ;;  %v3186_v39 = vld [vmem:[#allocation2 + $0xb8] sm:$0x8]  ;;  %1488 = vst [vmem:[#allocation2 + $0x11c] sm:$0x1] %v1487_v47 }
 0x258   :  { %1573 = vst [vmem:[#allocation2 + $0x108] sm:$0xf] %v1572_v0  ;;  %v1569_v61 = vsel %vm7230_vm14, %v1515_v60, %v1568_v11  ;;  %v3187_v24 = vsel %vm7311_vm11, 0, %v3186_v39  ;;  %v1436_v43 = vld [vmem:[#allocation2 + $0x130] sm:$0xf]  ;;  %v1603_v28 = vpop.permute.xlu0 %1602 }
 0x259   :  { %v3192_v12 = vld [vmem:[#allocation2 + $0xe0] sm:$0x8]  ;;  %1570 = vst [vmem:[#allocation2 + $0xf4] sm:$0xf] %v1569_v61  ;;  %3188 = vst [vmem:[#allocation2 + $0xb8] sm:$0x8] %v3187_v24  ;;  %v1437_v37 = vsel %vm7193_vm2, %v1372_v23, %v1436_v43 }
 0x25a   :  { %v3189_v14 = vld [vmem:[#allocation2 + $0xcc] sm:$0x8]  ;;  %v1152_v19 = vld [vmem:[#allocation2 + $0x12c] sm:$0x1]  ;;  %v1258_v8 = vld [vmem:[#allocation2 + $0x104] sm:$0xf] }
 0x25b   :  { %1438 = vst [vmem:[#allocation2 + $0x130] sm:$0xf] %v1437_v37  ;;  %v3190_v50 = vsel %vm7311_vm11, 0, %v3189_v14  ;;  %v3193_v29 = vsel %vm7311_vm11, 0, %v3192_v12  ;;  %v1153_v15 = vsel %vm6874_vm1, 0, %v1152_v19  ;;  %v1259_v45 = vsel %vm7153_vm9, %v1196_v44, %v1258_v8  ;;  %v1767_v41 = vld [vmem:[#allocation2 + $0xdc] sm:$0xff]  ;;  %v1607_v44 = vpop.permute.xlu1 %1606 }
 0x25c   :  { %1441 = vst.msk [vmem:[#allocation2 + $0x130] sm:$0xf] %vm908_vm6, %v9028_v3  ;;  %v1255_v2 = vld [vmem:[#allocation2 + $0xf0] sm:$0xf]  ;;  %v2925_v53 = vld [vmem:[#allocation2 + $0xdc] sm:$0x1]  ;;  %v1519_v7 = vpop.permute.xlu0 %1518 }
 0x25d   :  { %1154 = vst [vmem:[#allocation2 + $0x12c] sm:$0x1] %v1153_v15  ;;  %1260 = vst [vmem:[#allocation2 + $0x104] sm:$0xf] %v1259_v45  ;;  %v1256_v27 = vsel %vm7153_vm9, %v1194_v25, %v1255_v2  ;;  %v1765_v31 = vld [vmem:[#allocation2 + $0xc8] sm:$0xff]  ;;  %v2926_v6 = vsel %vm7294_vm12, 0, %v2925_v53 }
 0x25e   :  { %v5719_v9 = vld [vmem:[#allocation2 + $0xcc] ss:$20 sps:$4 sm:$0xff]   ;;  %v2922_v36 = vld [vmem:[#allocation2 + $0xc8] sm:$0x1]  ;;  %1257 = vst [vmem:[#allocation2 + $0xf0] sm:$0xf] %v1256_v27  ;;  %v5003_v17 = vcombine.low %v1765_v31, %v1767_v41 }
 0x25f   :  { %v2916_v22 = vld [vmem:[#allocation2 + $0xa0] sm:$0x1]  ;;  %1634 = vst.msk [vmem:[#allocation2 + $0x108] sm:$0xf] %vm1217_vm5, %v1605_v16  ;;  %v2923_v52 = vsel %vm7294_vm12, 0, %v2922_v36  ;;  %2137 = vmatprep.mubr.bf16.mxu0 %v5719_v9  ;;  %v2315_v45 = vld [vmem:[%s8999_s9 + $0x8] sm:$0xff] }
 0x260   :  { %2927 = vst [vmem:[#allocation2 + $0xdc] sm:$0x1] %v2926_v6  ;;  %3191 = vst [vmem:[#allocation2 + $0xcc] sm:$0x8] %v3190_v50  ;;  %v2917_v38 = vsel %vm7294_vm12, 0, %v2916_v22  ;;  %2138 = vmatmul.mubr.bf16.gmra.mrb[24].mxu0 %v5003_v17  ;;  %v1200_v56 = vpop.permute.xlu0 %1199  ;;  %v2314_v15 = vld [vmem:[%s8999_s9] sm:$0xff] }
 0x261   :  { %3194 = vst [vmem:[#allocation2 + $0xe0] sm:$0x8] %v3193_v29  ;;  %1633 = vst.msk [vmem:[#allocation2 + $0xf4] sm:$0xf] %vm1217_vm5, %v1603_v28  ;;  %v1261_v26 = vld [vmem:[#allocation2 + $0x118] sm:$0xf]  ;;  %v7569_v41 = vpack.c.bf16 %v2315_v45, %v2314_v15 }
 0x262   :  { %2924 = vst [vmem:[#allocation2 + $0xc8] sm:$0x1] %v2923_v52  ;;  %2918 = vst [vmem:[#allocation2 + $0xa0] sm:$0x1] %v2917_v38  ;;  %v1262_v48 = vsel %vm7153_vm9, %v1198_v30, %v1261_v26  ;;  %v1574_v13 = vld [vmem:[#allocation2 + $0x11c] sm:$0xf] }
 0x263   :  { %3098 = vst.msk [vmem:[#allocation2 + $0xa0] sm:$0xf] %vm3096_vm15, %v9028_v3  ;;  %v1489_v58 = vld [vmem:[#allocation2 + $0x130] sm:$0x1]  ;;  %1263 = vst [vmem:[#allocation2 + $0x118] sm:$0xf] %v1262_v48  ;;  %v1575_v10 = vsel %vm7230_vm14, %v1519_v7, %v1574_v13  ;;  %5594 = vmatpush3.bf16.msra.mxu1 %v7569_v41 }
 0x264   :  { %v2931_v33 = vld [vmem:[#allocation2 + $0x104] sm:$0x1]  ;;  %v1490_v20 = vsel %vm7212_vm3, 0, %v1489_v58  ;;  %1576 = vst [vmem:[#allocation2 + $0x11c] sm:$0xf] %v1575_v10  ;;  %v2316_v2 = vld [vmem:[%s8999_s9 + $0x10] sm:$0xff] }
 0x265   :  { %v1264_v55 = vld [vmem:[#allocation2 + $0x12c] sm:$0xf]  ;;  %v2932_v21 = vsel %vm7294_vm12, 0, %v2931_v33  ;;  %1491 = vst [vmem:[#allocation2 + $0x130] sm:$0x1] %v1490_v20  ;;  %v2317_v53 = vld [vmem:[%s8999_s9 + $0x18] sm:$0xff] }
 0x266   :  { %v2928_v59 = vld [vmem:[#allocation2 + $0xf0] sm:$0x1]  ;;  %v1771_v32 = vld [vmem:[#allocation2 + $0x104] sm:$0xff]  ;;  %1579 = vst.msk [vmem:[#allocation2 + $0x130] sm:$0xf] %vm1217_vm5, %v9028_v3  ;;  %v1265_v34 = vsel %vm7153_vm9, %v1200_v56, %v1264_v55  ;;  %v7575_v27 = vpack.c.bf16 %v2317_v53, %v2316_v2  ;;  %v9051_v16 = vmov 0.0|0.0  }
 0x267   :  { %v3198_v1 = vld [vmem:[#allocation2 + $0x108] sm:$0x8]  ;;  %v2929_v49 = vsel %vm7294_vm12, 0, %v2928_v59  ;;  %2933 = vst [vmem:[#allocation2 + $0x104] sm:$0x1] %v2932_v21  ;;  %5595 = vmatprep.subr.bf16.mxu1 %v9051_v16  ;;  %v2318_v31 = vld [vmem:[%s8999_s9 + $0x20] sm:$0xff] }
 0x268   :  { %v3199_v62 = vsel %vm7311_vm11, 0, %v3198_v1  ;;  %v1769_v40 = vld [vmem:[#allocation2 + $0xf0] sm:$0xff]  ;;  %1635 = vst.msk [vmem:[#allocation2 + $0x11c] sm:$0xf] %vm1217_vm5, %v1607_v44  ;;  %1266 = vst [vmem:[#allocation2 + $0x12c] sm:$0xf] %v1265_v34  ;;  %5597 = vmatpush3.bf16.msra.mxu1 %v7575_v27 }
 0x269   :  { %v3195_v42 = vld [vmem:[#allocation2 + $0xf4] sm:$0x8]  ;;  %3200 = vst [vmem:[#allocation2 + $0x108] sm:$0x8] %v3199_v62  ;;  %2930 = vst [vmem:[#allocation2 + $0xf0] sm:$0x1] %v2929_v49  ;;  %v5007_v63 = vcombine.high %v1769_v40, %v1771_v32  ;;  %v5006_v5 = vcombine.low %v1769_v40, %v1771_v32  ;;  %5598 = vmatprep.subr.bf16.mxu1 %v9051_v16 }
 0x26a   :  { %v3196_v60 = vsel %vm7311_vm11, 0, %v3195_v42  ;;  %v2934_v46 = vld [vmem:[#allocation2 + $0x118] sm:$0x1]  ;;  %v5721_v12 = vld [vmem:[#allocation2 + $0x8] ss:$20 sps:$4 sm:$0xff]   ;;  %v2320_v28 = vld [vmem:[%s8999_s9 + $0x30] sm:$0xff] }
 0x26b   :  { %3197 = vst [vmem:[#allocation2 + $0xf4] sm:$0x8] %v3196_v60  ;;  %2145 = vmatprep.mubr.bf16.mxu0 %v5007_v63  ;;  %v2935_v18 = vsel %vm7294_vm12, 0, %v2934_v46  ;;  %v5722_v37 = vld [vmem:[#allocation2 + $0x30] ss:$20 sps:$4 sm:$0xff]   ;;  %v2319_v9 = vld [vmem:[%s8999_s9 + $0x28] sm:$0xff] }
 0x26c   :  { %2146 = vmatmul.mubr.bf16.gmra.mrb[28].mxu0 %v5006_v5  ;;  %v5723_v25 = vld [vmem:[#allocation2 + $0x58] ss:$20 sps:$4 sm:$0xff]   ;;  %v5724_v14 = vld [vmem:[#allocation2 + $0x80] ss:$20 sps:$4 sm:$0xff]   ;;  %v5725_v19 = vld [vmem:[#allocation2 + $0xa8] ss:$20 sps:$4 sm:$0xff]   ;;  %v7585_v6 = vpack.c.bf16 %v2319_v9, %v2318_v31 }
 0x26d   :  { %v3204_v0 = vld [vmem:[#allocation2 + $0x130] sm:$0x8]  ;;  %v5727_v50 = vld [vmem:[#allocation2 + $0xf8] ss:$20 sps:$4 sm:$0xff]   ;;  %v5728_v29 = vld [vmem:[#allocation2 + $0x120] ss:$20 sps:$4 sm:$0xff]  }
 0x26e   :  { %v3205_v57 = vsel %vm7311_vm11, 0, %v3204_v0  ;;  %v5726_v8 = vld [vmem:[#allocation2 + $0xd0] ss:$20 sps:$4 sm:$0xff]   ;;  %v2321_v52 = vld [vmem:[%s8999_s9 + $0x38] sm:$0xff]  ;;  %5600 = vmatpush3.bf16.msra.mxu1 %v7585_v6  ;;  %v7621_v2 = vld [vmem:[%s8996_s6] ss:$0 sm:$0xff] }
 0x26f   :  { %v1773_v4 = vld [vmem:[#allocation2 + $0x118] sm:$0xff]  ;;  %v2937_v39 = vld [vmem:[#allocation2 + $0x12c] sm:$0x1]  ;;  %v7595_v48 = vpack.c.bf16 %v2321_v52, %v2320_v28  ;;  %5601 = vmatprep.subr.bf16.mxu1 %v9051_v16  ;;  %v5039_v28 = vld [vmem:[%s8991_s1] ss:$0 sm:$0xff]  ;;  %vm2322_vm1 = vcmask 523264  }
 0x270   :  { %v3201_v47 = vld [vmem:[#allocation2 + $0x11c] sm:$0x8]  ;;  %2936 = vst [vmem:[#allocation2 + $0x118] sm:$0x1] %v2935_v18  ;;  %v1775_v61 = vld [vmem:[#allocation2 + $0x12c] sm:$0xff]  ;;  %v2938_v24 = vsel %vm7294_vm12, 0, %v2937_v39 }
 0x271   :  { %v3202_v11 = vsel %vm7311_vm11, 0, %v3201_v47  ;;  %v5010_v43 = vcombine.high %v1773_v4, %v1775_v61  ;;  %3206 = vst [vmem:[#allocation2 + $0x130] sm:$0x8] %v3205_v57  ;;  %v5009_v23 = vcombine.low %v1773_v4, %v1775_v61  ;;  %2939 = vst [vmem:[#allocation2 + $0x12c] sm:$0x1] %v2938_v24  ;;  %vm9052_vm6 = vcmask 1041409  }
 0x272   :  { %3203 = vst [vmem:[#allocation2 + $0x11c] sm:$0x8] %v3202_v11  ;;  %5603 = vmatpush3.bf16.msra.mxu1 %v7595_v48  ;;  %vm9054_vm5 = vmmov 0   ;;  %vm9055_vm9 = vmmov %vm9052_vm6  ;;  %vm3320_vm2 = vcmask 1040896   ;;  %vm9061_vm3 = vsmask.f32 3328 }
 0x273   :  { %2153 = vmatprep.mubr.bf16.mxu0 %v5010_v43  ;;  %5604 = vmatprep.subr.bf16.mxu1 %v9051_v16  ;;  %vm7977_vm13 = vmand %vm3320_vm2, %vm641_vm4 }
 0x274   :  { %2154 = vmatmul.mubr.bf16.gmra.mrb[32].mxu0 %v5009_v23  ;;  %vm8038_vm4 = vmand %vm2887_vm8, %vm805_vm10 }
 0x275   :  { %5482 = vmatprep.mubr.msk.bf16.mxu0 %vm71_vm0, %v5721_v12  ;;  %vm8276_vm14 = vmand %vm2887_vm8, %vm9061_vm3 }
 0x27c   :  { %5483 = vmatmul.mubr.msk.bf16.vlgmr.msra.gmra.mrb[36].mxu0 %vm71_vm0, %v5722_v37 }
 0x27d   :  { %5486 = vmatprep.mubr.msk.bf16.mxu0 %vm71_vm0, %v5723_v25 }
 0x284   :  { %5487 = vmatmul.mubr.msk.bf16.gmra.mrb[40].mxu0 %vm71_vm0, %v5724_v14 }
 0x285   :  { %5490 = vmatprep.mubr.msk.bf16.mxu0 %vm71_vm0, %v5725_v19 }
 0x28c   :  { %5491 = vmatmul.mubr.msk.bf16.gmra.mrb[44].mxu0 %vm71_vm0, %v5726_v8 }
 0x28d   :  { %5494 = vmatprep.mubr.msk.bf16.mxu0 %vm71_vm0, %v5727_v50 }
 0x294   :  { %5495 = vmatmul.mubr.msk.bf16.gmra.mrb[48].mxu0 %vm71_vm0, %v5728_v29 }
 0x2f5   :  { %v5230_v36 = vpop.f32.mrb[4].mxu0 }
 0x2f6   :  { %v5231_v22 = vpop.f32.mrb[5].mxu0 }
 0x2f7   :  { %v5232_v17 = vadd.f32 %v5231_v22, %v5230_v36  ;;  %v5233_v38 = vpop.f32.mrb[6].mxu0 }
 0x2f8   :  { %v5234_v26 = vpop.f32.mrb[7].mxu0 }
 0x2f9   :  { %v5235_v30 = vadd.f32 %v5234_v26, %v5233_v38 }
 0x2fe   :  { %v5236_v13 = vpop.f32.mrb[8].mxu0 }
 0x2ff   :  { %v5237_v7 = vpop.f32.mrb[9].mxu0 }
 0x300   :  { %v5238_v58 = vadd.f32 %v5237_v7, %v5236_v13  ;;  %v5239_v10 = vpop.f32.mrb[10].mxu0 }
 0x301   :  { %v5240_v33 = vpop.f32.mrb[11].mxu0 }
 0x302   :  { %v5241_v20 = vadd.f32 %v5240_v33, %v5239_v10 }
 0x308   :  { %v5242_v55 = vpop.f32.mrb[12].mxu0 }
 0x309   :  { %v5243_v21 = vpop.f32.mrb[13].mxu0 }
 0x30a   :  { %v5244_v59 = vadd.f32 %v5243_v21, %v5242_v55  ;;  %v5245_v32 = vpop.f32.mrb[14].mxu0 }
 0x30b   :  { %v5246_v1 = vpop.f32.mrb[15].mxu0 }
 0x30c   :  { %v7600_v44 = vadd.f32 %v5246_v1, %v5245_v32 }
 0x318   :  { %v5248_v49 = vpop.f32.mrb[16].mxu0 }
 0x319   :  { %v5249_v62 = vpop.f32.mrb[17].mxu0 }
 0x31a   :  { %v5250_v40 = vadd.f32 %v5249_v62, %v5248_v49  ;;  %v5251_v42 = vpop.f32.mrb[18].mxu0 }
 0x31b   :  { %v5252_v56 = vpop.f32.mrb[19].mxu0 }
 0x31c   :  { %v5253_v60 = vadd.f32 %v5252_v56, %v5251_v42 }
 0x329   :  { %v5254_v34 = vpop.f32.mrb[20].mxu0 }
 0x32a   :  { %v5255_v63 = vpop.f32.mrb[21].mxu0 }
 0x32b   :  { %v7602_v5 = vadd.f32 %v5255_v63, %v5254_v34  ;;  %v5257_v46 = vpop.f32.mrb[22].mxu0 }
 0x32c   :  { %v5258_v18 = vpop.f32.mrb[23].mxu0 }
 0x32d   :  { %v7604_v4 = vadd.f32 %v5258_v18, %v5257_v46 }
 0x333   :  { %v5260_v47 = vpop.f32.mrb[24].mxu0 }
 0x334   :  { %v5261_v0 = vpop.f32.mrb[25].mxu0 }
 0x335   :  { %v7606_v11 = vadd.f32 %v5261_v0, %v5260_v47  ;;  %v5263_v57 = vpop.f32.mrb[26].mxu0 }
 0x336   :  { %v5264_v39 = vpop.f32.mrb[27].mxu0 }
 0x337   :  { %v7608_v61 = vadd.f32 %v5264_v39, %v5263_v57 }
 0x33f   :  { %v5266_v24 = vpop.f32.mrb[28].mxu0 }
 0x340   :  { %v5267_v43 = vpop.f32.mrb[29].mxu0 }
 0x341   :  { %v7610_v23 = vadd.f32 %v5267_v43, %v5266_v24  ;;  %v5269_v12 = vpop.f32.mrb[30].mxu0 }
 0x342   :  { %v5270_v37 = vpop.f32.mrb[31].mxu0 }
 0x343   :  { %v7612_v25 = vadd.f32 %v5270_v37, %v5269_v12 }
 0x347   :  { %v5272_v14 = vpop.f32.mrb[32].mxu0 }
 0x348   :  { %v5273_v19 = vpop.f32.mrb[33].mxu0 }
 0x349   :  { %v7614_v8 = vadd.f32 %v5273_v19, %v5272_v14  ;;  %v5275_v50 = vpop.f32.mrb[34].mxu0 }
 0x34a   :  { %v5276_v29 = vpop.f32.mrb[35].mxu0 }
 0x34b   :  { %v7616_v15 = vadd.f32 %v5276_v29, %v5275_v50 }
 0x34f   :  { %v5484_v45 = vpop.f32.mrb[36].mxu0 }
 0x350   :  { %v2205_v53 = vadd.f32 %v5484_v45, %v5238_v58  ;;  %v2196_v31 = vpop.f32.mrb[37].mxu0 }
 0x351   :  { %v2197_v9 = vadd.f32 %v5232_v17, %v2196_v31  ;;  %v5485_v36 = vpop.f32.mrb[38].mxu0 }
 0x352   :  { %v2268_v22 = vadd.f32 %v7621_v2, %v2205_v53  ;;  %v2208_v52 = vadd.f32 %v5485_v36, %v5241_v20  ;;  %v2199_v38 = vpop.f32.mrb[39].mxu0 }
 0x353   :  { %v2266_v26 = vadd.f32 %v7621_v2, %v2197_v9  ;;  %v2200_v13 = vadd.f32 %v5235_v30, %v2199_v38 }
 0x354   :  { %v2269_v7 = vadd.f32 %v7621_v2, %v2208_v52  ;;  %v7632_v17 = vadd.f32 %v5039_v28, %v2268_v22 }
 0x355   :  { %v7629_v10 = vadd.f32 %v5039_v28, %v2266_v26  ;;  %v2267_v58 = vadd.f32 %v7621_v2, %v2200_v13 }
 0x356   :  { %v7638_v20 = vadd.f32 %v5039_v28, %v2269_v7  ;;  %v2326_v34 = vsel %vm2322_vm1, %v7632_v17, 0.0  ;;  %v2367_v39 = vmul.f32 %v7632_v17, %v7632_v17 }
 0x357   :  { %v7634_v33 = vadd.f32 %v5039_v28, %v2267_v58  ;;  %v5488_v55 = vpop.f32.mrb[40].mxu0  ;;  %v2323_v21 = vsel %vm2322_vm1, %v7629_v10, 0.0  ;;  %v2365_v30 = vmul.f32 %v7629_v10, %v7629_v10  ;;  %v5040_v58 = vld [vmem:[%s8991_s1 + $0x1] ss:$0 sm:$0xff] }
 0x358   :  { %v2221_v32 = vadd.f32 %v5488_v55, %v5250_v40  ;;  %v2212_v1 = vpop.f32.mrb[41].mxu0  ;;  %v2328_v43 = vsel %vm2322_vm1, %v7638_v20, 0.0  ;;  %v2384_v36 = vsel %vm2322_vm1, %v2367_v39, 0.0  ;;  %v2368_v38 = vmul.f32 %v7638_v20, %v7638_v20 }
 0x359   :  { %v2324_v49 = vsel %vm2322_vm1, %v7634_v33, 0.0  ;;  %v2366_v62 = vmul.f32 %v7634_v33, %v7634_v33  ;;  %v2213_v42 = vadd.f32 %v5244_v59, %v2212_v1  ;;  %v5489_v56 = vpop.f32.mrb[42].mxu0  ;;  %v2381_v59 = vsel %vm2322_vm1, %v2365_v30, 0.0 }
 0x35a   :  { %v2325_v63 = vadd.f32 %v2324_v49, %v2323_v21  ;;  %v2224_v46 = vadd.f32 %v5489_v56, %v5253_v60  ;;  %v2215_v18 = vpop.f32.mrb[43].mxu0  ;;  %v2272_v47 = vadd.f32 %v7621_v2, %v2221_v32 }
 0x35b   :  { %v2382_v40 = vsel %vm2322_vm1, %v2366_v62, 0.0  ;;  %v2270_v0 = vadd.f32 %v7621_v2, %v2213_v42  ;;  %v2216_v57 = vadd.f32 %v7600_v44, %v2215_v18 }
 0x35c   :  { %v2327_v24 = vadd.f32 %v2326_v34, %v2325_v63  ;;  %v2383_v37 = vadd.f32 %v2382_v40, %v2381_v59  ;;  %v7660_v19 = vadd.f32 %v5039_v28, %v2272_v47  ;;  %v2273_v53 = vadd.f32 %v7621_v2, %v2224_v46 }
 0x35d   :  { %v7657_v12 = vadd.f32 %v5039_v28, %v2270_v0  ;;  %v2271_v60 = vadd.f32 %v7621_v2, %v2216_v57 }
 0x35e   :  { %v2329_v14 = vadd.f32 %v2328_v43, %v2327_v24  ;;  %v2385_v26 = vadd.f32 %v2384_v36, %v2383_v37  ;;  %v7684_v49 = vadd.f32 %v5039_v28, %v2273_v53 }
 0x35f   :  { %v2330_v44 = vsel %vm2322_vm1, %v7657_v12, 0.0  ;;  %v7664_v50 = vadd.f32 %v5039_v28, %v2271_v60  ;;  %v5492_v29 = vpop.f32.mrb[44].mxu0  ;;  %v2369_v30 = vmul.f32 %v7657_v12, %v7657_v12 }
 0x360   :  { %v2331_v45 = vadd.f32 %v2330_v44, %v2329_v14  ;;  %v2237_v31 = vadd.f32 %v5492_v29, %v7606_v11  ;;  %v2228_v9 = vpop.f32.mrb[45].mxu0  ;;  %v2334_v11 = vsel %vm2322_vm1, %v7660_v19, 0.0  ;;  %v2336_v40 = vsel %vm2322_vm1, %v7684_v49, 0.0 }
 0x361   :  { %v2332_v22 = vsel %vm2322_vm1, %v7664_v50, 0.0  ;;  %v5493_v52 = vpop.f32.mrb[46].mxu0  ;;  %v2229_v21 = vadd.f32 %v7602_v5, %v2228_v9  ;;  %v2386_v5 = vsel %vm2322_vm1, %v2368_v38, 0.0  ;;  %v2388_v28 = vsel %vm2322_vm1, %v2369_v30, 0.0 }
 0x362   :  { %v2333_v13 = vadd.f32 %v2332_v22, %v2331_v45  ;;  %v2276_v7 = vadd.f32 %v7621_v2, %v2237_v31  ;;  %v2231_v55 = vpop.f32.mrb[47].mxu0  ;;  %v2240_v32 = vadd.f32 %v5493_v52, %v7608_v61  ;;  %v2387_v46 = vadd.f32 %v2386_v5, %v2385_v26 }
 0x363   :  { %v2232_v1 = vadd.f32 %v7604_v4, %v2231_v55  ;;  %v2274_v56 = vadd.f32 %v7621_v2, %v2229_v21  ;;  %v2370_v24 = vmul.f32 %v7664_v50, %v7664_v50 }
 0x364   :  { %v2335_v62 = vadd.f32 %v2334_v11, %v2333_v13  ;;  %v7686_v42 = vadd.f32 %v5040_v58, %v2276_v7  ;;  %v2277_v34 = vadd.f32 %v7621_v2, %v2240_v32  ;;  %v2389_v11 = vadd.f32 %v2388_v28, %v2387_v46 }
 0x365   :  { %v2275_v63 = vadd.f32 %v7621_v2, %v2232_v1  ;;  %v7692_v61 = vadd.f32 %v5040_v58, %v2274_v56  ;;  %v2390_v56 = vsel %vm2322_vm1, %v2370_v24, 0.0 }
 0x366   :  { %v7699_v47 = vadd.f32 %v5040_v58, %v2277_v34  ;;  %v2337_v39 = vadd.f32 %v2336_v40, %v2335_v62  ;;  %v2347_v59 = vsel %vm2322_vm1, %v7686_v42, 0.0  ;;  %v2375_v37 = vmul.f32 %v7686_v42, %v7686_v42 }
 0x367   :  { %v7694_v4 = vadd.f32 %v5040_v58, %v2275_v63  ;;  %v5496_v18 = vpop.f32.mrb[48].mxu0  ;;  %v2373_v43 = vmul.f32 %v7692_v61, %v7692_v61  ;;  %v2344_v14 = vsel %vm2322_vm1, %v7692_v61, 0.0  ;;  %v2391_v24 = vadd.f32 %v2390_v56, %v2389_v11 }
 0x368   :  { %v2253_v0 = vadd.f32 %v5496_v18, %v7614_v8  ;;  %v2244_v57 = vpop.f32.mrb[49].mxu0  ;;  %v2376_v22 = vmul.f32 %v7699_v47, %v7699_v47  ;;  %v2338_v62 = vrot.slane %v2337_v39, 4 }
 0x369   :  { %v5497_v60 = vpop.f32.mrb[50].mxu0  ;;  %v2345_v8 = vsel %vm2322_vm1, %v7694_v4, 0.0  ;;  %v2374_v44 = vmul.f32 %v7694_v4, %v7694_v4  ;;  %v2245_v31 = vadd.f32 %v7610_v23, %v2244_v57  ;;  %v2402_v36 = vsel %vm2322_vm1, %v2373_v43, 0.0 }
 0x36a   :  { %v2247_v29 = vpop.f32.mrb[51].mxu0  ;;  %v2346_v45 = vadd.f32 %v2345_v8, %v2344_v14  ;;  %v2280_v53 = vadd.f32 %v7621_v2, %v2253_v0  ;;  %v2256_v9 = vadd.f32 %v5497_v60, %v7616_v15  ;;  %v2405_v23 = vsel %vm2322_vm1, %v2375_v37, 0.0 }
 0x36b   :  { %v2403_v52 = vsel %vm2322_vm1, %v2374_v44, 0.0  ;;  %v2248_v38 = vadd.f32 %v7612_v25, %v2247_v29  ;;  %v2278_v7 = vadd.f32 %v7621_v2, %v2245_v31  ;;  %v2349_v15 = vsel %vm2322_vm1, %v7699_v47, 0.0 }
 0x36c   :  { %v2348_v26 = vadd.f32 %v2347_v59, %v2346_v45  ;;  %v2404_v13 = vadd.f32 %v2403_v52, %v2402_v36  ;;  %v2281_v55 = vadd.f32 %v7621_v2, %v2256_v9  ;;  %v7730_v1 = vadd.f32 %v5040_v58, %v2280_v53 }
 0x36d   :  { %v2279_v21 = vadd.f32 %v7621_v2, %v2248_v38  ;;  %v7732_v30 = vadd.f32 %v5040_v58, %v2278_v7  ;;  %v2407_v34 = vsel %vm2322_vm1, %v2376_v22, 0.0  ;;  %v2371_v57 = vmul.f32 %v7660_v19, %v7660_v19 }
 0x36e   :  { %v2406_v32 = vadd.f32 %v2405_v23, %v2404_v13  ;;  %v2350_v25 = vadd.f32 %v2349_v15, %v2348_v26  ;;  %v7742_v18 = vadd.f32 %v5040_v58, %v2281_v55  ;;  %v2379_v59 = vmul.f32 %v7730_v1, %v7730_v1 }
 0x36f   :  { %v7736_v63 = vadd.f32 %v5040_v58, %v2279_v21  ;;  %v2351_v5 = vsel %vm2322_vm1, %v7732_v30, 0.0  ;;  %v2377_v46 = vmul.f32 %v7732_v30, %v7732_v30  ;;  %v2339_v14 = vadd.f32 %v2338_v62, %v2337_v39 }
 0x370   :  { %v2408_v2 = vadd.f32 %v2407_v34, %v2406_v32  ;;  %v2352_v28 = vadd.f32 %v2351_v5, %v2350_v25  ;;  %v2355_v8 = vsel %vm2322_vm1, %v7730_v1, 0.0  ;;  %v2380_v44 = vmul.f32 %v7742_v18, %v7742_v18 }
 0x371   :  { %v2353_v40 = vsel %vm2322_vm1, %v7736_v63, 0.0  ;;  %v2378_v0 = vmul.f32 %v7736_v63, %v7736_v63  ;;  %v2409_v43 = vsel %vm2322_vm1, %v2377_v46, 0.0  ;;  %v2392_v53 = vsel %vm2322_vm1, %v2371_v57, 0.0 }
 0x372   :  { %v2410_v60 = vadd.f32 %v2409_v43, %v2408_v2  ;;  %v2354_v37 = vadd.f32 %v2353_v40, %v2352_v28  ;;  %v2372_v31 = vmul.f32 %v7684_v49, %v7684_v49  ;;  %v2413_v9 = vsel %vm2322_vm1, %v2379_v59, 0.0 }
 0x373   :  { %v2411_v58 = vsel %vm2322_vm1, %v2378_v0, 0.0  ;;  %v2357_v36 = vsel %vm2322_vm1, %v7742_v18, 0.0  ;;  %v2393_v22 = vadd.f32 %v2392_v53, %v2391_v24  ;;  %v2340_v38 = vrot.slane %v2339_v14, 2  ;;  %v3667_v53 = vld [vmem:[#allocation2 + $0x5c] sm:$0x1] }
 0x374   :  { %v2356_v29 = vadd.f32 %v2355_v8, %v2354_v37  ;;  %v2412_v45 = vadd.f32 %v2411_v58, %v2410_v60  ;;  %v2415_v26 = vsel %vm2322_vm1, %v2380_v44, 0.0  ;;  %v2394_v55 = vsel %vm2322_vm1, %v2372_v31, 0.0  ;;  %v3655_v8 = vld [vmem:[#allocation2 + $0xc] sm:$0x1]  ;;  %v3658_v44 = vld [vmem:[#allocation2 + $0x20] sm:$0x1] }
 0x375   :  { %v2395_v11 = vadd.f32 %v2394_v55, %v2393_v22  ;;  %v2341_v23 = vadd.f32 %v2340_v38, %v2339_v14  ;;  %v9053_v57 = vmov 0.0   ;;  %v3668_v31 = vsel %vm7294_vm12, 0, %v3667_v53  ;;  %v3673_v22 = vld [vmem:[#allocation2 + $0x84] sm:$0x1] }
 0x376   :  { %v2358_v39 = vadd.f32 %v2357_v36, %v2356_v29  ;;  %v2414_v52 = vadd.f32 %v2413_v9, %v2412_v45  ;;  %v3661_v29 = vld [vmem:[#allocation2 + $0x34] sm:$0x1]  ;;  %3669 = vst [vmem:[#allocation2 + $0x5c] sm:$0x1] %v3668_v31  ;;  %v3670_v9 = vld [vmem:[#allocation2 + $0x70] sm:$0x1] }
 0x377   :  { %v2342_v25 = vrot.slane %v2341_v23, 1  ;;  %v2396_v56 = vrot.slane %v2395_v11, 4  ;;  %v3671_v36 = vsel %vm7294_vm12, 0, %v3670_v9  ;;  %v3804_v31 = vld [vmem:[#allocation2 + $0xec] sm:$0x8] }
 0x378   :  { %v2359_v13 = vrot.slane %v2358_v39, 4  ;;  %v2416_v7 = vadd.f32 %v2415_v26, %v2414_v52  ;;  %3672 = vst [vmem:[#allocation2 + $0x70] sm:$0x1] %v3671_v36  ;;  %v3679_v52 = vld [vmem:[#allocation2 + $0xac] sm:$0x1] }
 0x379   :  { %v2343_v46 = vadd.f32 %v2342_v25, %v2341_v23  ;;  %v2397_v28 = vadd.f32 %v2396_v56, %v2395_v11  ;;  %v3680_v38 = vsel %vm7294_vm12, 0, %v3679_v52  ;;  %v3682_v26 = vld [vmem:[#allocation2 + $0xc0] sm:$0x1]  ;;  %v3688_v11 = vld [vmem:[#allocation2 + $0xe8] sm:$0x1] }
 0x37a   :  { %v2360_v15 = vadd.f32 %v2359_v13, %v2358_v39  ;;  %v2417_v32 = vrot.slane %v2416_v7, 4  ;;  %v3674_v39 = vsel %vm7294_vm12, 0, %v3673_v22  ;;  %3681 = vst [vmem:[#allocation2 + $0xac] sm:$0x1] %v3680_v38  ;;  %v3683_v13 = vsel %vm7294_vm12, 0, %v3682_v26 }
 0x37b   :  { %v2398_v24 = vrot.slane %v2397_v28, 2  ;;  %3675 = vst [vmem:[#allocation2 + $0x84] sm:$0x1] %v3674_v39  ;;  %3684 = vst [vmem:[#allocation2 + $0xc0] sm:$0x1] %v3683_v13  ;;  %v3805_v22 = vsel %vm7311_vm11, 0, %v3804_v31 }
 0x37c   :  { %v2361_v21 = vrot.slane %v2360_v15, 2  ;;  %v2418_v5 = vadd.f32 %v2417_v32, %v2416_v7  ;;  %v3685_v7 = vld [vmem:[#allocation2 + $0xd4] sm:$0x1]  ;;  %v3691_v32 = vld [vmem:[#allocation2 + $0xfc] sm:$0x1] }
 0x37d   :  { %v2399_v43 = vadd.f32 %v2398_v24, %v2397_v28  ;;  %v3686_v55 = vsel %vm7294_vm12, 0, %v3685_v7  ;;  %v3692_v25 = vsel %vm7294_vm12, 0, %v3691_v32  ;;  %v3694_v56 = vld [vmem:[#allocation2 + $0x110] sm:$0x1]  ;;  %v3780_v28 = vld [vmem:[#allocation2 + $0x4c] sm:$0x8] }
 0x37e   :  { %v2362_v62 = vadd.f32 %v2361_v21, %v2360_v15  ;;  %v2419_v0 = vrot.slane %v2418_v5, 2  ;;  %3687 = vst [vmem:[#allocation2 + $0xd4] sm:$0x1] %v3686_v55  ;;  %v3689_v15 = vsel %vm7294_vm12, 0, %v3688_v11  ;;  %3693 = vst [vmem:[#allocation2 + $0xfc] sm:$0x1] %v3692_v25 }
 0x37f   :  { %v2400_v37 = vrot.slane %v2399_v43, 1  ;;  %3690 = vst [vmem:[#allocation2 + $0xe8] sm:$0x1] %v3689_v15  ;;  %v3786_v24 = vld [vmem:[#allocation2 + $0x74] sm:$0x8] }
 0x380   :  { %v2363_v34 = vrot.slane %v2362_v62, 1  ;;  %v2420_v59 = vadd.f32 %v2419_v0, %v2418_v5  ;;  %v3771_v5 = vld [vmem:[#allocation2 + $0x10] sm:$0x8]  ;;  %v3695_v0 = vsel %vm7294_vm12, 0, %v3694_v56  ;;  %v3807_v9 = vld [vmem:[#allocation2 + $0x100] sm:$0x8] }
 0x381   :  { %3696 = vst [vmem:[#allocation2 + $0x110] sm:$0x1] %v3695_v0  ;;  %v3808_v39 = vsel %vm7311_vm11, 0, %v3807_v9  ;;  %v3810_v52 = vld [vmem:[#allocation2 + $0x114] sm:$0x8] }
 0x382   :  { %v2364_v2 = vadd.f32 %v2363_v34, %v2362_v62  ;;  %v2421_v60 = vrot.slane %v2420_v59, 1  ;;  %v3697_v34 = vld [vmem:[#allocation2 + $0x124] sm:$0x1]  ;;  %3806 = vst [vmem:[#allocation2 + $0xec] sm:$0x8] %v3805_v22  ;;  %v3811_v7 = vsel %vm7311_vm11, 0, %v3810_v52 }
 0x383   :  { %3809 = vst [vmem:[#allocation2 + $0x100] sm:$0x8] %v3808_v39  ;;  %v3813_v55 = vld [vmem:[#allocation2 + $0x128] sm:$0x8]  ;;  %3812 = vst [vmem:[#allocation2 + $0x114] sm:$0x8] %v3811_v7 }
 0x384   :  { %v2425_v40 = vsel %vm9052_vm6, %v2364_v2, %v2343_v46  ;;  %v2422_v58 = vadd.f32 %v2421_v60, %v2420_v59  ;;  %v3774_v46 = vld [vmem:[#allocation2 + $0x24] sm:$0x8]  ;;  %v3777_v2 = vld [vmem:[#allocation2 + $0x38] sm:$0x8]  ;;  %v3789_v59 = vld [vmem:[#allocation2 + $0x88] sm:$0x8] }
 0x385   :  { %5515 = vmatmul.mubr.msk.f32.vlgmr.msra.gmra.mrb[2].mxu1 %vm2322_vm1, %v2425_v40  ;;  %v3783_v40 = vld [vmem:[#allocation2 + $0x60] sm:$0x8]  ;;  %v3772_v60 = vsel %vm7311_vm11, 0, %v3771_v5  ;;  %v3814_v11 = vsel %vm7311_vm11, 0, %v3813_v55  ;;  %vm3498_vm6 = vcmask 1043971  }
 0x386   :  { %5606 = vmatpush3.bf16.msra.mxu1 %v7569_v41  ;;  %5533 = vmatprep.mubr.msk.f32.mxu1 %vm9054_vm5, %v9053_v57  ;;  %v2401_v41 = vadd.f32 %v2400_v37, %v2399_v43  ;;  %v3698_v57 = vsel %vm7294_vm12, 0, %v3697_v34  ;;  %v3775_v37 = vsel %vm7311_vm11, 0, %v3774_v46  ;;  %3773 = vst [vmem:[#allocation2 + $0x10] sm:$0x8] %v3772_v60  ;;  %3815 = vst [vmem:[#allocation2 + $0x128] sm:$0x8] %v3814_v11 }
 0x387   :  { %5607 = vmatprep.subr.bf16.mxu1 %v9051_v16  ;;  %3699 = vst [vmem:[#allocation2 + $0x124] sm:$0x1] %v3698_v57  ;;  %3776 = vst [vmem:[#allocation2 + $0x24] sm:$0x8] %v3775_v37 }
 0x388   :  { %v2525_v14 = vsel %vm9055_vm9, %v2422_v58, %v2401_v41  ;;  %v3778_v58 = vsel %vm7311_vm11, 0, %v3777_v2  ;;  %v3781_v41 = vsel %vm7311_vm11, 0, %v3780_v28  ;;  %v3816_v2 = vld [vmem:[#allocation2 + $0x13c] sm:$0x8]  ;;  %vm8532_vm5 = vmand %vm3498_vm6, %vm912_vm7 }
 0x389   :  { %3779 = vst [vmem:[#allocation2 + $0x38] sm:$0x8] %v3778_v58  ;;  %3782 = vst [vmem:[#allocation2 + $0x4c] sm:$0x8] %v3781_v41  ;;  %v3817_v0 = vsel %vm7311_vm11, 0, %v3816_v2 }
 0x38a   :  { %5609 = vmatpush3.bf16.msra.mxu1 %v7575_v27  ;;  %v3656_v27 = vsel %vm7294_vm12, 0, %v3655_v8  ;;  %v3787_v8 = vsel %vm7311_vm11, 0, %v3786_v24  ;;  %3818 = vst [vmem:[#allocation2 + $0x13c] sm:$0x8] %v3817_v0  ;;  %v9056_v24 = vld [vmem:[#allocation6_spill] sm:$0xff]  ;;  %vm8708_vm7 = vmand %vm3096_vm15, %vm805_vm10 }
 0x38b   :  { %5610 = vmatprep.subr.bf16.mxu1 %v9051_v16  ;;  %3657 = vst [vmem:[#allocation2 + $0xc] sm:$0x1] %v3656_v27  ;;  %v3790_v27 = vsel %vm7311_vm11, 0, %v3789_v59  ;;  %3788 = vst [vmem:[#allocation2 + $0x74] sm:$0x8] %v3787_v8 }
 0x38c   :  { %3791 = vst [vmem:[#allocation2 + $0x88] sm:$0x8] %v3790_v27  ;;  %vm9068_vm10 = vmmov %vm9061_vm3 }
 0x38e   :  { %5612 = vmatpush3.bf16.msra.mxu1 %v7585_v6  ;;  %v3659_v6 = vsel %vm7294_vm12, 0, %v3658_v44  ;;  %v3795_v44 = vld [vmem:[#allocation2 + $0xb0] sm:$0x8] }
 0x38f   :  { %5613 = vmatprep.subr.bf16.mxu1 %v9051_v16  ;;  %3660 = vst [vmem:[#allocation2 + $0x20] sm:$0x1] %v3659_v6  ;;  %v3662_v16 = vsel %vm7294_vm12, 0, %v3661_v29  ;;  %v3796_v6 = vsel %vm7311_vm11, 0, %v3795_v44  ;;  %v3798_v29 = vld [vmem:[#allocation2 + $0xc4] sm:$0x8] }
 0x390   :  { %3663 = vst [vmem:[#allocation2 + $0x34] sm:$0x1] %v3662_v16  ;;  %v3801_v16 = vld [vmem:[#allocation2 + $0xd8] sm:$0x8]  ;;  %3797 = vst [vmem:[#allocation2 + $0xb0] sm:$0x8] %v3796_v6 }
 0x391   :  { %v3802_v53 = vsel %vm7311_vm11, 0, %v3801_v16 }
 0x392   :  { %5615 = vmatpush3.bf16.msra.mxu1 %v7595_v48  ;;  %v3664_v48 = vld [vmem:[#allocation2 + $0x48] sm:$0x1]  ;;  %3803 = vst [vmem:[#allocation2 + $0xd8] sm:$0x8] %v3802_v53 }
 0x393   :  { %v3665_v45 = vsel %vm7294_vm12, 0, %v3664_v48 }
 0x394   :  { %3666 = vst [vmem:[#allocation2 + $0x48] sm:$0x1] %v3665_v45  ;;  %v3799_v45 = vsel %vm7311_vm11, 0, %v3798_v29 }
 0x395   :  { %5534 = vmatmul.mubr.msk.f32.vlgmr.msra.gmra.mrb[4].mxu1 %vm2322_vm1, %v2525_v14  ;;  %v3784_v14 = vsel %vm7311_vm11, 0, %v3783_v40  ;;  %3800 = vst [vmem:[#allocation2 + $0xc4] sm:$0x8] %v3799_v45 }
 0x396   :  { %3785 = vst [vmem:[#allocation2 + $0x60] sm:$0x8] %v3784_v14 }
 0x458   :  { %v2494_v23 = vpop.f32.mrb[2].mxu1 }
 0x459   :  { %v5516_v21 = vpop.f32.mrb[3].mxu1  ;;  %v2505_v62 = vrot.slane %v2494_v23, %v6336_v51  ;;  %v3792_v23 = vld [vmem:[#allocation2 + $0x9c] sm:$0x8] }
 0x45a   :  { %v3793_v25 = vsel %vm7311_vm11, 0, %v3792_v23 }
 0x45b   :  { %v2506_v43 = vcombine.high %v2505_v62, %v2505_v62  ;;  %v2513_v48 = vrot.slane %v2505_v62, %v6336_v51  ;;  %3794 = vst [vmem:[#allocation2 + $0x9c] sm:$0x8] %v3793_v25 }
 0x45d   :  { %v2520_v38 = vrot.slane %v2506_v43, %v6336_v51  ;;  %v2623_v15 = vmul.f32 %v2513_v48, %v2513_v48  ;;  %v2636_v59 = vrot.slane %v2513_v48, %v9056_v24  ;;  %v2312_v43 = vld [vmem:[%s8997_s7] sm:$0x1] }
 0x45f   :  { %v2624_v62 = vmul.f32 %v2520_v38, %v2520_v38  ;;  %v2644_v37 = vsub.f32 %v7634_v33, %v2636_v59  ;;  %v2643_v41 = vsub.f32 %v7629_v10, %v2636_v59  ;;  %v2645_v14 = vsub.f32 %v7632_v17, %v2636_v59  ;;  %v7868_v17 = vld [vmem:[%s8998_s8] ss:$0 sm:$0xff] }
 0x460   :  { %v2646_v8 = vsub.f32 %v7638_v20, %v2636_v59  ;;  %v2647_v44 = vsub.f32 %v7657_v12, %v2636_v59  ;;  %v2648_v6 = vsub.f32 %v7664_v50, %v2636_v59  ;;  %v2649_v29 = vsub.f32 %v7660_v19, %v2636_v59 }
 0x461   :  { %v2650_v16 = vsub.f32 %v7684_v49, %v2636_v59 }
 0x468   :  { %v2594_v36 = vpop.f32.mrb[4].mxu1 }
 0x469   :  { %v2605_v26 = vrot.slane %v2594_v36, %v6336_v51  ;;  %v5535_v13 = vpop.f32.mrb[5].mxu1 }
 0x46b   :  { %v2606_v21 = vcombine.high %v2605_v26, %v2605_v26  ;;  %v2613_v32 = vrot.slane %v2605_v26, %v6336_v51 }
 0x46d   :  { %v2620_v56 = vrot.slane %v2606_v21, %v6336_v51  ;;  %v2625_v34 = vsub.f32 %v2613_v32, %v2623_v15  ;;  %v7850_v51 = vrot.slane %v2520_v38, %v9056_v24 }
 0x46f   :  { %v2626_v5 = vsub.f32 %v2620_v56, %v2624_v62  ;;  %v2627_v46 = vmax.f32 %v2625_v34, 0.0  ;;  %v2651_v33 = vsub.f32 %v7692_v61, %v7850_v51  ;;  %v2652_v10 = vsub.f32 %v7694_v4, %v7850_v51  ;;  %v5729_v34 = vld [vmem:[%s9000_s10 + $0x40] sm:$0xff]  }
 0x470   :  { %v2653_v20 = vsub.f32 %v7686_v42, %v7850_v51  ;;  %v2654_v12 = vsub.f32 %v7699_v47, %v7850_v51  ;;  %v2655_v19 = vsub.f32 %v7732_v30, %v7850_v51  ;;  %v2656_v50 = vsub.f32 %v7736_v63, %v7850_v51  ;;  %5306 = vmatprep.subr.bf16.mxu1 %v5729_v34 }
 0x471   :  { %v2628_v28 = vmax.f32 %v2626_v5, 0.0  ;;  %v2629_v40 = vadd.f32 1e-06, %v2627_v46  ;;  %v2657_v11 = vsub.f32 %v7730_v1, %v7850_v51  ;;  %v5730_v1 = vld [vmem:[%s9000_s10] sm:$0xff]  }
 0x472   :  { %5307 = vmatpush3.bf16.msra.mxu1 %v5730_v1 }
 0x473   :  { %v2630_v57 = vadd.f32 1e-06, %v2628_v28  ;;  %5890 = vrsqrt.f32 %v2629_v40  ;;  %v5731_v28 = vld [vmem:[%s9000_s10 + $0x48] sm:$0xff]  }
 0x474   :  { %5308 = vmatprep.subr.bf16.mxu1 %v5731_v28 }
 0x475   :  { %5892 = vrsqrt.f32 %v2630_v57 }
 0x47d   :  { %v5891_v60 = vpop.eup %5890 }
 0x47e   :  { %v2659_v58 = vmul.f32 %v5891_v60, %v2312_v43  ;;  %v5732_v60 = vld [vmem:[%s9000_s10 + $0x8] sm:$0xff]  }
 0x47f   :  { %v5893_v27 = vpop.eup %5892  ;;  %5309 = vmatpush3.bf16.msra.mxu1 %v5732_v60  ;;  %v3322_v60 = vld [vmem:[#allocation2 + $0x4] sm:$0x1] }
 0x480   :  { %v2660_v48 = vmul.f32 %v5893_v27, %v2312_v43  ;;  %v2666_v45 = vrot.slane %v2659_v58, %v9056_v24 }
 0x482   :  { %v2670_v49 = vrot.slane %v2660_v48, %v9056_v24  ;;  %v2674_v61 = vmul.f32 %v2666_v45, %v2644_v37  ;;  %v2673_v4 = vmul.f32 %v2666_v45, %v2643_v41  ;;  %v2675_v53 = vmul.f32 %v2666_v45, %v2645_v14  ;;  %v5733_v14 = vld [vmem:[%s9000_s10 + $0x50] sm:$0xff]  }
 0x483   :  { %v2676_v31 = vmul.f32 %v2666_v45, %v2646_v8  ;;  %v2677_v9 = vmul.f32 %v2666_v45, %v2647_v44  ;;  %v2678_v36 = vmul.f32 %v2666_v45, %v2648_v6  ;;  %v2679_v22 = vmul.f32 %v2666_v45, %v2649_v29  ;;  %5310 = vmatprep.subr.bf16.mxu1 %v5733_v14 }
 0x484   :  { %v7880_v42 = vadd.f32 %v7868_v17, %v2674_v61  ;;  %v7883_v47 = vadd.f32 %v7868_v17, %v2673_v4  ;;  %v7886_v30 = vadd.f32 %v7868_v17, %v2675_v53  ;;  %v2680_v39 = vmul.f32 %v2666_v45, %v2650_v16  ;;  %v5735_v16 = vld [vmem:[%s9000_s10 + $0x58] sm:$0xff]  }
 0x485   :  { %v7889_v63 = vadd.f32 %v7868_v17, %v2676_v31  ;;  %v7892_v52 = vadd.f32 %v7868_v17, %v2677_v9  ;;  %v7895_v38 = vadd.f32 %v7868_v17, %v2678_v36  ;;  %v7898_v26 = vadd.f32 %v7868_v17, %v2679_v22  ;;  %v5738_v9 = vld [vmem:[%s9000_s10 + $0x20] sm:$0xff]  }
 0x486   :  { %v5045_v13 = vmul.f32 -1.442695, %v7880_v42  ;;  %v5044_v7 = vmul.f32 -1.442695, %v7883_v47  ;;  %v5046_v55 = vmul.f32 -1.442695, %v7886_v30  ;;  %v7908_v21 = vadd.f32 %v7868_v17, %v2680_v39 }
 0x487   :  { %v5047_v23 = vmul.f32 -1.442695, %v7889_v63  ;;  %v5048_v15 = vmul.f32 -1.442695, %v7892_v52  ;;  %v2681_v32 = vmul.f32 %v2670_v49, %v2651_v33  ;;  %v5049_v25 = vmul.f32 -1.442695, %v7895_v38 }
 0x488   :  { %5894 = vpow2.f32 %v5045_v13  ;;  %v5050_v62 = vmul.f32 -1.442695, %v7898_v26  ;;  %v2682_v56 = vmul.f32 %v2670_v49, %v2652_v10  ;;  %v2683_v46 = vmul.f32 %v2670_v49, %v2653_v20  ;;  %v5736_v10 = vld [vmem:[%s9000_s10 + $0x18] sm:$0xff]  }
 0x489   :  { %5896 = vpow2.f32 %v5044_v7  ;;  %v7919_v5 = vadd.f32 %v7868_v17, %v2681_v32  ;;  %v2684_v2 = vmul.f32 %v2670_v49, %v2654_v12  ;;  %v2685_v0 = vmul.f32 %v2670_v49, %v2655_v19  ;;  %v5737_v19 = vld [vmem:[%s9000_s10 + $0x60] sm:$0xff]  }
 0x48a   :  { %5898 = vpow2.f32 %v5046_v55  ;;  %v7925_v40 = vadd.f32 %v7868_v17, %v2682_v56  ;;  %v2686_v57 = vmul.f32 %v2670_v49, %v2656_v50  ;;  %v5051_v24 = vmul.f32 -1.442695, %v7908_v21 }
 0x48b   :  { %5900 = vpow2.f32 %v5047_v23  ;;  %v7929_v59 = vadd.f32 %v7868_v17, %v2683_v46  ;;  %v7932_v43 = vadd.f32 %v7868_v17, %v2684_v2  ;;  %v5052_v37 = vmul.f32 -1.442695, %v7919_v5 }
 0x48c   :  { %5902 = vpow2.f32 %v5048_v15  ;;  %v7939_v58 = vadd.f32 %v7868_v17, %v2685_v0  ;;  %v2658_v41 = vsub.f32 %v7742_v18, %v7850_v51  ;;  %v5053_v8 = vmul.f32 -1.442695, %v7925_v40  ;;  %v5734_v18 = vld [vmem:[%s9000_s10 + $0x10] sm:$0xff]  }
 0x48d   :  { %5904 = vpow2.f32 %v5049_v25  ;;  %v2687_v27 = vmul.f32 %v2670_v49, %v2657_v11  ;;  %v5054_v44 = vmul.f32 -1.442695, %v7929_v59  ;;  %v5055_v29 = vmul.f32 -1.442695, %v7932_v43  ;;  %5311 = vmatpush3.bf16.msra.mxu1 %v5734_v18 }
 0x48e   :  { %5906 = vpow2.f32 %v5050_v62  ;;  %v2688_v6 = vmul.f32 %v2670_v49, %v2658_v41  ;;  %v5056_v51 = vmul.f32 -1.442695, %v7939_v58  ;;  %5312 = vmatprep.subr.bf16.mxu1 %v5735_v16  ;;  %v7966_v7 = vadd.f32 %v7868_v17, %v2686_v57 }
 0x48f   :  { %5908 = vpow2.f32 %v5051_v24  ;;  %v7969_v55 = vadd.f32 %v7868_v17, %v2687_v27  ;;  %v3159_v24 = vld [vmem:[#allocation2 + $0x4] sm:$0x8]  ;;  %v5740_v27 = vld [vmem:[%s9000_s10 + $0x28] sm:$0xff]  }
 0x490   :  { %5910 = vpow2.f32 %v5052_v37  ;;  %v5057_v1 = vmul.f32 -1.442695, %v7966_v7  ;;  %v7974_v0 = vadd.f32 %v7868_v17, %v2688_v6  ;;  %v3160_v14 = vsel %vm7311_vm11, 0, %v3159_v24  ;;  %v5739_v17 = vld [vmem:[%s9000_s10 + $0x68] sm:$0xff]  }
 0x491   :  { %5912 = vpow2.f32 %v5053_v8  ;;  %5313 = vmatpush3.bf16.msra.mxu1 %v5736_v10  ;;  %v5058_v46 = vmul.f32 -1.442695, %v7969_v55  ;;  %v3323_v8 = vsel %vm7977_vm13, 0, %v3322_v60  ;;  %3161 = vst [vmem:[#allocation2 + $0x4] sm:$0x8] %v3160_v14 }
 0x492   :  { %v5895_v48 = vpop.eup %5894  ;;  %5914 = vpow2.f32 %v5054_v44  ;;  %5314 = vmatprep.subr.bf16.mxu1 %v5737_v19  ;;  %3324 = vst [vmem:[#allocation2 + $0x4] sm:$0x1] %v3323_v8  ;;  %v3057_v60 = vld [vmem:[#allocation2 + $0x28] sm:$0xf] }
 0x493   :  { %v5897_v45 = vpop.eup %5896  ;;  %v2760_v33 = vadd.f32 1.0, %v5895_v48  ;;  %5916 = vpow2.f32 %v5055_v29 }
 0x494   :  { %v5899_v20 = vpop.eup %5898  ;;  %v2759_v12 = vadd.f32 1.0, %v5897_v45  ;;  %5918 = vpow2.f32 %v5056_v51  ;;  %v5741_v45 = vld [vmem:[%s9000_s10 + $0x70] sm:$0xff]  }
 0x495   :  { %v5901_v50 = vpop.eup %5900  ;;  %5920 = vrcp.f32 %v2760_v33  ;;  %v2761_v49 = vadd.f32 1.0, %v5899_v20  ;;  %5315 = vmatpush3.bf16.msra.mxu1 %v5738_v9  ;;  %v8006_v20 = vmul.f32 -1.442695, %v7974_v0 }
 0x496   :  { %v5903_v61 = vpop.eup %5902  ;;  %5922 = vrcp.f32 %v2759_v12  ;;  %v2762_v4 = vadd.f32 1.0, %v5901_v50  ;;  %5316 = vmatprep.subr.bf16.mxu1 %v5739_v17 }
 0x497   :  { %v5905_v53 = vpop.eup %5904  ;;  %5924 = vrcp.f32 %v2761_v49  ;;  %v2763_v31 = vadd.f32 1.0, %v5903_v61 }
 0x498   :  { %v5907_v36 = vpop.eup %5906  ;;  %5926 = vrcp.f32 %v2762_v4  ;;  %v2764_v22 = vadd.f32 1.0, %v5905_v53 }
 0x499   :  { %v5909_v39 = vpop.eup %5908  ;;  %5928 = vrcp.f32 %v2763_v31  ;;  %v2765_v13 = vadd.f32 1.0, %v5907_v36  ;;  %5317 = vmatpush3.bf16.msra.mxu1 %v5740_v27 }
 0x49a   :  { %v5911_v11 = vpop.eup %5910  ;;  %5930 = vrcp.f32 %v2764_v22  ;;  %v2766_v23 = vadd.f32 1.0, %v5909_v39  ;;  %5318 = vmatprep.subr.bf16.mxu1 %v5741_v45 }
 0x49b   :  { %v5913_v15 = vpop.eup %5912  ;;  %5932 = vrcp.f32 %v2765_v13  ;;  %v2767_v32 = vadd.f32 1.0, %v5911_v11  ;;  %v3705_v11 = vld [vmem:[#allocation2 + $0xc] sm:$0xf] }
 0x49c   :  { %v5915_v25 = vpop.eup %5914  ;;  %5934 = vrcp.f32 %v2766_v23  ;;  %v2768_v62 = vadd.f32 1.0, %v5913_v15 }
 0x49d   :  { %v5917_v56 = vpop.eup %5916  ;;  %5936 = vrcp.f32 %v2767_v32  ;;  %v2769_v34 = vadd.f32 1.0, %v5915_v25 }
 0x49e   :  { %v5919_v2 = vpop.eup %5918  ;;  %5938 = vrcp.f32 %v2768_v62  ;;  %v2770_v28 = vadd.f32 1.0, %v5917_v56 }
 0x49f   :  { %v5921_v37 = vpop.eup %5920  ;;  %5940 = vrcp.f32 %v2769_v34  ;;  %v2771_v41 = vadd.f32 1.0, %v5919_v2  ;;  %v5743_v2 = vld [vmem:[%s9000_s10 + $0x78] sm:$0xff]  }
 0x4a0   :  { %v5923_v44 = vpop.eup %5922  ;;  %v2808_v6 = vmul.f32 %v5921_v37, %v7880_v42  ;;  %5942 = vrcp.f32 %v2770_v28  ;;  %v5742_v42 = vld [vmem:[%s9000_s10 + $0x30] sm:$0xff]   ;;  %v5744_v28 = vld [vmem:[%s9000_s10 + $0x38] sm:$0xff]  }
 0x4a1   :  { %v5925_v29 = vpop.eup %5924  ;;  %v2807_v18 = vmul.f32 %v5923_v44, %v7883_v47  ;;  %5944 = vrcp.f32 %v2771_v41  ;;  %5319 = vmatpush3.bf16.msra.mxu1 %v5742_v42  ;;  %v3708_v41 = vld [vmem:[#allocation2 + $0x20] sm:$0xf] }
 0x4a2   :  { %v5927_v51 = vpop.eup %5926  ;;  %v7993_v16 = vpack.c.bf16 %v2808_v6, %v2808_v6  ;;  %v2809_v48 = vmul.f32 %v5925_v29, %v7886_v30  ;;  %5946 = vpow2.f32 %v5057_v1  ;;  %v3054_v29 = vld [vmem:[#allocation2 + $0x14] sm:$0xf]  ;;  %5320 = vmatprep.subr.bf16.mxu1 %v5743_v2 }
 0x4a3   :  { %v5929_v33 = vpop.eup %5928  ;;  %v8002_v10 = vpack.c.bf16 %v2807_v18, %v2807_v18  ;;  %v2810_v47 = vmul.f32 %v5927_v51, %v7889_v63  ;;  %5948 = vpow2.f32 %v5058_v46  ;;  %v3711_v51 = vld [vmem:[#allocation2 + $0x34] sm:$0xf] }
 0x4a4   :  { %v5931_v30 = vpop.eup %5930  ;;  %v2948_v12 = vshrl.u32 %v7993_v16, 16  ;;  %v2951_v19 = vshll.u32 %v7993_v16, 16  ;;  %3483 = vst.msk [vmem:[#allocation2 + $0x1c] sm:$0xf] %vm2887_vm8, %v7993_v16  ;;  %v8012_v50 = vpack.c.bf16 %v2809_v48, %v2809_v48  ;;  %v2811_v49 = vmul.f32 %v5929_v33, %v7892_v52  ;;  %v3060_v33 = vld [vmem:[#allocation2 + $0x3c] sm:$0xf] }
 0x4a5   :  { %v8015_v61 = vpop.eup %5932  ;;  %v2941_v63 = vshrl.u32 %v8002_v10, 16  ;;  %v2944_v4 = vshll.u32 %v8002_v10, 16  ;;  %3482 = vst.msk [vmem:[#allocation2 + $0x8] sm:$0xf] %vm2887_vm8, %v8002_v10  ;;  %v8021_v53 = vpack.c.bf16 %v2810_v47, %v2810_v47  ;;  %v2812_v31 = vmul.f32 %v5931_v30, %v7895_v38  ;;  %5321 = vmatpush3.bf16.msra.mxu1 %v5744_v28  ;;  %v3714_v28 = vld [vmem:[#allocation2 + $0x48] sm:$0xf] }
 0x4a6   :  { %v8024_v9 = vpop.eup %5934  ;;  %v2950_v36 = vrot.slane %v2948_v12, 7  ;;  %v8028_v52 = vrot.slane %v2951_v19, 5  ;;  %v2955_v22 = vshrl.u32 %v8012_v50, 16  ;;  %v2958_v39 = vshll.u32 %v8012_v50, 16  ;;  %3484 = vst.msk [vmem:[#allocation2 + $0x30] sm:$0xf] %vm2887_vm8, %v8012_v50 }
 0x4a7   :  { %v8034_v13 = vpop.eup %5936  ;;  %v2943_v23 = vrot.slane %v2941_v63, 7  ;;  %v8044_v15 = vrot.slane %v2944_v4, 5  ;;  %v2962_v32 = vshrl.u32 %v8021_v53, 16  ;;  %v2965_v25 = vshll.u32 %v8021_v53, 16  ;;  %3485 = vst.msk [vmem:[#allocation2 + $0x44] sm:$0xf] %vm2887_vm8, %v8021_v53 }
 0x4a8   :  { %v8050_v62 = vpop.eup %5938  ;;  %v2953_v56 = vor.u32 %v2951_v19, %v2950_v36  ;;  %v2957_v34 = vrot.slane %v2955_v22, 7  ;;  %v8054_v1 = vrot.slane %v2958_v39, 5  ;;  %v8056_v46 = vpack.c.bf16 %v2811_v49, %v2811_v49  ;;  %v5748_v49 = vld [vmem:[%s9000_s10 + $0x100] sm:$0xff]  }
 0x4a9   :  { %v5941_v24 = vpop.eup %5940  ;;  %v2946_v37 = vor.u32 %v2944_v4, %v2943_v23  ;;  %v2964_v14 = vrot.slane %v2962_v32, 7  ;;  %v8066_v8 = vrot.slane %v2965_v25, 5  ;;  %v8068_v17 = vpack.c.bf16 %v2812_v31, %v2812_v31  ;;  %5536 = vmatprep.subr.bf16.mxu1 %v5748_v49 }
 0x4aa   :  { %v8070_v27 = vpop.eup %5942  ;;  %3386 = vrot.lane.b32.xlu1 %v2953_v56, %s6006_s23  ;;  %v3058_v44 = vsel %vm8038_vm4, %v2953_v56, %v3057_v60  ;;  %v3706_v6 = vsel %vm8038_vm4, %v2953_v56, %v3705_v11  ;;  %v2960_v18 = vor.u32 %v2958_v39, %v2957_v34  ;;  %v2969_v48 = vshrl.u32 %v8056_v46, 16  ;;  %3486 = vst.msk [vmem:[#allocation2 + $0x58] sm:$0xf] %vm2887_vm8, %v8056_v46  ;;  %v3063_v39 = vld [vmem:[#allocation2 + $0x50] sm:$0xf] }
 0x4ab   :  { %v8080_v45 = vpop.eup %5944  ;;  %3059 = vst [vmem:[#allocation2 + $0x28] sm:$0xf] %v3058_v44  ;;  %3707 = vst [vmem:[#allocation2 + $0xc] sm:$0xf] %v3706_v6  ;;  %3384 = vrot.lane.b32.xlu0 %v2946_v37, %s6006_s23  ;;  %v3055_v42 = vsel %vm8038_vm4, %v2946_v37, %v3054_v29  ;;  %v2967_v47 = vor.u32 %v2965_v25, %v2964_v14  ;;  %v2972_v30 = vshll.u32 %v8056_v46, 16  ;;  %v2976_v19 = vshrl.u32 %v8068_v17, 16 }
 0x4ac   :  { %3487 = vst.msk [vmem:[#allocation2 + $0x6c] sm:$0xf] %vm2887_vm8, %v8068_v17  ;;  %v8092_v4 = vpop.eup %5946  ;;  %3056 = vst [vmem:[#allocation2 + $0x14] sm:$0xf] %v3055_v42  ;;  %v3061_v31 = vsel %vm8038_vm4, %v2960_v18, %v3060_v33  ;;  %v3709_v36 = vsel %vm8038_vm4, %v2960_v18, %v3708_v41  ;;  %v2971_v11 = vrot.slane %v2969_v48, 7  ;;  %v2979_v23 = vshll.u32 %v8068_v17, 16 }
 0x4ad   :  { %v8101_v25 = vpop.eup %5948  ;;  %3062 = vst [vmem:[#allocation2 + $0x3c] sm:$0xf] %v3061_v31  ;;  %3710 = vst [vmem:[#allocation2 + $0x20] sm:$0xf] %v3709_v36  ;;  %v3064_v56 = vsel %vm8038_vm4, %v2967_v47, %v3063_v39  ;;  %v3712_v34 = vsel %vm8038_vm4, %v2967_v47, %v3711_v51  ;;  %v8107_v2 = vrot.slane %v2972_v30, 5  ;;  %v2978_v60 = vrot.slane %v2976_v19, 7 }
 0x4ae   :  { %3101 = vrot.lane.b32.xlu1 %v7993_v16, %s6006_s23  ;;  %3065 = vst [vmem:[#allocation2 + $0x50] sm:$0xf] %v3064_v56  ;;  %3713 = vst [vmem:[#allocation2 + $0x34] sm:$0xf] %v3712_v34  ;;  %v8113_v37 = vor.u32 %v2972_v30, %v2971_v11  ;;  %v8115_v41 = vrot.slane %v2979_v23, 5  ;;  %v2813_v44 = vmul.f32 %v8015_v61, %v7898_v26  ;;  %v3219_v16 = vrot.slane %v2962_v32, 4 }
 0x4af   :  { %v3717_v14 = vld [vmem:[#allocation2 + $0x5c] sm:$0xf]  ;;  %v2814_v6 = vmul.f32 %v8024_v9, %v7908_v21  ;;  %3099 = vrot.lane.b32.xlu0 %v8002_v10, %s6006_s23  ;;  %v3066_v29 = vld [vmem:[#allocation2 + $0x64] sm:$0xf]  ;;  %v8123_v51 = vor.u32 %v2979_v23, %v2978_v60  ;;  %v2815_v42 = vmul.f32 %v8034_v13, %v7919_v5  ;;  %v2816_v33 = vmul.f32 %v8050_v62, %v7925_v40  ;;  %v3069_v61 = vld [vmem:[#allocation2 + $0x78] sm:$0xf] }
 0x4b0   :  { %v2817_v30 = vmul.f32 %v5941_v24, %v7929_v59  ;;  %v3067_v26 = vsel %vm8038_vm4, %v8113_v37, %v3066_v29  ;;  %v3715_v21 = vsel %vm8038_vm4, %v8113_v37, %v3714_v28  ;;  %v8136_v9 = vpack.c.bf16 %v2813_v44, %v2813_v44  ;;  %v3720_v34 = vld [vmem:[#allocation2 + $0x70] sm:$0xf] }
 0x4b1   :  { %v8138_v49 = vpack.c.bf16 %v2814_v6, %v2814_v6  ;;  %3068 = vst [vmem:[#allocation2 + $0x64] sm:$0xf] %v3067_v26  ;;  %3716 = vst [vmem:[#allocation2 + $0x48] sm:$0xf] %v3715_v21  ;;  %v3070_v5 = vsel %vm8038_vm4, %v8123_v51, %v3069_v61  ;;  %v3718_v40 = vsel %vm8038_vm4, %v8123_v51, %v3717_v14  ;;  %v3723_v14 = vld [vmem:[#allocation2 + $0x84] sm:$0xf] }
 0x4b2   :  { %v8146_v59 = vpack.c.bf16 %v2815_v42, %v2815_v42  ;;  %v8148_v13 = vpack.c.bf16 %v2816_v33, %v2816_v33  ;;  %3388 = vrot.lane.b32.xlu1 %v2960_v18, %s6006_s23  ;;  %3071 = vst [vmem:[#allocation2 + $0x78] sm:$0xf] %v3070_v5  ;;  %3719 = vst [vmem:[#allocation2 + $0x5c] sm:$0xf] %v3718_v40  ;;  %v2983_v62 = vshrl.u32 %v8136_v9, 16  ;;  %v2986_v24 = vshll.u32 %v8136_v9, 16 }
 0x4b3   :  { %3488 = vst.msk [vmem:[#allocation2 + $0x80] sm:$0xf] %vm2887_vm8, %v8136_v9  ;;  %v3371_v31 = vshrl.u32 %v8138_v49, 16  ;;  %v3374_v36 = vshll.u32 %v8138_v49, 16  ;;  %3489 = vst.msk [vmem:[#allocation2 + $0x94] sm:$0xf] %vm2887_vm8, %v8138_v49  ;;  %3390 = vrot.lane.b32.xlu0 %v2967_v47, %s6006_s23  ;;  %v8172_v28 = vpack.c.bf16 %v2817_v30, %v2817_v30  ;;  %v2818_v60 = vmul.f32 %v8070_v27, %v7932_v43 }
 0x4b4   :  { %3490 = vst.msk [vmem:[#allocation2 + $0xa8] sm:$0xf] %vm2887_vm8, %v8146_v59  ;;  %v2997_v18 = vshrl.u32 %v8148_v13, 16  ;;  %v3000_v39 = vshll.u32 %v8148_v13, 16  ;;  %3491 = vst.msk [vmem:[#allocation2 + $0xbc] sm:$0xf] %vm2887_vm8, %v8148_v13  ;;  %v2819_v29 = vmul.f32 %v8080_v45, %v7939_v58 }
 0x4b5   :  { %v2990_v11 = vshrl.u32 %v8146_v59, 16  ;;  %v2993_v23 = vshll.u32 %v8146_v59, 16  ;;  %v2985_v56 = vrot.slane %v2983_v62, 7  ;;  %v3373_v47 = vrot.slane %v3371_v31, 7  ;;  %v3726_v27 = vld [vmem:[#allocation2 + $0xac] sm:$0xf] }
 0x4b6   :  { %v2999_v44 = vrot.slane %v2997_v18, 7  ;;  %v2772_v42 = vadd.f32 1.0, %v8092_v4  ;;  %3105 = vrot.lane.b32.xlu1 %v8021_v53, %s6006_s23  ;;  %3492 = vst.msk [vmem:[#allocation2 + $0xd0] sm:$0xf] %vm2887_vm8, %v8172_v28  ;;  %v3004_v30 = vshrl.u32 %v8172_v28, 16  ;;  %v3007_v58 = vshll.u32 %v8172_v28, 16 }
 0x4b7   :  { %v2992_v6 = vrot.slane %v2990_v11, 7  ;;  %v8187_v33 = vor.u32 %v2986_v24, %v2985_v56  ;;  %v8191_v43 = vor.u32 %v3374_v36, %v3373_v47  ;;  %3103 = vrot.lane.b32.xlu0 %v8012_v50, %s6006_s23  ;;  %v3072_v45 = vld [vmem:[#allocation2 + $0x8c] sm:$0xf]  ;;  %v8207_v21 = vpack.c.bf16 %v2818_v60, %v2818_v60  ;;  %v3078_v47 = vld [vmem:[#allocation2 + $0xc8] sm:$0xf] }
 0x4b8   :  { %v8201_v4 = vor.u32 %v3000_v39, %v2999_v44  ;;  %v8209_v61 = vpack.c.bf16 %v2819_v29, %v2819_v29  ;;  %v3075_v44 = vld [vmem:[#allocation2 + $0xb4] sm:$0xf]  ;;  %v3006_v60 = vrot.slane %v3004_v30, 7  ;;  %v3729_v29 = vld [vmem:[#allocation2 + $0xc0] sm:$0xf]  ;;  %5950 = vrcp.f32 %v2772_v42 }
 0x4b9   :  { %v8205_v26 = vor.u32 %v2993_v23, %v2992_v6  ;;  %v3073_v5 = vsel %vm8038_vm4, %v8187_v33, %v3072_v45  ;;  %v3721_v40 = vsel %vm8038_vm4, %v8187_v33, %v3720_v34  ;;  %v3724_v56 = vsel %vm8038_vm4, %v8191_v43, %v3723_v14  ;;  %3493 = vst.msk [vmem:[#allocation2 + $0xe4] sm:$0xf] %vm2887_vm8, %v8207_v21 }
 0x4ba   :  { %3074 = vst [vmem:[#allocation2 + $0x8c] sm:$0xf] %v3073_v5  ;;  %3722 = vst [vmem:[#allocation2 + $0x70] sm:$0xf] %v3721_v40  ;;  %v3079_v6 = vsel %vm8038_vm4, %v8201_v4, %v3078_v47  ;;  %v3727_v34 = vsel %vm8038_vm4, %v8201_v4, %v3726_v27  ;;  %v3011_v45 = vshrl.u32 %v8207_v21, 16  ;;  %3392 = vrot.lane.b32.xlu1 %v8113_v37, %s6006_s23  ;;  %v3014_v5 = vshll.u32 %v8207_v21, 16 }
 0x4bb   :  { %3725 = vst [vmem:[#allocation2 + $0x84] sm:$0xf] %v3724_v56  ;;  %v3076_v14 = vsel %vm8038_vm4, %v8205_v26, %v3075_v44  ;;  %3494 = vst.msk [vmem:[#allocation2 + $0xf8] sm:$0xf] %vm2887_vm8, %v8209_v61  ;;  %v8240_v27 = vor.u32 %v3007_v58, %v3006_v60  ;;  %v3018_v40 = vshrl.u32 %v8209_v61, 16  ;;  %v3021_v56 = vshll.u32 %v8209_v61, 16  ;;  %3394 = vrot.lane.b32.xlu0 %v8123_v51, %s6006_s23 }
 0x4bc   :  { %3080 = vst [vmem:[#allocation2 + $0xc8] sm:$0xf] %v3079_v6  ;;  %3728 = vst [vmem:[#allocation2 + $0xac] sm:$0xf] %v3727_v34  ;;  %v3081_v47 = vld [vmem:[#allocation2 + $0xdc] sm:$0xf]  ;;  %5952 = vpow2.f32 %v8006_v20 }
 0x4bd   :  { %3077 = vst [vmem:[#allocation2 + $0xb4] sm:$0xf] %v3076_v14  ;;  %v3013_v37 = vrot.slane %v3011_v45, 7  ;;  %v2773_v44 = vadd.f32 1.0, %v8101_v25  ;;  %v3207_v60 = vrot.slane %v2941_v63, 4  ;;  %v3082_v6 = vsel %vm8038_vm4, %v8240_v27, %v3081_v47 }
 0x4be   :  { %v3730_v34 = vsel %vm8038_vm4, %v8240_v27, %v3729_v29  ;;  %v3732_v14 = vld [vmem:[#allocation2 + $0xd4] sm:$0xf]  ;;  %v3020_v51 = vrot.slane %v3018_v40, 7  ;;  %3083 = vst [vmem:[#allocation2 + $0xdc] sm:$0xf] %v3082_v6  ;;  %v3211_v42 = vrot.slane %v2948_v12, 4  ;;  %3109 = vrot.lane.b32.xlu1 %v8068_v17, %s6006_s23 }
 0x4bf   :  { %3731 = vst [vmem:[#allocation2 + $0xc0] sm:$0xf] %v3730_v34  ;;  %v8263_v10 = vor.u32 %v3014_v5, %v3013_v37  ;;  %v3735_v63 = vld [vmem:[#allocation2 + $0xe8] sm:$0xf]  ;;  %5954 = vrcp.f32 %v2773_v44  ;;  %v3209_v25 = vor.u32 %v8044_v15, %v3207_v60  ;;  %v3084_v29 = vld [vmem:[#allocation2 + $0xf0] sm:$0xf]  ;;  %3107 = vrot.lane.b32.xlu0 %v8056_v46, %s6006_s23 }
 0x4c0   :  { %v8272_v20 = vor.u32 %v3021_v56, %v3020_v51  ;;  %v3215_v15 = vrot.slane %v2955_v22, 4  ;;  %v3223_v12 = vrot.slane %v2969_v48, 4  ;;  %v3087_v60 = vld [vmem:[#allocation2 + $0x104] sm:$0xf]  ;;  %v3213_v53 = vor.u32 %v8028_v52, %v3211_v42  ;;  %v3278_v46 = vld [vmem:[#allocation2 + $0x18] sm:$0xf] }
 0x4c1   :  { %v3085_v37 = vsel %vm8038_vm4, %v8263_v10, %v3084_v29  ;;  %v3733_v44 = vsel %vm8038_vm4, %v8263_v10, %v3732_v14  ;;  %v8294_v50 = vrot.slane %v3209_v25, 4  ;;  %v3281_v48 = vld [vmem:[#allocation2 + $0x2c] sm:$0xf]  ;;  %v3821_v6 = vld [vmem:[#allocation2 + $0x10] sm:$0xf]  ;;  %v3221_v14 = vor.u32 %v8066_v8, %v3219_v16 }
 0x4c2   :  { %3086 = vst [vmem:[#allocation2 + $0xf0] sm:$0xf] %v3085_v37  ;;  %3734 = vst [vmem:[#allocation2 + $0xd4] sm:$0xf] %v3733_v44  ;;  %v3088_v22 = vsel %vm8038_vm4, %v8272_v20, %v3087_v60  ;;  %v3736_v32 = vsel %vm8038_vm4, %v8272_v20, %v3735_v63  ;;  %v3217_v34 = vor.u32 %v8054_v1, %v3215_v15  ;;  %v8308_v51 = vrot.slane %v3213_v53, 4 }
 0x4c3   :  { %3089 = vst [vmem:[#allocation2 + $0x104] sm:$0xf] %v3088_v22  ;;  %3737 = vst [vmem:[#allocation2 + $0xe8] sm:$0xf] %v3736_v32  ;;  %v3279_v52 = vsel %vm8276_vm14, %v8294_v50, %v3278_v46  ;;  %v3824_v25 = vld [vmem:[#allocation2 + $0x24] sm:$0xf]  ;;  %v3225_v29 = vor.u32 %v8107_v2, %v3223_v12  ;;  %3396 = vrot.lane.b32.xlu1 %v8187_v33, %s6006_s23  ;;  %3398 = vrot.lane.b32.xlu0 %v8191_v43, %s6006_s23  ;;  %v5951_v22 = vpop.eup %5950 }
 0x4c4   :  { %v3827_v42 = vld [vmem:[#allocation2 + $0x38] sm:$0xf]  ;;  %v3227_v63 = vrot.slane %v2976_v19, 4  ;;  %3280 = vst [vmem:[#allocation2 + $0x18] sm:$0xf] %v3279_v52  ;;  %v8315_v1 = vrot.slane %v3217_v34, 4  ;;  %v3282_v17 = vsel %vm8276_vm14, %v8308_v51, %v3281_v48  ;;  %v3822_v19 = vsel %vm8276_vm14, %v8308_v51, %v3821_v6 }
 0x4c5   :  { %v8317_v8 = vrot.slane %v3221_v14, 4  ;;  %v3830_v15 = vld [vmem:[#allocation2 + $0x4c] sm:$0xf]  ;;  %v3231_v16 = vrot.slane %v2983_v62, 4  ;;  %v3232_v37 = vrot.slane %v2986_v24, 5  ;;  %v8331_v12 = vrot.slane %v3225_v29, 4 }
 0x4c6   :  { %v3284_v2 = vld [vmem:[#allocation2 + $0x40] sm:$0xf]  ;;  %v3287_v33 = vld [vmem:[#allocation2 + $0x54] sm:$0xf]  ;;  %v3229_v62 = vor.u32 %v8115_v41, %v3227_v63  ;;  %3283 = vst [vmem:[#allocation2 + $0x2c] sm:$0xf] %v3282_v17  ;;  %v3825_v43 = vsel %vm8276_vm14, %v8315_v1, %v3824_v25  ;;  %v5953_v52 = vpop.eup %5952  ;;  %v2820_v25 = vmul.f32 %v5951_v22, %v7966_v7 }
 0x4c7   :  { %3823 = vst [vmem:[#allocation2 + $0x10] sm:$0xf] %v3822_v19  ;;  %v3285_v24 = vsel %vm8276_vm14, %v8315_v1, %v3284_v2  ;;  %v3288_v44 = vsel %vm8276_vm14, %v8317_v8, %v3287_v33  ;;  %v3828_v60 = vsel %vm8276_vm14, %v8317_v8, %v3827_v42  ;;  %v3290_v53 = vld [vmem:[#allocation2 + $0x68] sm:$0xf]  ;;  %v3833_v41 = vld [vmem:[#allocation2 + $0x60] sm:$0xf]  ;;  %v3831_v46 = vsel %vm8276_vm14, %v8331_v12, %v3830_v15 }
 0x4c8   :  { %3286 = vst [vmem:[#allocation2 + $0x40] sm:$0xf] %v3285_v24  ;;  %3826 = vst [vmem:[#allocation2 + $0x24] sm:$0xf] %v3825_v43  ;;  %v3291_v32 = vsel %vm8276_vm14, %v8331_v12, %v3290_v53  ;;  %v8352_v48 = vrot.slane %v3229_v62, 4  ;;  %v3233_v34 = vor.u32 %v3232_v37, %v3231_v16  ;;  %3113 = vrot.lane.b32.xlu1 %v8146_v59, %s6006_s23  ;;  %v3548_v29 = vrot.slane %v3371_v31, 4 }
 0x4c9   :  { %3289 = vst [vmem:[#allocation2 + $0x54] sm:$0xf] %v3288_v44  ;;  %3829 = vst [vmem:[#allocation2 + $0x38] sm:$0xf] %v3828_v60  ;;  %v3293_v6 = vld [vmem:[#allocation2 + $0x7c] sm:$0xf]  ;;  %v5955_v16 = vpop.eup %5954  ;;  %3111 = vrot.lane.b32.xlu0 %v8136_v9, %s6006_s23  ;;  %v8379_v9 = vpack.c.bf16 %v2820_v25, %v2820_v25 }
 0x4ca   :  { %v3296_v14 = vld [vmem:[#allocation2 + $0x90] sm:$0xf]  ;;  %3292 = vst [vmem:[#allocation2 + $0x68] sm:$0xf] %v3291_v32  ;;  %3832 = vst [vmem:[#allocation2 + $0x4c] sm:$0xf] %v3831_v46  ;;  %v3294_v7 = vsel %vm8276_vm14, %v8352_v48, %v3293_v6  ;;  %v3834_v17 = vsel %vm8276_vm14, %v8352_v48, %v3833_v41  ;;  %v2821_v19 = vmul.f32 %v5955_v16, %v7969_v55 }
 0x4cb   :  { %v3836_v42 = vld [vmem:[#allocation2 + $0x74] sm:$0xf]  ;;  %v3549_v63 = vrot.slane %v3374_v36, 5  ;;  %v3235_v15 = vrot.slane %v2990_v11, 4  ;;  %v2774_v37 = vadd.f32 1.0, %v5953_v52  ;;  %v8371_v31 = vrot.slane %v3233_v34, 4 }
 0x4cc   :  { %v5759_v36 = vld [vmem:[%s9000_s10 + $0xc0] sm:$0xff]   ;;  %3295 = vst [vmem:[#allocation2 + $0x7c] sm:$0xf] %v3294_v7  ;;  %3835 = vst [vmem:[#allocation2 + $0x60] sm:$0xf] %v3834_v17  ;;  %v3236_v33 = vrot.slane %v2993_v23, 5  ;;  %3400 = vrot.lane.b32.xlu1 %v8205_v26, %s6006_s23  ;;  %v8398_v60 = vpack.c.bf16 %v2821_v19, %v2821_v19 }
 0x4cd   :  { %v5760_v11 = vld [vmem:[%s9000_s10 + $0x80] sm:$0xff]   ;;  %v3550_v2 = vor.u32 %v3549_v63, %v3548_v29  ;;  %5956 = vrcp.f32 %v2774_v37  ;;  %v3325_v62 = vld [vmem:[#allocation2 + $0x18] sm:$0x1]  ;;  %v3297_v24 = vsel %vm8276_vm14, %v8371_v31, %v3296_v14  ;;  %v3837_v43 = vsel %vm8276_vm14, %v8371_v31, %v3836_v42  ;;  %v3839_v44 = vld [vmem:[#allocation2 + $0x88] sm:$0xf]  ;;  %5370 = vmatprep.subr.bf16.mxu0 %v5759_v36  ;;  %3402 = vrot.lane.b32.xlu0 %v8201_v4, %s6006_s23 }
 0x4ce   :  { %v3239_v55 = vrot.slane %v2997_v18, 4  ;;  %v3025_v59 = vshrl.u32 %v8379_v9, 16  ;;  %v3028_v23 = vshll.u32 %v8379_v9, 16  ;;  %3495 = vst.msk [vmem:[#allocation2 + $0x10c] sm:$0xf] %vm2887_vm8, %v8379_v9  ;;  %v3326_v53 = vsel %vm7977_vm13, 0, %v3325_v62  ;;  %5371 = vmatpush3.bf16.msra.mxu0 %v5760_v11 }
 0x4cf   :  { %3298 = vst [vmem:[#allocation2 + $0x90] sm:$0xf] %v3297_v24  ;;  %3838 = vst [vmem:[#allocation2 + $0x74] sm:$0xf] %v3837_v43  ;;  %v5763_v18 = vld [vmem:[%s9000_s10 + $0xc8] sm:$0xff]   ;;  %v8410_v32 = vrot.slane %v3550_v2, 4  ;;  %v3237_v46 = vor.u32 %v3236_v33, %v3235_v15 }
 0x4d0   :  { %v5764_v26 = vld [vmem:[%s9000_s10 + $0x88] sm:$0xff]   ;;  %v3738_v41 = vld [vmem:[#allocation2 + $0xfc] sm:$0xf]  ;;  %3327 = vst [vmem:[#allocation2 + $0x18] sm:$0x1] %v3326_v53  ;;  %v3240_v6 = vrot.slane %v3000_v39, 5  ;;  %5372 = vmatprep.subr.bf16.mxu0 %v5763_v18  ;;  %3117 = vrot.lane.b32.xlu1 %v8172_v28, %s6006_s23 }
 0x4d1   :  { %v3328_v22 = vld [vmem:[#allocation2 + $0x2c] sm:$0x1]  ;;  %v8416_v34 = vrot.slane %v3004_v30, 4  ;;  %v3027_v14 = vrot.slane %v3025_v59, 7  ;;  %3496 = vst.msk [vmem:[#allocation2 + $0x120] sm:$0xf] %vm2887_vm8, %v8398_v60  ;;  %v3840_v7 = vsel %vm8276_vm14, %v8410_v32, %v3839_v44  ;;  %3115 = vrot.lane.b32.xlu0 %v8148_v13, %s6006_s23 }
 0x4d2   :  { %v3032_v4 = vshrl.u32 %v8398_v60, 16  ;;  %v3035_v52 = vshll.u32 %v8398_v60, 16  ;;  %v3329_v25 = vsel %vm7977_vm13, 0, %v3328_v22  ;;  %v3331_v42 = vld [vmem:[#allocation2 + $0x40] sm:$0x1]  ;;  %v8431_v17 = vrot.slane %v3237_v46, 4  ;;  %5373 = vmatpush3.bf16.msra.mxu0 %v5764_v26 }
 0x4d3   :  { %v3299_v39 = vld [vmem:[#allocation2 + $0xb8] sm:$0xf]  ;;  %v3842_v29 = vld [vmem:[#allocation2 + $0xb0] sm:$0xf]  ;;  %3330 = vst [vmem:[#allocation2 + $0x2c] sm:$0x1] %v3329_v25  ;;  %v3241_v36 = vor.u32 %v3240_v6, %v3239_v55  ;;  %v8437_v11 = vor.u32 %v3028_v23, %v3027_v14 }
 0x4d4   :  { %v3090_v30 = vld [vmem:[#allocation2 + $0x118] sm:$0xf]  ;;  %v3741_v63 = vld [vmem:[#allocation2 + $0x110] sm:$0xf]  ;;  %v3332_v15 = vsel %vm7977_vm13, 0, %v3331_v42  ;;  %v3034_v19 = vrot.slane %v3032_v4, 7  ;;  %v3300_v44 = vsel %vm8276_vm14, %v8431_v17, %v3299_v39  ;;  %3406 = vrot.lane.b32.xlu1 %v8263_v10, %s6006_s23 }
 0x4d5   :  { %v3334_v16 = vld [vmem:[#allocation2 + $0x54] sm:$0x1]  ;;  %v3337_v37 = vld [vmem:[#allocation2 + $0x68] sm:$0x1]  ;;  %3333 = vst [vmem:[#allocation2 + $0x40] sm:$0x1] %v3332_v15  ;;  %v3091_v26 = vsel %vm8038_vm4, %v8437_v11, %v3090_v30  ;;  %v3739_v22 = vsel %vm8038_vm4, %v8437_v11, %v3738_v41  ;;  %3404 = vrot.lane.b32.xlu0 %v8240_v27, %s6006_s23 }
 0x4d6   :  { %v3335_v2 = vsel %vm7977_vm13, 0, %v3334_v16  ;;  %v3338_v33 = vsel %vm7977_vm13, 0, %v3337_v37  ;;  %3841 = vst [vmem:[#allocation2 + $0x88] sm:$0xf] %v3840_v7  ;;  %v3302_v62 = vld [vmem:[#allocation2 + $0xcc] sm:$0xf]  ;;  %v8467_v46 = vor.u32 %v3035_v52, %v3034_v19 }
 0x4d7   :  { %v3093_v24 = vld [vmem:[#allocation2 + $0x12c] sm:$0xf]  ;;  %3336 = vst [vmem:[#allocation2 + $0x54] sm:$0x1] %v3335_v2  ;;  %3339 = vst [vmem:[#allocation2 + $0x68] sm:$0x1] %v3338_v33  ;;  %v5957_v37 = vpop.eup %5956 }
 0x4d8   :  { %v3340_v43 = vld [vmem:[#allocation2 + $0x7c] sm:$0x1]  ;;  %v8450_v55 = vrot.slane %v3241_v36, 4  ;;  %v3244_v53 = vrot.slane %v3007_v58, 5  ;;  %v3247_v18 = vrot.slane %v3011_v45, 4  ;;  %v5767_v13 = vld [vmem:[%s9000_s10 + $0xd0] sm:$0xff]   ;;  %v3094_v39 = vsel %vm8038_vm4, %v8467_v46, %v3093_v24  ;;  %3121 = vrot.lane.b32.xlu1 %v8209_v61, %s6006_s23 }
 0x4d9   :  { %v3341_v28 = vsel %vm7977_vm13, 0, %v3340_v43  ;;  %3301 = vst [vmem:[#allocation2 + $0xb8] sm:$0xf] %v3300_v44  ;;  %v3845_v58 = vld [vmem:[#allocation2 + $0xc4] sm:$0xf]  ;;  %v5768_v45 = vld [vmem:[%s9000_s10 + $0x90] sm:$0xff]   ;;  %5374 = vmatprep.subr.bf16.mxu0 %v5767_v13  ;;  %v3742_v30 = vsel %vm8038_vm4, %v8467_v46, %v3741_v63  ;;  %v2822_v2 = vmul.f32 %v5957_v37, %v7974_v0  ;;  %3119 = vrot.lane.b32.xlu0 %v8207_v21, %s6006_s23 }
 0x4da   :  { %3092 = vst [vmem:[#allocation2 + $0x118] sm:$0xf] %v3091_v26  ;;  %3740 = vst [vmem:[#allocation2 + $0xfc] sm:$0xf] %v3739_v22  ;;  %v3343_v6 = vld [vmem:[#allocation2 + $0x90] sm:$0x1]  ;;  %v3303_v41 = vsel %vm8276_vm14, %v8450_v55, %v3302_v62  ;;  %v3843_v14 = vsel %vm8276_vm14, %v8450_v55, %v3842_v29  ;;  %v3245_v25 = vor.u32 %v3244_v53, %v8416_v34  ;;  %5375 = vmatpush3.bf16.msra.mxu0 %v5768_v45 }
 0x4db   :  { %3342 = vst [vmem:[#allocation2 + $0x7c] sm:$0x1] %v3341_v28  ;;  %v3248_v42 = vrot.slane %v3014_v5, 5  ;;  %v3344_v29 = vsel %vm7977_vm13, 0, %v3343_v6  ;;  %3304 = vst [vmem:[#allocation2 + $0xcc] sm:$0xf] %v3303_v41 }
 0x4dc   :  { %3844 = vst [vmem:[#allocation2 + $0xb0] sm:$0xf] %v3843_v14  ;;  %v3305_v34 = vld [vmem:[#allocation2 + $0xe0] sm:$0xf]  ;;  %v3848_v15 = vld [vmem:[#allocation2 + $0xd8] sm:$0xf]  ;;  %3410 = vrot.lane.b32.xlu1 %v8437_v11, %s6006_s23 }
 0x4dd   :  { %v3251_v5 = vrot.slane %v3018_v40, 4  ;;  %v3183_v16 = vld [vmem:[#allocation2 + $0xa4] sm:$0x8]  ;;  %v5771_v10 = vld [vmem:[%s9000_s10 + $0xd8] sm:$0xff]   ;;  %3095 = vst [vmem:[#allocation2 + $0x12c] sm:$0xf] %v3094_v39  ;;  %v3249_v40 = vor.u32 %v3248_v42, %v3247_v18  ;;  %3408 = vrot.lane.b32.xlu0 %v8272_v20, %s6006_s23 }
 0x4de   :  { %v5772_v63 = vld [vmem:[%s9000_s10 + $0x98] sm:$0xff]   ;;  %3743 = vst [vmem:[#allocation2 + $0x110] sm:$0xf] %v3742_v30  ;;  %3345 = vst [vmem:[#allocation2 + $0x90] sm:$0x1] %v3344_v29  ;;  %v8503_v7 = vrot.slane %v3245_v25, 4  ;;  %5376 = vmatprep.subr.bf16.mxu0 %v5771_v10 }
 0x4df   :  { %v3252_v36 = vrot.slane %v3021_v56, 5  ;;  %v3255_v19 = vrot.slane %v3025_v59, 4  ;;  %v3308_v33 = vld [vmem:[#allocation2 + $0xf4] sm:$0xf]  ;;  %v3256_v62 = vrot.slane %v3028_v23, 5  ;;  %v3259_v27 = vrot.slane %v3032_v4, 4  ;;  %5377 = vmatpush3.bf16.msra.mxu0 %v5772_v63 }
 0x4e0   :  { %v3260_v24 = vrot.slane %v3035_v52, 5  ;;  %v3346_v43 = vld [vmem:[#allocation2 + $0xa4] sm:$0x1]  ;;  %v3306_v56 = vsel %vm8276_vm14, %v8503_v7, %v3305_v34  ;;  %v3846_v0 = vsel %vm8276_vm14, %v8503_v7, %v3845_v58  ;;  %v8522_v59 = vrot.slane %v3249_v40, 4  ;;  %v3851_v23 = vld [vmem:[#allocation2 + $0xec] sm:$0xf]  ;;  %3125 = vrot.lane.b32.xlu1 %v8398_v60, %s6006_s23 }
 0x4e1   :  { %v3253_v44 = vor.u32 %v3252_v36, %v3251_v5  ;;  %v3854_v53 = vld [vmem:[#allocation2 + $0x100] sm:$0xf]  ;;  %v8526_v4 = vpack.c.bf16 %v2822_v2, %v2822_v2  ;;  %3307 = vst [vmem:[#allocation2 + $0xe0] sm:$0xf] %v3306_v56  ;;  %3847 = vst [vmem:[#allocation2 + $0xc4] sm:$0xf] %v3846_v0  ;;  %v3257_v18 = vor.u32 %v3256_v62, %v3255_v19  ;;  %3123 = vrot.lane.b32.xlu0 %v8379_v9, %s6006_s23 }
 0x4e2   :  { %v3311_v52 = vld [vmem:[#allocation2 + $0x108] sm:$0xf]  ;;  %v3261_v13 = vor.u32 %v3260_v24, %v3259_v27  ;;  %v3317_v26 = vld [vmem:[#allocation2 + $0x130] sm:$0xf]  ;;  %v3857_v22 = vld [vmem:[#allocation2 + $0x114] sm:$0xf]  ;;  %v3309_v6 = vsel %vm8276_vm14, %v8522_v59, %v3308_v33  ;;  %v3849_v35 = vsel %vm8276_vm14, %v8522_v59, %v3848_v15 }
 0x4e3   :  { %v3184_v28 = vsel %vm7311_vm11, 0, %v3183_v16  ;;  %v3500_v61 = vld [vmem:[#allocation2 + $0x8] sm:$0x8]  ;;  %v3349_v45 = vld [vmem:[#allocation2 + $0xb8] sm:$0x1]  ;;  %v8544_v41 = vrot.slane %v3253_v44, 4 }
 0x4e4   :  { %v3314_v14 = vld [vmem:[#allocation2 + $0x11c] sm:$0xf]  ;;  %3185 = vst [vmem:[#allocation2 + $0xa4] sm:$0x8] %v3184_v28  ;;  %v3347_v25 = vsel %vm7977_vm13, 0, %v3346_v43  ;;  %v5774_v21 = vld [vmem:[%s9000_s10 + $0xe0] sm:$0xff]  }
 0x4e5   :  { %v5775_v42 = vld [vmem:[%s9000_s10 + $0xa0] sm:$0xff]   ;;  %v3503_v39 = vld [vmem:[#allocation2 + $0x1c] sm:$0x8]  ;;  %v3506_v30 = vld [vmem:[#allocation2 + $0x30] sm:$0x8]  ;;  %v3378_v34 = vshrl.u32 %v8526_v4, 16  ;;  %v3312_v19 = vsel %vm8276_vm14, %v8544_v41, %v3311_v52  ;;  %v3852_v2 = vsel %vm8276_vm14, %v8544_v41, %v3851_v23  ;;  %5378 = vmatprep.subr.bf16.mxu0 %v5774_v21  ;;  %3412 = vrot.lane.b32.xlu0 %v8467_v46, %s6006_s23 }
 0x4e6   :  { %v3509_v29 = vld [vmem:[#allocation2 + $0x44] sm:$0x8]  ;;  %v3381_v15 = vshll.u32 %v8526_v4, 16  ;;  %3497 = vst.msk [vmem:[#allocation2 + $0x134] sm:$0xf] %vm2887_vm8, %v8526_v4  ;;  %v3350_v5 = vsel %vm7977_vm13, 0, %v3349_v45  ;;  %5379 = vmatpush3.bf16.msra.mxu0 %v5775_v42 }
 0x4e7   :  { %3310 = vst [vmem:[#allocation2 + $0xf4] sm:$0xf] %v3309_v6  ;;  %3850 = vst [vmem:[#allocation2 + $0xd8] sm:$0xf] %v3849_v35  ;;  %v8560_v16 = vrot.slane %v3257_v18, 4  ;;  %v8568_v33 = vrot.slane %v3261_v13, 4 }
 0x4e8   :  { %3348 = vst [vmem:[#allocation2 + $0xa4] sm:$0x1] %v3347_v25  ;;  %v3512_v10 = vld [vmem:[#allocation2 + $0x58] sm:$0x8]  ;;  %v3515_v63 = vld [vmem:[#allocation2 + $0x6c] sm:$0x8] }
 0x4e9   :  { %v3518_v37 = vld [vmem:[#allocation2 + $0x80] sm:$0x8]  ;;  %v3744_v40 = vld [vmem:[#allocation2 + $0x124] sm:$0xf]  ;;  %3351 = vst [vmem:[#allocation2 + $0xb8] sm:$0x1] %v3350_v5  ;;  %v3315_v56 = vsel %vm8276_vm14, %v8560_v16, %v3314_v14  ;;  %v3855_v0 = vsel %vm8276_vm14, %v8560_v16, %v3854_v53  ;;  %v3318_v11 = vsel %vm8276_vm14, %v8568_v33, %v3317_v26  ;;  %v3858_v23 = vsel %vm8276_vm14, %v8568_v33, %v3857_v22 }
 0x4ea   :  { %v3352_v36 = vld [vmem:[#allocation2 + $0xcc] sm:$0x1]  ;;  %v3501_v62 = vsel %vm8532_vm5, 0, %v3500_v61  ;;  %v3521_v27 = vld [vmem:[#allocation2 + $0x94] sm:$0x8]  ;;  %v3380_v24 = vrot.slane %v3378_v34, 7  ;;  %3556 = vrot.lane.b32.xlu0 %v8294_v50, %s6006_s23 }
 0x4eb   :  { %v3353_v43 = vsel %vm7977_vm13, 0, %v3352_v36  ;;  %3313 = vst [vmem:[#allocation2 + $0x108] sm:$0xf] %v3312_v19  ;;  %3853 = vst [vmem:[#allocation2 + $0xec] sm:$0xf] %v3852_v2  ;;  %v3552_v52 = vrot.slane %v3378_v34, 4 }
 0x4ec   :  { %3502 = vst [vmem:[#allocation2 + $0x8] sm:$0x8] %v3501_v62  ;;  %v3524_v44 = vld [vmem:[#allocation2 + $0xa8] sm:$0x8]  ;;  %3354 = vst [vmem:[#allocation2 + $0xcc] sm:$0x1] %v3353_v43  ;;  %v3383_v61 = vor.u32 %v3381_v15, %v3380_v24 }
 0x4ed   :  { %3316 = vst [vmem:[#allocation2 + $0x11c] sm:$0xf] %v3315_v56  ;;  %3856 = vst [vmem:[#allocation2 + $0x100] sm:$0xf] %v3855_v0  ;;  %v3553_v18 = vrot.slane %v3381_v15, 5  ;;  %v5778_v53 = vld [vmem:[%s9000_s10 + $0xe8] sm:$0xff]  }
 0x4ee   :  { %v5779_v20 = vld [vmem:[%s9000_s10 + $0xa8] sm:$0xff]   ;;  %v3527_v13 = vld [vmem:[#allocation2 + $0xbc] sm:$0x8]  ;;  %v3530_v28 = vld [vmem:[#allocation2 + $0xd0] sm:$0x8]  ;;  %v3504_v45 = vsel %vm8532_vm5, 0, %v3503_v39  ;;  %5380 = vmatprep.subr.bf16.mxu0 %v5778_v53  ;;  %3414 = vrot.lane.b32.xlu1 %v3383_v61, %s6006_s23 }
 0x4ef   :  { %3319 = vst [vmem:[#allocation2 + $0x130] sm:$0xf] %v3318_v11  ;;  %3859 = vst [vmem:[#allocation2 + $0x114] sm:$0xf] %v3858_v23  ;;  %v3860_v26 = vld [vmem:[#allocation2 + $0x128] sm:$0xf]  ;;  %v3554_v25 = vor.u32 %v3553_v18, %v3552_v52  ;;  %5381 = vmatpush3.bf16.msra.mxu0 %v5779_v20  ;;  %3560 = vrot.lane.b32.xlu0 %v8315_v1, %s6006_s23 }
 0x4f0   :  { %v3507_v22 = vsel %vm8532_vm5, 0, %v3506_v30  ;;  %v3510_v6 = vsel %vm8532_vm5, 0, %v3509_v29  ;;  %v3533_v35 = vld [vmem:[#allocation2 + $0xe4] sm:$0x8]  ;;  %v3355_v14 = vld [vmem:[#allocation2 + $0xe0] sm:$0x1]  ;;  %v3745_v30 = vsel %vm8038_vm4, %v3383_v61, %v3744_v40 }
 0x4f1   :  { %3505 = vst [vmem:[#allocation2 + $0x1c] sm:$0x8] %v3504_v45  ;;  %3508 = vst [vmem:[#allocation2 + $0x30] sm:$0x8] %v3507_v22  ;;  %v3513_v21 = vsel %vm8532_vm5, 0, %v3512_v10  ;;  %v3516_v42 = vsel %vm8532_vm5, 0, %v3515_v63 }
 0x4f2   :  { %3511 = vst [vmem:[#allocation2 + $0x44] sm:$0x8] %v3510_v6  ;;  %v3519_v39 = vsel %vm8532_vm5, 0, %v3518_v37  ;;  %v3356_v29 = vsel %vm7977_vm13, 0, %v3355_v14  ;;  %3514 = vst [vmem:[#allocation2 + $0x58] sm:$0x8] %v3513_v21  ;;  %3558 = vrot.lane.b32.xlu1 %v8308_v51, %s6006_s23 }
 0x4f3   :  { %3517 = vst [vmem:[#allocation2 + $0x6c] sm:$0x8] %v3516_v42  ;;  %3520 = vst [vmem:[#allocation2 + $0x80] sm:$0x8] %v3519_v39  ;;  %v3522_v34 = vsel %vm8532_vm5, 0, %v3521_v27  ;;  %v3525_v15 = vsel %vm8532_vm5, 0, %v3524_v44  ;;  %3564 = vrot.lane.b32.xlu0 %v8331_v12, %s6006_s23 }
 0x4f4   :  { %v3536_v5 = vld [vmem:[#allocation2 + $0xf8] sm:$0x8]  ;;  %3746 = vst [vmem:[#allocation2 + $0x124] sm:$0xf] %v3745_v30  ;;  %3357 = vst [vmem:[#allocation2 + $0xe0] sm:$0x1] %v3356_v29 }
 0x4f5   :  { %v3358_v38 = vld [vmem:[#allocation2 + $0xf4] sm:$0x1]  ;;  %v8620_v60 = vrot.slane %v3554_v25, 4  ;;  %3523 = vst [vmem:[#allocation2 + $0x94] sm:$0x8] %v3522_v34  ;;  %v3528_v9 = vsel %vm8532_vm5, 0, %v3527_v13 }
 0x4f6   :  { %v5782_v10 = vld [vmem:[%s9000_s10 + $0xf0] sm:$0xff]   ;;  %3526 = vst [vmem:[#allocation2 + $0xa8] sm:$0x8] %v3525_v15  ;;  %v3539_v63 = vld [vmem:[#allocation2 + $0x10c] sm:$0x8]  ;;  %v3359_v37 = vsel %vm7977_vm13, 0, %v3358_v38  ;;  %3562 = vrot.lane.b32.xlu1 %v8317_v8, %s6006_s23 }
 0x4f7   :  { %v5783_v40 = vld [vmem:[%s9000_s10 + $0xb0] sm:$0xff]   ;;  %v3531_v36 = vsel %vm8532_vm5, 0, %v3530_v28  ;;  %3360 = vst [vmem:[#allocation2 + $0xf4] sm:$0x1] %v3359_v37  ;;  %v3361_v19 = vld [vmem:[#allocation2 + $0x108] sm:$0x1]  ;;  %v3861_v2 = vsel %vm8276_vm14, %v8620_v60, %v3860_v26  ;;  %5382 = vmatprep.subr.bf16.mxu0 %v5782_v10  ;;  %3568 = vrot.lane.b32.xlu0 %v8371_v31, %s6006_s23 }
 0x4f8   :  { %3529 = vst [vmem:[#allocation2 + $0xbc] sm:$0x8] %v3528_v9  ;;  %3532 = vst [vmem:[#allocation2 + $0xd0] sm:$0x8] %v3531_v36  ;;  %v3534_v62 = vsel %vm8532_vm5, 0, %v3533_v35  ;;  %v3537_v27 = vsel %vm8532_vm5, 0, %v3536_v5  ;;  %5383 = vmatpush3.bf16.msra.mxu0 %v5783_v40 }
 0x4f9   :  { %v3362_v24 = vsel %vm7977_vm13, 0, %v3361_v19  ;;  %v3364_v43 = vld [vmem:[#allocation2 + $0x11c] sm:$0x1]  ;;  %3862 = vst [vmem:[#allocation2 + $0x128] sm:$0xf] %v3861_v2  ;;  %v3540_v47 = vsel %vm8532_vm5, 0, %v3539_v63 }
 0x4fa   :  { %3535 = vst [vmem:[#allocation2 + $0xe4] sm:$0x8] %v3534_v62  ;;  %3538 = vst [vmem:[#allocation2 + $0xf8] sm:$0x8] %v3537_v27  ;;  %v3365_v56 = vsel %vm7977_vm13, 0, %v3364_v43  ;;  %v5786_v44 = vld [vmem:[%s9000_s10 + $0xf8] sm:$0xff]   ;;  %3566 = vrot.lane.b32.xlu1 %v8352_v48, %s6006_s23 }
 0x4fb   :  { %3363 = vst [vmem:[#allocation2 + $0x108] sm:$0x1] %v3362_v24  ;;  %v3367_v0 = vld [vmem:[#allocation2 + $0x130] sm:$0x1]  ;;  %v5787_v11 = vld [vmem:[%s9000_s10 + $0xb8] sm:$0xff]   ;;  %5384 = vmatprep.subr.bf16.mxu0 %v5786_v44  ;;  %3749 = vrot.lane.b32.xlu0 %v8138_v49, %s6006_s23  ;;  %v5754_v28 = vld [vmem:[%s9000_s10 + $0x108] sm:$0xff]  }
 0x4fc   :  { %3541 = vst [vmem:[#allocation2 + $0x10c] sm:$0x8] %v3540_v47  ;;  %3366 = vst [vmem:[#allocation2 + $0x11c] sm:$0x1] %v3365_v56  ;;  %v3368_v23 = vsel %vm7977_vm13, 0, %v3367_v0  ;;  %5385 = vmatpush3.bf16.msra.mxu0 %v5787_v11  ;;  %v5958_v35 = vld [vmem:[%s9000_s10 + $0x100] sm:$0xff]  }
 0x4fd   :  { %3369 = vst [vmem:[#allocation2 + $0x130] sm:$0x1] %v3368_v23  ;;  %v3542_v46 = vld [vmem:[#allocation2 + $0x120] sm:$0x8]  ;;  %v3545_v57 = vld [vmem:[#allocation2 + $0x134] sm:$0x8] }
 0x4fe   :  { %v3543_v52 = vsel %vm8532_vm5, 0, %v3542_v46  ;;  %v3546_v51 = vsel %vm8532_vm5, 0, %v3545_v57  ;;  %3570 = vrot.lane.b32.xlu1 %v8410_v32, %s6006_s23  ;;  %v3676_v50 = vld [vmem:[#allocation2 + $0x98] sm:$0x1]  ;;  %v3434_v48 = vld [vmem:[#allocation2 + $0x4] sm:$0xf] }
 0x4ff   :  { %3544 = vst [vmem:[#allocation2 + $0x120] sm:$0x8] %v3543_v52  ;;  %3547 = vst [vmem:[#allocation2 + $0x134] sm:$0x8] %v3546_v51  ;;  %v3677_v1 = vsel %vm7294_vm12, 0, %v3676_v50  ;;  %3574 = vrot.lane.b32.xlu0 %v8450_v55, %s6006_s23  ;;  %v5765_v25 = vld [vmem:[%s9000_s10 + $0x110] sm:$0xff]  }
 0x500   :  { %3678 = vst [vmem:[#allocation2 + $0x98] sm:$0x1] %v3677_v1  ;;  %v3700_v49 = vld [vmem:[#allocation2 + $0x138] sm:$0x1]  ;;  %v3446_v61 = vld [vmem:[#allocation2 + $0x54] sm:$0xf] }
 0x501   :  { %3747 = vst.msk [vmem:[#allocation2 + $0x98] sm:$0xf] %vm3096_vm15, %v9028_v3  ;;  %v3701_v8 = vsel %vm7294_vm12, 0, %v3700_v49  ;;  %v3437_v32 = vld [vmem:[#allocation2 + $0x18] sm:$0xf]  ;;  %v8754_v63 = vld [vmem:[%s9002_s12] sm:$0xff]   ;;  %vm8790_vm12 = vmand %vm3096_vm15, %vm9068_vm10 }
 0x502   :  { %3572 = vrot.lane.b32.xlu1 %v8431_v17, %s6006_s23  ;;  %3702 = vst [vmem:[#allocation2 + $0x138] sm:$0x1] %v3701_v8  ;;  %v3449_v22 = vld [vmem:[#allocation2 + $0x68] sm:$0xf]  ;;  %v5780_v29 = vld [vmem:[%s9000_s10 + $0x118] sm:$0xff]  }
 0x503   :  { %3578 = vrot.lane.b32.xlu0 %v8522_v59, %s6006_s23  ;;  %3748 = vst.msk [vmem:[#allocation2 + $0x138] sm:$0xf] %vm3096_vm15, %v9028_v3  ;;  %v3440_v59 = vld [vmem:[#allocation2 + $0x2c] sm:$0xf]  ;;  %v3452_v34 = vld [vmem:[#allocation2 + $0x7c] sm:$0xf] }
 0x504   :  { %v3455_v38 = vld [vmem:[#allocation2 + $0x90] sm:$0xf]  ;;  %v3458_v19 = vld [vmem:[#allocation2 + $0xa4] sm:$0xf]  ;;  %v3461_v27 = vld [vmem:[#allocation2 + $0xb8] sm:$0xf] }
 0x505   :  { %v3467_v11 = vld [vmem:[#allocation2 + $0xe0] sm:$0xf]  ;;  %v3464_v46 = vld [vmem:[#allocation2 + $0xcc] sm:$0xf] }
 0x506   :  { %3576 = vrot.lane.b32.xlu1 %v8503_v7, %s6006_s23 }
 0x507   :  { %3582 = vrot.lane.b32.xlu0 %v8560_v16, %s6006_s23 }
 0x50a   :  { %3580 = vrot.lane.b32.xlu1 %v8544_v41, %s6006_s23  ;;  %v3443_v41 = vld [vmem:[#allocation2 + $0x40] sm:$0xf] }
 0x50b   :  { %3586 = vrot.lane.b32.xlu0 %v8620_v60, %s6006_s23 }
 0x50e   :  { %3584 = vrot.lane.b32.xlu1 %v8568_v33, %s6006_s23 }
 0x512   :  { %3751 = vrot.lane.b32.xlu1 %v8526_v4, %s6006_s23 }
 0x51c   :  { %v3387_v31 = vpop.permute.xlu1 %3386 }
 0x51d   :  { %v3438_v17 = vsel %vm8708_vm7, %v3387_v31, %v3437_v32  ;;  %v3385_v55 = vpop.permute.xlu0 %3384  ;;  %v3470_v32 = vld [vmem:[#allocation2 + $0xf4] sm:$0xf] }
 0x51e   :  { %3439 = vst [vmem:[#allocation2 + $0x18] sm:$0xf] %v3438_v17  ;;  %v3435_v54 = vsel %vm8708_vm7, %v3385_v55, %v3434_v48  ;;  %v3473_v48 = vld [vmem:[#allocation2 + $0x108] sm:$0xf] }
 0x51f   :  { %3436 = vst [vmem:[#allocation2 + $0x4] sm:$0xf] %v3435_v54 }
 0x520   :  { %v3102_v7 = vpop.permute.xlu1 %3101 }
 0x521   :  { %3142 = vst.msk [vmem:[#allocation2 + $0x28] sm:$0xf] %vm3096_vm15, %v3102_v7  ;;  %3755 = vst.msk [vmem:[#allocation2 + $0xc] sm:$0xf] %vm3096_vm15, %v3102_v7  ;;  %v3100_v3 = vpop.permute.xlu0 %3099 }
 0x522   :  { %3141 = vst.msk [vmem:[#allocation2 + $0x14] sm:$0xf] %vm3096_vm15, %v3100_v3 }
 0x524   :  { %v3389_v4 = vpop.permute.xlu1 %3388 }
 0x525   :  { %v3441_v58 = vsel %vm8708_vm7, %v3389_v4, %v3440_v59  ;;  %v3391_v16 = vpop.permute.xlu0 %3390 }
 0x526   :  { %3442 = vst [vmem:[#allocation2 + $0x2c] sm:$0xf] %v3441_v58  ;;  %v3444_v33 = vsel %vm8708_vm7, %v3391_v16, %v3443_v41  ;;  %v5747_v13 = vld [vmem:[#allocation2 + $0x4] ss:$20 sps:$4 sm:$0xff]   ;;  %v3479_v58 = vld [vmem:[#allocation2 + $0x130] sm:$0xf] }
 0x527   :  { %3445 = vst [vmem:[#allocation2 + $0x40] sm:$0xf] %v3444_v33  ;;  %4455 = vmatprep.mubr.bf16.mxu1 %v5747_v13  ;;  %v3476_v16 = vld [vmem:[#allocation2 + $0x11c] sm:$0xf] }
 0x528   :  { %v3106_v18 = vpop.permute.xlu1 %3105 }
 0x529   :  { %3144 = vst.msk [vmem:[#allocation2 + $0x50] sm:$0xf] %vm3096_vm15, %v3106_v18  ;;  %3757 = vst.msk [vmem:[#allocation2 + $0x34] sm:$0xf] %vm3096_vm15, %v3106_v18  ;;  %v3104_v53 = vpop.permute.xlu0 %3103  ;;  %v5745_v20 = vld [vmem:[#allocation2] ss:$20 sps:$4 sm:$0xff]  }
 0x52a   :  { %3143 = vst.msk [vmem:[#allocation2 + $0x3c] sm:$0xf] %vm3096_vm15, %v3104_v53  ;;  %3756 = vst.msk [vmem:[#allocation2 + $0x20] sm:$0xf] %vm3096_vm15, %v3104_v53  ;;  %4456 = vmatmul.mubr.bf16.vlgmr.msra.gmra.mrb[8].mxu1 %v5745_v20  ;;  %v5960_v20 = vld [vmem:[%s8990_s0 + $0x8] sm:$0xff] }
 0x52b   :  { %5537 = vmatpush3.bf16.msra.mxu1 %v5958_v35  ;;  %v3614_v35 = vld [vmem:[#allocation2 + $0x44] sm:$0xf] }
 0x52c   :  { %v3393_v26 = vpop.permute.xlu1 %3392  ;;  %5538 = vmatprep.subr.bf16.mxu1 %v5754_v28 }
 0x52d   :  { %v3447_v45 = vsel %vm8708_vm7, %v3393_v26, %v3446_v61  ;;  %v3395_v6 = vpop.permute.xlu0 %3394  ;;  %v3605_v26 = vld [vmem:[#allocation2 + $0x8] sm:$0xf] }
 0x52e   :  { %3448 = vst [vmem:[#allocation2 + $0x54] sm:$0xf] %v3447_v45  ;;  %v3450_v14 = vsel %vm8708_vm7, %v3395_v6, %v3449_v22  ;;  %v5749_v39 = vld [vmem:[#allocation2 + $0x2c] ss:$20 sps:$4 sm:$0xff]  }
 0x52f   :  { %3451 = vst [vmem:[#allocation2 + $0x68] sm:$0xf] %v3450_v14  ;;  %5539 = vmatpush3.bf16.msra.mxu1 %v5754_v28  ;;  %4463 = vmatprep.mubr.bf16.mxu1 %v5749_v39  ;;  %v3608_v28 = vld [vmem:[#allocation2 + $0x1c] sm:$0xf] }
 0x530   :  { %v3110_v21 = vpop.permute.xlu1 %3109  ;;  %5540 = vmatprep.subr.bf16.mxu1 %v5765_v25 }
 0x531   :  { %3146 = vst.msk [vmem:[#allocation2 + $0x78] sm:$0xf] %vm3096_vm15, %v3110_v21  ;;  %3759 = vst.msk [vmem:[#allocation2 + $0x5c] sm:$0xf] %vm3096_vm15, %v3110_v21  ;;  %v3108_v42 = vpop.permute.xlu0 %3107  ;;  %v5751_v30 = vld [vmem:[#allocation2 + $0x28] ss:$20 sps:$4 sm:$0xff]  }
 0x532   :  { %3145 = vst.msk [vmem:[#allocation2 + $0x64] sm:$0xf] %vm3096_vm15, %v3108_v42  ;;  %3758 = vst.msk [vmem:[#allocation2 + $0x48] sm:$0xf] %vm3096_vm15, %v3108_v42  ;;  %4464 = vmatmul.mubr.bf16.gmra.mrb[12].mxu1 %v5751_v30 }
 0x533   :  { %5541 = vmatpush3.bf16.msra.mxu1 %v5765_v25  ;;  %v3611_v25 = vld [vmem:[#allocation2 + $0x30] sm:$0xf] }
 0x534   :  { %5542 = vmatprep.subr.bf16.mxu1 %v5780_v29 }
 0x535   :  { %v3397_v15 = vpop.permute.xlu1 %3396  ;;  %v3399_v60 = vpop.permute.xlu0 %3398 }
 0x536   :  { %v3453_v5 = vsel %vm8708_vm7, %v3397_v15, %v3452_v34  ;;  %v3456_v10 = vsel %vm8708_vm7, %v3399_v60, %v3455_v38  ;;  %v5752_v9 = vld [vmem:[#allocation2 + $0x54] ss:$20 sps:$4 sm:$0xff]   ;;  %v3617_v15 = vld [vmem:[#allocation2 + $0x58] sm:$0xf] }
 0x537   :  { %3454 = vst [vmem:[#allocation2 + $0x7c] sm:$0xf] %v3453_v5  ;;  %3457 = vst [vmem:[#allocation2 + $0x90] sm:$0xf] %v3456_v10  ;;  %5543 = vmatpush3.bf16.msra.mxu1 %v5780_v29  ;;  %4471 = vmatprep.mubr.bf16.mxu1 %v5752_v9  ;;  %v3620_v29 = vld [vmem:[#allocation2 + $0x6c] sm:$0xf] }
 0x538   :  { %5560 = vmatprep.subr.bf16.mxu1 %v8754_v63  ;;  %v5792_v9 = vld [vmem:[#allocation2 + $0x10] ss:$20 sps:$4 sm:$0xff]  }
 0x539   :  { %v5755_v36 = vld [vmem:[#allocation2 + $0x50] ss:$20 sps:$4 sm:$0xff]  }
 0x53a   :  { %v3114_v37 = vpop.permute.xlu1 %3113  ;;  %4472 = vmatmul.mubr.bf16.gmra.mrb[16].mxu1 %v5755_v36  ;;  %v3626_v36 = vld [vmem:[#allocation2 + $0x94] sm:$0xf] }
 0x53b   :  { %v3112_v40 = vpop.permute.xlu0 %3111  ;;  %3148 = vst.msk [vmem:[#allocation2 + $0xb4] sm:$0xf] %vm3096_vm15, %v3114_v37 }
 0x53c   :  { %3147 = vst.msk [vmem:[#allocation2 + $0x8c] sm:$0xf] %vm3096_vm15, %v3112_v40  ;;  %3760 = vst.msk [vmem:[#allocation2 + $0x70] sm:$0xf] %vm3096_vm15, %v3112_v40  ;;  %v5790_v40 = vld [vmem:[#allocation2 + $0xc] ss:$20 sps:$4 sm:$0xff]  }
 0x53d   :  { %4552 = vmatprep.mubr.bf16.mxu0 %v5790_v40  ;;  %v5965_v40 = vld [vmem:[%s8990_s0 + $0x30] sm:$0xff] }
 0x53e   :  { %v3401_v2 = vpop.permute.xlu1 %3400  ;;  %v5756_v0 = vld [vmem:[#allocation2 + $0x7c] ss:$20 sps:$4 sm:$0xff]  }
 0x53f   :  { %v3403_v62 = vpop.permute.xlu0 %3402  ;;  %v3459_v24 = vsel %vm8708_vm7, %v3401_v2, %v3458_v19  ;;  %4479 = vmatprep.mubr.bf16.mxu1 %v5756_v0  ;;  %v3623_v2 = vld [vmem:[#allocation2 + $0x80] sm:$0xf] }
 0x540   :  { %v3462_v43 = vsel %vm8708_vm7, %v3403_v62, %v3461_v27  ;;  %3460 = vst [vmem:[#allocation2 + $0xa4] sm:$0xf] %v3459_v24 }
 0x541   :  { %3463 = vst [vmem:[#allocation2 + $0xb8] sm:$0xf] %v3462_v43  ;;  %v5793_v43 = vld [vmem:[#allocation2 + $0x34] ss:$20 sps:$4 sm:$0xff]  }
 0x542   :  { %v3118_v47 = vpop.permute.xlu1 %3117  ;;  %v5766_v8 = vld [vmem:[#allocation2 + $0xa0] ss:$20 sps:$4 sm:$0xff]  }
 0x543   :  { %v3116_v56 = vpop.permute.xlu0 %3115  ;;  %3150 = vst.msk [vmem:[#allocation2 + $0xdc] sm:$0xf] %vm3096_vm15, %v3118_v47  ;;  %3763 = vst.msk [vmem:[#allocation2 + $0xc0] sm:$0xf] %vm3096_vm15, %v3118_v47  ;;  %v5758_v44 = vld [vmem:[#allocation2 + $0x78] ss:$20 sps:$4 sm:$0xff]  }
 0x544   :  { %3149 = vst.msk [vmem:[#allocation2 + $0xc8] sm:$0xf] %vm3096_vm15, %v3116_v56  ;;  %3762 = vst.msk [vmem:[#allocation2 + $0xac] sm:$0xf] %vm3096_vm15, %v3116_v56  ;;  %4480 = vmatmul.mubr.bf16.gmra.mrb[20].mxu1 %v5758_v44  ;;  %v3629_v47 = vld [vmem:[#allocation2 + $0xa8] sm:$0xf] }
 0x546   :  { %v3407_v23 = vpop.permute.xlu1 %3406 }
 0x547   :  { %v3405_v52 = vpop.permute.xlu0 %3404  ;;  %v3468_v57 = vsel %vm8708_vm7, %v3407_v23, %v3467_v11  ;;  %v5796_v11 = vld [vmem:[#allocation2 + $0x38] ss:$20 sps:$4 sm:$0xff]  }
 0x548   :  { %v3465_v51 = vsel %vm8708_vm7, %v3405_v52, %v3464_v46  ;;  %3469 = vst [vmem:[#allocation2 + $0xe0] sm:$0xf] %v3468_v57  ;;  %v5761_v50 = vld [vmem:[#allocation2 + $0xa4] ss:$20 sps:$4 sm:$0xff]   ;;  %v5806_v46 = vld [vmem:[%s9002_s12 + $0x8] sm:$0xff]  }
 0x549   :  { %3466 = vst [vmem:[#allocation2 + $0xcc] sm:$0xf] %v3465_v51  ;;  %4487 = vmatprep.mubr.bf16.mxu1 %v5761_v50  ;;  %v3635_v52 = vld [vmem:[#allocation2 + $0xd0] sm:$0xf]  ;;  %v5798_v51 = vld [vmem:[#allocation2 + $0x60] ss:$20 sps:$4 sm:$0xff]  }
 0x54a   :  { %v3122_v1 = vpop.permute.xlu1 %3121  ;;  %v5799_v50 = vld [vmem:[#allocation2 + $0x5c] ss:$20 sps:$4 sm:$0xff]  }
 0x54b   :  { %v3120_v49 = vpop.permute.xlu0 %3119  ;;  %3152 = vst.msk [vmem:[#allocation2 + $0x104] sm:$0xf] %vm3096_vm15, %v3122_v1  ;;  %3765 = vst.msk [vmem:[#allocation2 + $0xe8] sm:$0xf] %vm3096_vm15, %v3122_v1  ;;  %v5773_v4 = vld [vmem:[#allocation2 + $0xc8] ss:$20 sps:$4 sm:$0xff]  }
 0x54c   :  { %3151 = vst.msk [vmem:[#allocation2 + $0xf0] sm:$0xf] %vm3096_vm15, %v3120_v49  ;;  %3764 = vst.msk [vmem:[#allocation2 + $0xd4] sm:$0xf] %vm3096_vm15, %v3120_v49  ;;  %4488 = vmatmul.mubr.bf16.gmra.mrb[24].mxu1 %v5766_v8  ;;  %v3632_v1 = vld [vmem:[#allocation2 + $0xbc] sm:$0xf] }
 0x54e   :  { %v3411_v31 = vpop.permute.xlu1 %3410 }
 0x54f   :  { %v3409_v17 = vpop.permute.xlu0 %3408  ;;  %v3474_v55 = vsel %vm8708_vm7, %v3411_v31, %v3473_v48  ;;  %v3641_v31 = vld [vmem:[#allocation2 + $0xf8] sm:$0xf] }
 0x550   :  { %v3471_v54 = vsel %vm8708_vm7, %v3409_v17, %v3470_v32  ;;  %3475 = vst [vmem:[#allocation2 + $0x108] sm:$0xf] %v3474_v55  ;;  %v5769_v7 = vld [vmem:[#allocation2 + $0xcc] ss:$20 sps:$4 sm:$0xff]   ;;  %v3638_v17 = vld [vmem:[#allocation2 + $0xe4] sm:$0xf] }
 0x551   :  { %3472 = vst [vmem:[#allocation2 + $0xf4] sm:$0xf] %v3471_v54  ;;  %4495 = vmatprep.mubr.bf16.mxu1 %v5769_v7  ;;  %v5801_v7 = vld [vmem:[#allocation2 + $0x88] ss:$20 sps:$4 sm:$0xff]  }
 0x552   :  { %v3126_v3 = vpop.permute.xlu1 %3125 }
 0x553   :  { %v3124_v59 = vpop.permute.xlu0 %3123  ;;  %3154 = vst.msk [vmem:[#allocation2 + $0x12c] sm:$0xf] %vm3096_vm15, %v3126_v3  ;;  %3767 = vst.msk [vmem:[#allocation2 + $0x110] sm:$0xf] %vm3096_vm15, %v3126_v3  ;;  %v5781_v6 = vld [vmem:[#allocation2 + $0xf0] ss:$20 sps:$4 sm:$0xff]  }
 0x554   :  { %3153 = vst.msk [vmem:[#allocation2 + $0x118] sm:$0xf] %vm3096_vm15, %v3124_v59  ;;  %3766 = vst.msk [vmem:[#allocation2 + $0xfc] sm:$0xf] %vm3096_vm15, %v3124_v59  ;;  %4496 = vmatmul.mubr.bf16.gmra.mrb[28].mxu1 %v5773_v4  ;;  %v5803_v59 = vld [vmem:[#allocation2 + $0xb0] ss:$20 sps:$4 sm:$0xff]  }
 0x555   :  { %v3647_v4 = vld [vmem:[#allocation2 + $0x120] sm:$0xf] }
 0x557   :  { %v3413_v33 = vpop.permute.xlu0 %3412 }
 0x558   :  { %v3477_v53 = vsel %vm8708_vm7, %v3413_v33, %v3476_v16  ;;  %v5776_v13 = vld [vmem:[#allocation2 + $0xf4] ss:$20 sps:$4 sm:$0xff]   ;;  %v3644_v16 = vld [vmem:[#allocation2 + $0x10c] sm:$0xf] }
 0x559   :  { %3478 = vst [vmem:[#allocation2 + $0x11c] sm:$0xf] %v3477_v53  ;;  %4503 = vmatprep.mubr.bf16.mxu1 %v5776_v13 }
 0x55b   :  { %v5791_v60 = vld [vmem:[#allocation2 + $0x118] ss:$20 sps:$4 sm:$0xff]  }
 0x55c   :  { %v3557_v45 = vpop.permute.xlu0 %3556  ;;  %4504 = vmatmul.mubr.bf16.gmra.mrb[32].mxu1 %v5781_v6 }
 0x55d   :  { %v3606_v12 = vsel %vm8790_vm12, %v3557_v45, %v3605_v26 }
 0x55e   :  { %3607 = vst [vmem:[#allocation2 + $0x8] sm:$0xf] %v3606_v12  ;;  %v5807_v12 = vld [vmem:[#allocation2 + $0xd8] ss:$20 sps:$4 sm:$0xff]  }
 0x560   :  { %v3415_v41 = vpop.permute.xlu1 %3414 }
 0x561   :  { %v3480_v18 = vsel %vm8708_vm7, %v3415_v41, %v3479_v58  ;;  %v3561_v21 = vpop.permute.xlu0 %3560 }
 0x562   :  { %3481 = vst [vmem:[#allocation2 + $0x130] sm:$0xf] %v3480_v18  ;;  %v3612_v39 = vsel %vm8790_vm12, %v3561_v21, %v3611_v25  ;;  %v5959_v25 = vld [vmem:[%s8990_s0] sm:$0xff] }
 0x563   :  { %3613 = vst [vmem:[#allocation2 + $0x30] sm:$0xf] %v3612_v39  ;;  %v4737_v21 = vpack.c.bf16 %v5960_v20, %v5959_v25 }
 0x564   :  { %v3559_v61 = vpop.permute.xlu1 %3558 }
 0x565   :  { %v3609_v22 = vsel %vm8790_vm12, %v3559_v61, %v3608_v28  ;;  %v3565_v5 = vpop.permute.xlu0 %3564  ;;  %v3650_v61 = vld [vmem:[#allocation2 + $0x134] sm:$0xf] }
 0x566   :  { %3610 = vst [vmem:[#allocation2 + $0x1c] sm:$0xf] %v3609_v22  ;;  %v3618_v10 = vsel %vm8790_vm12, %v3565_v5, %v3617_v15  ;;  %v5963_v5 = vld [vmem:[%s8990_s0 + $0x20] sm:$0xff] }
 0x567   :  { %3619 = vst [vmem:[#allocation2 + $0x58] sm:$0xf] %v3618_v10 }
 0x568   :  { %v3563_v14 = vpop.permute.xlu1 %3562 }
 0x569   :  { %v3615_v42 = vsel %vm8790_vm12, %v3563_v14, %v3614_v35  ;;  %v5784_v30 = vld [vmem:[#allocation2 + $0x11c] ss:$20 sps:$4 sm:$0xff]   ;;  %v3569_v62 = vpop.permute.xlu0 %3568  ;;  %v5808_v35 = vld [vmem:[#allocation2 + $0x100] ss:$20 sps:$4 sm:$0xff]  }
 0x56a   :  { %3616 = vst [vmem:[#allocation2 + $0x44] sm:$0xf] %v3615_v42  ;;  %4511 = vmatprep.mubr.bf16.mxu1 %v5784_v30  ;;  %v3624_v24 = vsel %vm8790_vm12, %v3569_v62, %v3623_v2  ;;  %v5809_v14 = vld [vmem:[#allocation2 + $0xac] ss:$20 sps:$4 sm:$0xff]   ;;  %v5811_v42 = vld [vmem:[#allocation2 + $0x128] ss:$20 sps:$4 sm:$0xff]  }
 0x56b   :  { %4512 = vmatmul.mubr.bf16.gmra.mrb[36].mxu1 %v5791_v60  ;;  %3625 = vst [vmem:[#allocation2 + $0x80] sm:$0xf] %v3624_v24  ;;  %v5813_v30 = vld [vmem:[#allocation2 + $0xd4] ss:$20 sps:$4 sm:$0xff]  }
 0x56c   :  { %v3567_v34 = vpop.permute.xlu1 %3566  ;;  %5544 = vmatprep.mubr.msk.bf16.mxu1 %vm2322_vm1, %v5792_v9  ;;  %v5966_v9 = vld [vmem:[%s8990_s0 + $0x38] sm:$0xff]  ;;  %v5968_v2 = vld [vmem:[%s8990_s0 + $0x48] sm:$0xff] }
 0x56d   :  { %v3621_v38 = vsel %vm8790_vm12, %v3567_v34, %v3620_v29  ;;  %v5788_v37 = vld [vmem:[#allocation2 + $0x8] ss:$20 sps:$4 sm:$0xff]   ;;  %v3750_v0 = vpop.permute.xlu0 %3749  ;;  %v5961_v29 = vld [vmem:[%s8990_s0 + $0x10] sm:$0xff] }
 0x56e   :  { %3622 = vst [vmem:[#allocation2 + $0x6c] sm:$0xf] %v3621_v38  ;;  %4553 = vmatmul.mubr.bf16.vlgmr.msra.gmra.mrb[52].mxu0 %v5788_v37  ;;  %3761 = vst.msk [vmem:[#allocation2 + $0x84] sm:$0xf] %vm3096_vm15, %v3750_v0  ;;  %v5962_v34 = vld [vmem:[%s8990_s0 + $0x18] sm:$0xff]  ;;  %v5964_v38 = vld [vmem:[%s8990_s0 + $0x28] sm:$0xff] }
 0x56f   :  { %4560 = vmatprep.mubr.bf16.mxu0 %v5793_v43  ;;  %v4738_v15 = vpack.c.bf16 %v5962_v34, %v5961_v29  ;;  %v4739_v60 = vpack.c.bf16 %v5964_v38, %v5963_v5  ;;  %v5816_v37 = vld [vmem:[#allocation2 + $0xfc] ss:$20 sps:$4 sm:$0xff]   ;;  %v5971_v0 = vld [vmem:[%s8990_s0 + $0x60] sm:$0xff] }
 0x570   :  { %v3571_v19 = vpop.permute.xlu1 %3570  ;;  %v5969_v43 = vld [vmem:[%s8990_s0 + $0x50] sm:$0xff] }
 0x571   :  { %v3627_v27 = vsel %vm8790_vm12, %v3571_v19, %v3626_v36  ;;  %v5797_v23 = vld [vmem:[#allocation2 + $0x30] ss:$20 sps:$4 sm:$0xff]   ;;  %v3575_v49 = vpop.permute.xlu0 %3574  ;;  %v4740_v36 = vpack.c.bf16 %v5966_v9, %v5965_v40 }
 0x572   :  { %3628 = vst [vmem:[#allocation2 + $0x94] sm:$0xf] %v3627_v27  ;;  %v3633_v48 = vsel %vm8790_vm12, %v3575_v49, %v3632_v1  ;;  %v5967_v19 = vld [vmem:[%s8990_s0 + $0x40] sm:$0xff] }
 0x573   :  { %5545 = vmatmul.mubr.msk.bf16.vlgmr.msra.gmra.mrb[40].mxu1 %vm2322_vm1, %v5796_v11  ;;  %3634 = vst [vmem:[#allocation2 + $0xbc] sm:$0xf] %v3633_v48  ;;  %v4741_v62 = vpack.c.bf16 %v5968_v2, %v5967_v19 }
 0x574   :  { %v3573_v56 = vpop.permute.xlu1 %3572  ;;  %5561 = vmatpush3.bf16.msra.mxu1 %v8754_v63  ;;  %5548 = vmatprep.mubr.msk.bf16.mxu1 %vm2322_vm1, %v5798_v51 }
 0x575   :  { %v3630_v44 = vsel %vm8790_vm12, %v3573_v56, %v3629_v47  ;;  %5562 = vmatprep.subr.bf16.mxu1 %v5806_v46  ;;  %v3579_v55 = vpop.permute.xlu0 %3578  ;;  %v5802_v3 = vld [vmem:[#allocation2 + $0x58] ss:$20 sps:$4 sm:$0xff]   ;;  %v3882_v13 = vld [vmem:[#allocation2 + $0x80] sm:$0xff] }
 0x576   :  { %3631 = vst [vmem:[#allocation2 + $0xa8] sm:$0xf] %v3630_v44  ;;  %4561 = vmatmul.mubr.bf16.gmra.mrb[56].mxu0 %v5797_v23  ;;  %v3639_v63 = vsel %vm8790_vm12, %v3579_v55, %v3638_v17  ;;  %v5804_v41 = vld [vmem:[#allocation2 + $0x84] ss:$20 sps:$4 sm:$0xff]   ;;  %v5972_v44 = vld [vmem:[%s8990_s0 + $0x68] sm:$0xff] }
 0x577   :  { %4568 = vmatprep.mubr.bf16.mxu0 %v5799_v50  ;;  %3640 = vst [vmem:[#allocation2 + $0xe4] sm:$0xf] %v3639_v63  ;;  %v5970_v47 = vld [vmem:[%s8990_s0 + $0x58] sm:$0xff]  ;;  %v4743_v11 = vpack.c.bf16 %v5972_v44, %v5971_v0 }
 0x578   :  { %v3577_v57 = vpop.permute.xlu1 %3576  ;;  %5563 = vmatpush3.bf16.msra.mxu1 %v5806_v46  ;;  %v4742_v56 = vpack.c.bf16 %v5970_v47, %v5969_v43  ;;  %v5973_v46 = vld [vmem:[%s8990_s0 + $0x70] sm:$0xff] }
 0x579   :  { %v3636_v8 = vsel %vm8790_vm12, %v3577_v57, %v3635_v52  ;;  %v3583_v33 = vpop.permute.xlu0 %3582  ;;  %v3885_v45 = vld [vmem:[#allocation2 + $0x94] sm:$0xff] }
 0x57a   :  { %3637 = vst [vmem:[#allocation2 + $0xd0] sm:$0xf] %v3636_v8  ;;  %v3645_v53 = vsel %vm8790_vm12, %v3583_v33, %v3644_v16  ;;  %v5093_v6 = vcombine.low %v3882_v13, %v3885_v45  ;;  %v5974_v52 = vld [vmem:[%s8990_s0 + $0x78] sm:$0xff] }
 0x57b   :  { %5549 = vmatmul.mubr.msk.bf16.gmra.mrb[44].mxu1 %vm2322_vm1, %v5801_v7  ;;  %3646 = vst [vmem:[#allocation2 + $0x10c] sm:$0xf] %v3645_v53  ;;  %v4744_v57 = vpack.c.bf16 %v5974_v52, %v5973_v46 }
 0x57c   :  { %v3581_v32 = vpop.permute.xlu1 %3580  ;;  %5552 = vmatprep.mubr.msk.bf16.mxu1 %vm2322_vm1, %v5803_v59 }
 0x57d   :  { %v3642_v54 = vsel %vm8790_vm12, %v3581_v32, %v3641_v31  ;;  %v3587_v26 = vpop.permute.xlu0 %3586  ;;  %v5812_v39 = vld [vmem:[#allocation2 + $0xa8] ss:$20 sps:$4 sm:$0xff]  }
 0x57e   :  { %3643 = vst [vmem:[#allocation2 + $0xf8] sm:$0xf] %v3642_v54  ;;  %4569 = vmatmul.mubr.bf16.gmra.mrb[60].mxu0 %v5802_v3  ;;  %v3651_v22 = vsel %vm8790_vm12, %v3587_v26, %v3650_v61 }
 0x57f   :  { %4576 = vmatprep.mubr.bf16.mxu0 %v5804_v41  ;;  %3652 = vst [vmem:[#allocation2 + $0x134] sm:$0xf] %v3651_v22 }
 0x580   :  { %v3585_v58 = vpop.permute.xlu1 %3584 }
 0x581   :  { %v3648_v18 = vsel %vm8790_vm12, %v3585_v58, %v3647_v4  ;;  %v5815_v10 = vld [vmem:[#allocation2 + $0xd0] ss:$20 sps:$4 sm:$0xff]  }
 0x582   :  { %3649 = vst [vmem:[#allocation2 + $0x120] sm:$0xf] %v3648_v18 }
 0x583   :  { %5553 = vmatmul.mubr.msk.bf16.gmra.mrb[48].mxu1 %vm2322_vm1, %v5807_v12 }
 0x584   :  { %v3752_v28 = vpop.permute.xlu1 %3751  ;;  %5556 = vmatprep.mubr.msk.bf16.mxu1 %vm2322_vm1, %v5808_v35 }
 0x585   :  { %3768 = vst.msk [vmem:[#allocation2 + $0x124] sm:$0xf] %vm3096_vm15, %v3752_v28  ;;  %v5818_v27 = vld [vmem:[#allocation2 + $0xf8] ss:$20 sps:$4 sm:$0xff]  }
 0x586   :  { %4577 = vmatmul.mubr.bf16.gmra.mrb[64].mxu0 %v5093_v6 }
 0x587   :  { %4584 = vmatprep.mubr.bf16.mxu0 %v5809_v14 }
 0x589   :  { %v5821_v23 = vld [vmem:[#allocation2 + $0x120] ss:$20 sps:$4 sm:$0xff]  }
 0x58b   :  { %5557 = vmatmul.mubr.msk.bf16.gmra.mrb[52].mxu1 %vm2322_vm1, %v5811_v42 }
 0x58c   :  { %5564 = vmatprep.mubr.msk.bf16.mxu1 %vm71_vm0, %v4737_v21  ;;  %v5819_v24 = vld [vmem:[#allocation2 + $0x124] ss:$20 sps:$4 sm:$0xff]  }
 0x58e   :  { %4585 = vmatmul.mubr.bf16.gmra.mrb[68].mxu0 %v5812_v39 }
 0x58f   :  { %4592 = vmatprep.mubr.bf16.mxu0 %v5813_v30 }
 0x593   :  { %5565 = vmatmul.mubr.msk.bf16.vlgmr.msra.gmra.mrb[40].mxu1 %vm71_vm0, %v4738_v15 }
 0x594   :  { %5568 = vmatprep.mubr.msk.bf16.mxu1 %vm71_vm0, %v4739_v60 }
 0x596   :  { %4593 = vmatmul.mubr.bf16.gmra.mrb[72].mxu0 %v5815_v10 }
 0x597   :  { %4600 = vmatprep.mubr.bf16.mxu0 %v5816_v37 }
 0x59b   :  { %5569 = vmatmul.mubr.msk.bf16.gmra.mrb[44].mxu1 %vm71_vm0, %v4740_v36 }
 0x59c   :  { %5572 = vmatprep.mubr.msk.bf16.mxu1 %vm71_vm0, %v4741_v62 }
 0x59e   :  { %4601 = vmatmul.mubr.bf16.gmra.mrb[76].mxu0 %v5818_v27 }
 0x59f   :  { %4608 = vmatprep.mubr.bf16.mxu0 %v5819_v24 }
 0x5a3   :  { %5573 = vmatmul.mubr.msk.bf16.gmra.mrb[48].mxu1 %vm71_vm0, %v4742_v56 }
 0x5a4   :  { %5576 = vmatprep.mubr.msk.bf16.mxu1 %vm71_vm0, %v4743_v11 }
 0x5a6   :  { %4609 = vmatmul.mubr.bf16.gmra.mrb[80].mxu0 %v5821_v23 }
 0x5ab   :  { %5577 = vmatmul.mubr.msk.bf16.gmra.mrb[52].mxu1 %vm71_vm0, %v4744_v57 }
 0x5fd   :  { %v5322_v51 = vpop.f32.mrb[8].mxu1 }
 0x5fe   :  { %v5323_v50 = vpop.f32.mrb[9].mxu1 }
 0x5ff   :  { %v5324_v1 = vadd.f32 %v5323_v50, %v5322_v51  ;;  %v5325_v49 = vpop.f32.mrb[10].mxu1 }
 0x600   :  { %v5326_v8 = vpop.f32.mrb[11].mxu1 }
 0x601   :  { %v5327_v48 = vadd.f32 %v5326_v8, %v5325_v49 }
 0x605   :  { %v5328_v31 = vpop.f32.mrb[12].mxu1 }
 0x606   :  { %v5329_v32 = vpop.f32.mrb[13].mxu1 }
 0x607   :  { %v5330_v17 = vadd.f32 %v5329_v32, %v5328_v31  ;;  %v5331_v55 = vpop.f32.mrb[14].mxu1 }
 0x608   :  { %v5332_v54 = vpop.f32.mrb[15].mxu1 }
 0x609   :  { %v5333_v63 = vadd.f32 %v5332_v54, %v5331_v55 }
 0x60d   :  { %v5334_v7 = vpop.f32.mrb[16].mxu1 }
 0x60e   :  { %v5335_v3 = vpop.f32.mrb[17].mxu1 }
 0x60f   :  { %v5336_v59 = vadd.f32 %v5335_v3, %v5334_v7  ;;  %v5337_v4 = vpop.f32.mrb[18].mxu1 }
 0x610   :  { %v5338_v58 = vpop.f32.mrb[19].mxu1 }
 0x611   :  { %v5339_v41 = vadd.f32 %v5338_v58, %v5337_v4 }
 0x617   :  { %v5340_v16 = vpop.f32.mrb[20].mxu1 }
 0x618   :  { %v5341_v33 = vpop.f32.mrb[21].mxu1 }
 0x619   :  { %v5342_v18 = vadd.f32 %v5341_v33, %v5340_v16  ;;  %v5343_v53 = vpop.f32.mrb[22].mxu1 }
 0x61a   :  { %v5344_v13 = vpop.f32.mrb[23].mxu1 }
 0x61b   :  { %v5345_v28 = vadd.f32 %v5344_v13, %v5343_v53 }
 0x61f   :  { %v5346_v61 = vpop.f32.mrb[24].mxu1 }
 0x620   :  { %v5347_v26 = vpop.f32.mrb[25].mxu1 }
 0x621   :  { %v5348_v45 = vadd.f32 %v5347_v26, %v5346_v61  ;;  %v5349_v22 = vpop.f32.mrb[26].mxu1 }
 0x622   :  { %v5350_v12 = vpop.f32.mrb[27].mxu1 }
 0x623   :  { %v5351_v6 = vadd.f32 %v5350_v12, %v5349_v22 }
 0x627   :  { %v5352_v35 = vpop.f32.mrb[28].mxu1 }
 0x628   :  { %v5353_v14 = vpop.f32.mrb[29].mxu1 }
 0x629   :  { %v8896_v25 = vadd.f32 %v5353_v14, %v5352_v35  ;;  %v5355_v20 = vpop.f32.mrb[30].mxu1 }
 0x62a   :  { %v5356_v21 = vpop.f32.mrb[31].mxu1 }
 0x62b   :  { %v8898_v42 = vadd.f32 %v5356_v21, %v5355_v20 }
 0x62f   :  { %v5358_v39 = vpop.f32.mrb[32].mxu1 }
 0x630   :  { %v5359_v30 = vpop.f32.mrb[33].mxu1 }
 0x631   :  { %v8900_v29 = vadd.f32 %v5359_v30, %v5358_v39  ;;  %v5361_v34 = vpop.f32.mrb[34].mxu1 }
 0x632   :  { %v5362_v15 = vpop.f32.mrb[35].mxu1 }
 0x633   :  { %v8902_v5 = vadd.f32 %v5362_v15, %v5361_v34 }
 0x63e   :  { %v5364_v38 = vpop.f32.mrb[36].mxu1 }
 0x63f   :  { %v5365_v60 = vpop.f32.mrb[37].mxu1 }
 0x640   :  { %v8904_v37 = vadd.f32 %v5365_v60, %v5364_v38  ;;  %v5367_v40 = vpop.f32.mrb[38].mxu1 }
 0x641   :  { %v5386_v10 = vpop.f32.mrb[52].mxu0  ;;  %v5368_v19 = vpop.f32.mrb[39].mxu1 }
 0x642   :  { %v5387_v9 = vpop.f32.mrb[53].mxu0  ;;  %v8906_v62 = vadd.f32 %v5368_v19, %v5367_v40 }
 0x643   :  { %v5388_v36 = vadd.f32 %v5387_v9, %v5386_v10  ;;  %v5389_v2 = vpop.f32.mrb[54].mxu0 }
 0x644   :  { %v5390_v27 = vpop.f32.mrb[55].mxu0 }
 0x645   :  { %v4555_v24 = vadd.f32 %v5388_v36, %v5324_v1  ;;  %v5391_v43 = vadd.f32 %v5390_v27, %v5389_v2 }
 0x647   :  { %v4558_v47 = vadd.f32 %v5391_v43, %v5327_v48 }
 0x649   :  { %v5392_v56 = vpop.f32.mrb[56].mxu0 }
 0x64a   :  { %v5393_v0 = vpop.f32.mrb[57].mxu0 }
 0x64b   :  { %v5394_v44 = vadd.f32 %v5393_v0, %v5392_v56  ;;  %v5395_v11 = vpop.f32.mrb[58].mxu0 }
 0x64c   :  { %v5396_v23 = vpop.f32.mrb[59].mxu0 }
 0x64d   :  { %v4563_v46 = vadd.f32 %v5394_v44, %v5330_v17  ;;  %v5397_v52 = vadd.f32 %v5396_v23, %v5395_v11 }
 0x64f   :  { %v4566_v57 = vadd.f32 %v5397_v52, %v5333_v63 }
 0x651   :  { %v5398_v51 = vpop.f32.mrb[60].mxu0 }
 0x652   :  { %v5399_v50 = vpop.f32.mrb[61].mxu0 }
 0x653   :  { %v5400_v49 = vadd.f32 %v5399_v50, %v5398_v51  ;;  %v5401_v8 = vpop.f32.mrb[62].mxu0 }
 0x654   :  { %v5402_v31 = vpop.f32.mrb[63].mxu0 }
 0x655   :  { %v4571_v32 = vadd.f32 %v5400_v49, %v5336_v59  ;;  %v5403_v55 = vadd.f32 %v5402_v31, %v5401_v8  ;;  %v8913_v59 = vld [vmem:[%s9001_s11] ss:$0 sm:$0xff]  ;;  %s6007_s11 = smov [#allocation3]  }
 0x656   :  { %v5616_v12 = vadd.f32 %v8913_v59, %v4563_v46  ;;  %v5619_v35 = vadd.f32 %v8913_v59, %v4555_v24  ;;  %v5622_v21 = vadd.f32 %v8913_v59, %v4566_v57 }
 0x657   :  { %v4574_v54 = vadd.f32 %v5403_v55, %v5339_v41  ;;  %v5631_v44 = vadd.f32 %v8913_v59, %v4571_v32 }
 0x659   :  { %v5404_v7 = vpop.f32.mrb[64].mxu0  ;;  %v5637_v50 = vadd.f32 %v8913_v59, %v4574_v54 }
 0x65a   :  { %v5405_v1 = vpop.f32.mrb[65].mxu0 }
 0x65b   :  { %v5406_v3 = vadd.f32 %v5405_v1, %v5404_v7  ;;  %v5407_v48 = vpop.f32.mrb[66].mxu0 }
 0x65c   :  { %v5408_v4 = vpop.f32.mrb[67].mxu0 }
 0x65d   :  { %v4579_v58 = vadd.f32 %v5406_v3, %v5342_v18  ;;  %v5409_v16 = vadd.f32 %v5408_v4, %v5407_v48 }
 0x65f   :  { %v4582_v33 = vadd.f32 %v5409_v16, %v5345_v28  ;;  %v8921_v28 = vld [vmem:[%s9003_s13] ss:$0 sm:$0xff]  ;;  %v5628_v56 = vadd.f32 %v8913_v59, %v4579_v58  ;;  %s4942_s13 = sshll.u32 %s6007_s11, 4  ;;  %s4943_s13 = int_to_ptr.vmem [resolvable:$true] %s4942_s13 }
 0x660   :  { %s5975_s2 = scalar_lea.vmem %s4943_s13, 2048  ;;  %p5980_p1 = scmp.lt.s32.totalorder %s4943_s13, %s4943_s13 }
 0x661   :  { %v5410_v53 = vpop.f32.mrb[68].mxu0  ;;  %v5634_v46 = vadd.f32 %v8913_v59, %v4582_v33  ;;  %p5976_p0 = scmp.ne.s32.totalorder %s4943_s13, %s5975_s2  ;;  %p5981_p2 = scmp.lt.s32.totalorder %s5975_s2, %s5975_s2 }
 0x662   :  { %v5411_v17 = vpop.f32.mrb[69].mxu0 }
 0x663   :  { %v5412_v13 = vadd.f32 %v5411_v17, %v5410_v53  ;;  %v5413_v63 = vpop.f32.mrb[70].mxu0  ;;  %p5982_p3 = por %p5981_p2, %p5980_p1 }
 0x664   :  { %v5414_v61 = vpop.f32.mrb[71].mxu0 }
 0x665   :  { %v8908_v26 = vadd.f32 %v5412_v13, %v5348_v45  ;;  %v5415_v22 = vadd.f32 %v5414_v61, %v5413_v63  ;;  %p5983_p4 = pnand %p5982_p3, %p5976_p0 }
 0x666   :  { %v5566_v18 = vpop.f32.mrb[40].mxu1 }
 0x667   :  { %v8915_v41 = vadd.f32 %v5415_v22, %v5351_v6  ;;  %v5617_v45 = vadd.f32 %v5616_v12, %v5566_v18  ;;  %v4819_v20 = vpop.f32.mrb[41].mxu1  ;;  %v5625_v6 = vadd.f32 %v8913_v59, %v4558_v47  ;;  %v5643_v53 = vadd.f32 %v8913_v59, %v8908_v26 }
 0x668   :  { %v5620_v39 = vadd.f32 %v5619_v35, %v4819_v20  ;;  %v5567_v34 = vpop.f32.mrb[42].mxu1 }
 0x669   :  { %v5416_v14 = vpop.f32.mrb[72].mxu0  ;;  %v5618_v15 = vadd.f32 %v5617_v45, %v8921_v28  ;;  %v5623_v60 = vadd.f32 %v5622_v21, %v5567_v34  ;;  %v4822_v40 = vpop.f32.mrb[43].mxu1  ;;  %v5649_v18 = vadd.f32 %v8913_v59, %v8915_v41 }
 0x66a   :  { %v5417_v30 = vpop.f32.mrb[73].mxu0  ;;  %v5621_v9 = vadd.f32 %v5620_v39, %v8921_v28  ;;  %v5626_v36 = vadd.f32 %v5625_v6, %v4822_v40 }
 0x66b   :  { %v5418_v38 = vadd.f32 %v5417_v30, %v5416_v14  ;;  %v5419_v10 = vpop.f32.mrb[74].mxu0  ;;  %4923 = vst.msk [vmem:[#allocation3 + $0x10] sm:$0xff] %vm2322_vm1, %v5618_v15  ;;  %v5624_v27 = vadd.f32 %v5623_v60, %v8921_v28 }
 0x66c   :  { %v5420_v19 = vpop.f32.mrb[75].mxu0  ;;  %4921 = vst.msk [vmem:[#allocation3] sm:$0xff] %vm2322_vm1, %v5621_v9  ;;  %v5627_v43 = vadd.f32 %v5626_v36, %v8921_v28 }
 0x66d   :  { %v4595_v2 = vadd.f32 %v5418_v38, %v8896_v25  ;;  %v5421_v24 = vadd.f32 %v5420_v19, %v5419_v10  ;;  %4924 = vst.msk [vmem:[#allocation3 + $0x18] sm:$0xff] %vm2322_vm1, %v5624_v27 }
 0x66e   :  { %4922 = vst.msk [vmem:[#allocation3 + $0x8] sm:$0xff] %vm2322_vm1, %v5627_v43  ;;  %v5570_v0 = vpop.f32.mrb[44].mxu1 }
 0x66f   :  { %v4598_v47 = vadd.f32 %v5421_v24, %v8898_v42  ;;  %v5629_v11 = vadd.f32 %v5628_v56, %v5570_v0  ;;  %v4835_v23 = vpop.f32.mrb[45].mxu1  ;;  %v5640_v16 = vadd.f32 %v8913_v59, %v4595_v2 }
 0x670   :  { %v5632_v52 = vadd.f32 %v5631_v44, %v4835_v23  ;;  %v5571_v51 = vpop.f32.mrb[46].mxu1 }
 0x671   :  { %v5422_v25 = vpop.f32.mrb[76].mxu0  ;;  %v5630_v49 = vadd.f32 %v5629_v11, %v8921_v28  ;;  %v5635_v8 = vadd.f32 %v5634_v46, %v5571_v51  ;;  %v4838_v55 = vpop.f32.mrb[47].mxu1  ;;  %v5646_v63 = vadd.f32 %v8913_v59, %v4598_v47 }
 0x672   :  { %v5423_v57 = vpop.f32.mrb[77].mxu0  ;;  %v5633_v7 = vadd.f32 %v5632_v52, %v8921_v28  ;;  %v5638_v1 = vadd.f32 %v5637_v50, %v4838_v55 }
 0x673   :  { %v5424_v42 = vadd.f32 %v5423_v57, %v5422_v25  ;;  %v5425_v31 = vpop.f32.mrb[78].mxu0  ;;  %4927 = vst.msk [vmem:[#allocation3 + $0x30] sm:$0xff] %vm2322_vm1, %v5630_v49  ;;  %v5636_v48 = vadd.f32 %v5635_v8, %v8921_v28 }
 0x674   :  { %v5426_v32 = vpop.f32.mrb[79].mxu0  ;;  %4925 = vst.msk [vmem:[#allocation3 + $0x20] sm:$0xff] %vm2322_vm1, %v5633_v7  ;;  %v5639_v54 = vadd.f32 %v5638_v1, %v8921_v28 }
 0x675   :  { %v4603_v3 = vadd.f32 %v5424_v42, %v8900_v29  ;;  %v5427_v4 = vadd.f32 %v5426_v32, %v5425_v31  ;;  %4928 = vst.msk [vmem:[#allocation3 + $0x38] sm:$0xff] %vm2322_vm1, %v5636_v48 }
 0x676   :  { %4926 = vst.msk [vmem:[#allocation3 + $0x28] sm:$0xff] %vm2322_vm1, %v5639_v54  ;;  %v5574_v33 = vpop.f32.mrb[48].mxu1 }
 0x677   :  { %v4606_v58 = vadd.f32 %v5427_v4, %v8902_v5  ;;  %v5641_v29 = vadd.f32 %v5640_v16, %v5574_v33  ;;  %v4851_v13 = vpop.f32.mrb[49].mxu1  ;;  %v5655_v10 = vadd.f32 %v8913_v59, %v4603_v3 }
 0x678   :  { %v5644_v61 = vadd.f32 %v5643_v53, %v4851_v13  ;;  %v5575_v12 = vpop.f32.mrb[50].mxu1 }
 0x679   :  { %v5428_v17 = vpop.f32.mrb[80].mxu0  ;;  %v5642_v5 = vadd.f32 %v5641_v29, %v8921_v28  ;;  %v5647_v45 = vadd.f32 %v5646_v63, %v5575_v12  ;;  %v4854_v20 = vpop.f32.mrb[51].mxu1  ;;  %v5661_v2 = vadd.f32 %v8913_v59, %v4606_v58 }
 0x67a   :  { %v5429_v22 = vpop.f32.mrb[81].mxu0  ;;  %v5645_v21 = vadd.f32 %v5644_v61, %v8921_v28  ;;  %v5650_v26 = vadd.f32 %v5649_v18, %v4854_v20 }
 0x67b   :  { %v5430_v35 = vadd.f32 %v5429_v22, %v5428_v17  ;;  %v5431_v14 = vpop.f32.mrb[82].mxu0  ;;  %4931 = vst.msk [vmem:[#allocation3 + $0x50] sm:$0xff] %vm2322_vm1, %v5642_v5  ;;  %v5648_v34 = vadd.f32 %v5647_v45, %v8921_v28 }
 0x67c   :  { %v5432_v39 = vpop.f32.mrb[83].mxu0  ;;  %4929 = vst.msk [vmem:[#allocation3 + $0x40] sm:$0xff] %vm2322_vm1, %v5645_v21  ;;  %v5651_v41 = vadd.f32 %v5650_v26, %v8921_v28 }
 0x67d   :  { %v4611_v30 = vadd.f32 %v5430_v35, %v8904_v37  ;;  %v5433_v6 = vadd.f32 %v5432_v39, %v5431_v14  ;;  %4932 = vst.msk [vmem:[#allocation3 + $0x58] sm:$0xff] %vm2322_vm1, %v5648_v34 }
 0x67e   :  { %4930 = vst.msk [vmem:[#allocation3 + $0x48] sm:$0xff] %vm2322_vm1, %v5651_v41  ;;  %v5578_v60 = vpop.f32.mrb[52].mxu1 }
 0x67f   :  { %v4614_v15 = vadd.f32 %v5433_v6, %v8906_v62  ;;  %v5652_v38 = vadd.f32 %v8913_v59, %v4611_v30  ;;  %v4867_v37 = vpop.f32.mrb[53].mxu1 }
 0x680   :  { %v5656_v36 = vadd.f32 %v5655_v10, %v4867_v37  ;;  %v5579_v19 = vpop.f32.mrb[54].mxu1 }
 0x681   :  { %v5653_v40 = vadd.f32 %v5652_v38, %v5578_v60  ;;  %v5658_v9 = vadd.f32 %v8913_v59, %v4614_v15  ;;  %v4870_v43 = vpop.f32.mrb[55].mxu1 }
 0x682   :  { %v5657_v62 = vadd.f32 %v5656_v36, %v8921_v28  ;;  %v5662_v47 = vadd.f32 %v5661_v2, %v4870_v43 }
 0x683   :  { %v5654_v27 = vadd.f32 %v5653_v40, %v8921_v28  ;;  %v5659_v24 = vadd.f32 %v5658_v9, %v5579_v19 }
 0x684   :  { %4933 = vst.msk [vmem:[#allocation3 + $0x60] sm:$0xff] %vm2322_vm1, %v5657_v62  ;;  %v5663_v0 = vadd.f32 %v5662_v47, %v8921_v28 }
 0x685   :  { %4935 = vst.msk [vmem:[#allocation3 + $0x70] sm:$0xff] %vm2322_vm1, %v5654_v27  ;;  %v5660_v56 = vadd.f32 %v5659_v24, %v8921_v28 }
 0x686   :  { %4934 = vst.msk [vmem:[#allocation3 + $0x68] sm:$0xff] %vm2322_vm1, %v5663_v0 }
 0x687   :  { %4936 = vst.msk [vmem:[#allocation3 + $0x78] sm:$0xff] %vm2322_vm1, %v5660_v56 }
 0x688   :  { %5986 = shalt.err (!%p5983_p4)
}
 0x689   :  { %s5987_s9 = scalar_lea.hbm %s9004_s14, 2048 }
 0x68a   :  { %p5988_p5 = scmp.ne.s32.totalorder %s9004_s14, %s5987_s9  ;;  %p5991_p6 = scmp.lt.u32.totalorder %s5987_s9, %s9004_s14 }
 0x68c   :  { %p5993_p7 = pnand %p5991_p6, %p5988_p5 }
 0x68e   :  { %5996 = shalt.err (!%p5993_p7)
}
 0x68f   :  { %s6008_s6 = smov 128   ;;  %s6009_s5 = smov 8  }
 0x690   :  { %4948 = dma.vmem_to_hbm [thread:$0]  %s4943_s13, 2048, %s9004_s14, [#allocation4], %s6008_s6, %s6008_s6, %s6009_s5  }
 0x691   :  { %5997 = dma.done.wait [#allocation4], 2048  }
 0x692   :  { %5998 = vsyncadd [#allocation4], 4294965248 }
 0x693   :  { %4952 = vsyncpa [#allocation4], 1 }

</bundles_post_ra>
